<compile_context>
chip_gen: v7x
topology: tpu7x:2x2x1
jax: 0.10.0
libtpu: 0.0.40
codegen_flags: <defaults>
</compile_context>

<pallas_src>
import math
from functools import partial

import jax
import jax.numpy as jnp
from jax import lax
from jax.experimental import pallas as pl
from jax.experimental.pallas import tpu as pltpu

LN_EPS = 1e-5
FAVOR_EPS = 1e-4


def _round_up(v, m):
    return (v + m - 1) // m * m


def _layernorm(x, g, b):
    mu = jnp.mean(x, axis=-1, keepdims=True)
    xc = x - mu
    var = jnp.mean(xc * xc, axis=-1, keepdims=True)
    return xc * lax.rsqrt(var + LN_EPS) * g + b


# ---------------------------------------------------------------------------
# Fused EncoderLayer kernel.  Grid (B,): one batch element per step.
#   x1  = x  + bo + concat_h(FAVOR_h(LN(x) Wq_h, ... )) @ Wo
#   out = x1 + PWConv(SiLU(DWConv(GLU(PWConv(LN(x1))))))
# ---------------------------------------------------------------------------
def encoder_layer_kernel(x_ref, ng_ref, nb_ref,
                         wq_ref, bq_ref, wk_ref, bk_ref, wv_ref, bv_ref,
                         pjt_ref, wo_ref, bo_ref,
                         cg_ref, cb_ref,
                         w1a_ref, b1a_ref, w1b_ref, b1b_ref,
                         wd_ref, bd_ref, w2_ref, b2_ref,
                         o_ref,
                         oh_ref, pad_ref, *, m_valid):
    n = x_ref.shape[1]
    heads, _, dh = wq_ref.shape
    mp = pjt_ref.shape[-1]

    x = x_ref[0]                                          # (N, D) f32

    # ------------------- attention branch -------------------
    # LayerNorm computed ONCE (not per head).
    y = _layernorm(x, ng_ref[...], nb_ref[...])           # (N, D) f32
    y_bf = y.astype(jnp.bfloat16)                         # MXU operand

    dn = float(dh) ** -0.25                               # data_normalizer
    ratio = float(m_valid) ** -0.5                        # uses true M, not padded Mp
    pjt = pjt_ref[...]                                    # (dh, Mp) bf16
    valid = lax.broadcasted_iota(jnp.int32, (1, mp), 1) < m_valid

    for h in range(heads):                                # static, unrolled
        q = jnp.dot(y_bf, wq_ref[h], preferred_element_type=jnp.float32) + bq_ref[h]
        k = jnp.dot(y_bf, wk_ref[h], preferred_element_type=jnp.float32) + bk_ref[h]
        v = jnp.dot(y_bf, wv_ref[h], preferred_element_type=jnp.float32) + bv_ref[h]

        # Performer softmax-kernel random features (no concat staging copy).
        q_dash = jnp.dot((q * dn).astype(jnp.bfloat16), pjt,
                         preferred_element_type=jnp.float32)          # (N, Mp)
        k_dash = jnp.dot((k * dn).astype(jnp.bfloat16), pjt,
                         preferred_element_type=jnp.float32)          # (N, Mp)

        q_diag = jnp.sum(q * q, axis=-1, keepdims=True) * (0.5 * dn * dn)
        k_diag = jnp.sum(k * k, axis=-1, keepdims=True) * (0.5 * dn * dn)

        # Mask lane-padding feature columns (Mp >= m_valid) to exactly zero.
        q_max = jnp.max(jnp.where(valid, q_dash, -1e30), axis=-1, keepdims=True)
        q_feat = jnp.where(
            valid, ratio * (jnp.exp(q_dash - q_diag - q_max) + FAVOR_EPS), 0.0)
        # Key path matches the module exactly: exp(k_dash - k_diag + eps).
        k_feat = jnp.where(
            valid, ratio * jnp.exp(k_dash - k_diag + FAVOR_EPS), 0.0)

        # Linear attention: out = (q' @ (k'^T v)) / (q' @ sum_n k')
        context = lax.dot_general(
            k_feat.astype(jnp.bfloat16), v.astype(jnp.bfloat16),
            (((0,), (0,)), ((), ())),
            preferred_element_type=jnp.float32)                        # (Mp, dh)
        k_sum = jnp.sum(k_feat, axis=0, keepdims=True)                 # (1, Mp)
        denom = jnp.sum(q_feat * k_sum, axis=-1, keepdims=True) + 1e-8
        out_h = jnp.dot(q_feat.astype(jnp.bfloat16),
                        context.astype(jnp.bfloat16),
                        preferred_element_type=jnp.float32)            # (N, dh)
        out_h = out_h * pl.reciprocal(denom, approx=True)

        # Accumulate in f32 scratch at this head's lane offset; stored once,
        # so no per-head RMW of the (N, D) output block.
        oh_ref[:, h * dh:(h + 1) * dh] = out_h

    # Single fused output projection over all heads (deep contraction).
    attn = jnp.dot(oh_ref[...].astype(jnp.bfloat16), wo_ref[...],
                   preferred_element_type=jnp.float32)                 # (N, D)
    x1 = x + attn + bo_ref[...]

    # ------------------- conformer conv branch -------------------
    npad = pad_ref.shape[0]
    c = pad_ref.shape[1]
    ksz = wd_ref.shape[0]
    off = _round_up(ksz // 2, 8)          # sublane-aligned interior offset

    y2 = _layernorm(x1, cg_ref[...], cb_ref[...])
    y2_bf = y2.astype(jnp.bfloat16)

    # Pointwise conv (D -> 4D) + GLU, expressed as two D->2D matmuls so no
    # unaligned lane split of the 4D-wide intermediate is needed.
    h_out = jnp.dot(y2_bf, w1a_ref[...], preferred_element_type=jnp.float32) + b1a_ref[...]
    h_gate = jnp.dot(y2_bf, w1b_ref[...], preferred_element_type=jnp.float32) + b1b_ref[...]
    h2 = h_out * jax.nn.sigmoid(h_gate)                                # (N, C) f32

    # Zero only the halo rows (interior is fully overwritten every step).
    pad_ref[0:off, :] = jnp.zeros((off, c), jnp.float32)
    pad_ref[off + n:npad, :] = jnp.zeros((npad - off - n, c), jnp.float32)
    pad_ref[off:off + n, :] = h2                                       # aligned store

    # Depthwise conv (kernel K, "same" padding).  Each tap shift s = t + base is
    # decomposed as s = 8*a + r: one XLU roll per residue r (<= 8 rolls total)
    # followed by sublane-aligned static slices, f32 MAC on the VPU.
    padded = pad_ref[...]
    wd = wd_ref[...]                                                   # (K, C) f32
    base = off - ksz // 2
    acc = jnp.zeros((n, c), jnp.float32)
    for r in range(8):
        taps = [t for t in range(ksz) if (t + base) % 8 == r]
        if not taps:
            continue
        rolled = pltpu.roll(padded, shift=(npad - r) % npad, axis=0)   # rolled[m] = padded[m + r]
        for t in taps:
            a = (t + base) // 8
            acc = acc + rolled[a * 8:a * 8 + n, :] * wd[t:t + 1, :]
    h3 = acc + bd_ref[...]
    h3 = h3 * jax.nn.sigmoid(h3)                                       # SiLU / Swish

    # Pointwise conv (2D -> D) with fused residual.
    o_ref[0] = (x1
                + jnp.dot(h3.astype(jnp.bfloat16), w2_ref[...],
                          preferred_element_type=jnp.float32)
                + b2_ref[...]).astype(o_ref.dtype)


# ---------------------------------------------------------------------------
# Wrapper
# ---------------------------------------------------------------------------
def encoder_layer(x, p):
    b, n, d = x.shape
    heads, _, dh = p["wq"].shape
    inner = heads * dh
    mp = p["proj_t"].shape[-1]
    c = p["w2"].shape[0]                       # conv inner dim = 2*D
    ksz = p["wd"].shape[0]
    off = _round_up(ksz // 2, 8)
    pad_rows = _round_up(n + 2 * off, 8)

    def full_spec(a):
        nd = a.ndim
        return pl.BlockSpec(a.shape, lambda bi, _nd=nd: (0,) * _nd)

    # TODO(synk): if dim_model < 128 (demo D=32) the output stores are masked
    # partial-lane vst; production torchfcpe uses D=256 which is lane-dense.
    xspec = pl.BlockSpec((1, n, d), lambda bi: (bi, 0, 0))

    args = [x, p["norm_g"], p["norm_b"],
            p["wq"], p["bq"], p["wk"], p["bk"], p["wv"], p["bv"],
            p["proj_t"], p["wo"], p["bo"],
            p["cf_g"], p["cf_b"],
            p["w1a"], p["b1a"], p["w1b"], p["b1b"],
            p["wd"], p["bd"], p["w2"], p["b2"]]
    in_specs = [xspec] + [full_spec(a) for a in args[1:]]

    # Explicit VMEM budget: per-step working set + double-buffered x/out blocks,
    # with headroom, capped at the v7x 64 MiB physical ceiling.
    weight_bytes = sum(int(a.size) * a.dtype.itemsize for a in args[1:])
    act_bytes = n * (4 * mp + 3 * dh + 2 * d + 4 * c + inner) * 4 + pad_rows * c * 4
    est = int(2.0 * (weight_bytes + act_bytes + 4 * n * d * 4))
    vmem_limit = max(16 << 20, min(est, 64 << 20))

    return pl.pallas_call(
        partial(encoder_layer_kernel, m_valid=p["nb_features"]),
        out_shape=jax.ShapeDtypeStruct((b, n, d), x.dtype),
        grid=(b,),
        in_specs=in_specs,
        out_specs=xspec,
        scratch_shapes=[pltpu.VMEM((n, inner), jnp.float32),     # per-head attn outputs
                        pltpu.VMEM((pad_rows, c), jnp.float32)], # dwconv padded buffer
        compiler_params=pltpu.CompilerParams(
            dimension_semantics=("parallel",),
            vmem_limit_bytes=vmem_limit),
    )(*args)


def pcmer_forward(x, layer_params):
    for p in layer_params:
        x = encoder_layer(x, p)
    return x


# ---------------------------------------------------------------------------
# Deterministic parameter init (synthetic; shapes follow the nn.Module)
# ---------------------------------------------------------------------------
def gaussian_orthogonal_random_matrix(key, nb_rows, nb_cols):
    nb_full = nb_rows // nb_cols
    keys = jax.random.split(key, nb_full + 2)
    blocks = []
    for i in range(nb_full):
        g = jax.random.normal(keys[i], (nb_cols, nb_cols), jnp.float32)
        qm, _ = jnp.linalg.qr(g)
        blocks.append(qm.T)
    rem = nb_rows - nb_full * nb_cols
    if rem > 0:
        g = jax.random.normal(keys[nb_full], (nb_cols, nb_cols), jnp.float32)
        qm, _ = jnp.linalg.qr(g)
        blocks.append(qm.T[:rem])
    multiplier = jnp.linalg.norm(
        jax.random.normal(keys[nb_full + 1], (nb_rows, nb_cols), jnp.float32), axis=1)
    return multiplier[:, None] * jnp.concatenate(blocks, axis=0)   # (nb_rows, nb_cols)


def init_layer_params(key, d_model, heads, dim_head=64, kernel_size=31):
    inner = heads * dim_head
    conv_inner = 2 * d_model
    nb_features = int(dim_head * math.log(dim_head))      # 266 for dim_head=64
    mp = _round_up(nb_features, 128)                       # lane-aligned 384
    ks = jax.random.split(key, 16)

    def lin(k, fan_in, shape):
        bound = 1.0 / math.sqrt(fan_in)
        return jax.random.uniform(k, shape, jnp.float32, -bound, bound)

    p = {"nb_features": nb_features}
    # outer LayerNorm
    p["norm_g"] = jnp.ones((1, d_model), jnp.float32)
    p["norm_b"] = jnp.zeros((1, d_model), jnp.float32)

    # attention projections, pre-sliced per head: (H, D, dh) / (H, 1, dh).
    # Matmul weights are stored bf16 (MXU operands); biases stay f32.
    def head_w(k):
        w = lin(k, d_model, (d_model, inner))
        return w.reshape(d_model, heads, dim_head).transpose(1, 0, 2).astype(jnp.bfloat16)

    def head_b(k):
        bb = lin(k, d_model, (1, inner))
        return bb.reshape(1, heads, dim_head).transpose(1, 0, 2)

    p["wq"] = head_w(ks[0]); p["bq"] = head_b(ks[1])
    p["wk"] = head_w(ks[2]); p["bk"] = head_b(ks[3])
    p["wv"] = head_w(ks[4]); p["bv"] = head_b(ks[5])
    p["wo"] = lin(ks[6], inner, (inner, d_model)).astype(jnp.bfloat16)  # single fused Wo
    p["bo"] = lin(ks[7], inner, (1, d_model))

    # Performer random-feature projection, transposed (dh, M), zero-padded to Mp.
    proj = gaussian_orthogonal_random_matrix(ks[8], nb_features, dim_head)  # (M, dh)
    p["proj_t"] = jnp.pad(proj.T, ((0, 0), (0, mp - nb_features))).astype(jnp.bfloat16)

    # conformer conv module
    p["cf_g"] = jnp.ones((1, d_model), jnp.float32)
    p["cf_b"] = jnp.zeros((1, d_model), jnp.float32)
    w1 = lin(ks[9], d_model, (d_model, 2 * conv_inner))
    b1 = lin(ks[10], d_model, (1, 2 * conv_inner))
    p["w1a"] = w1[:, :conv_inner].astype(jnp.bfloat16)            # GLU out
    p["w1b"] = w1[:, conv_inner:].astype(jnp.bfloat16)            # GLU gate
    p["b1a"], p["b1b"] = b1[:, :conv_inner], b1[:, conv_inner:]
    p["wd"] = lin(ks[11], kernel_size, (kernel_size, conv_inner))  # depthwise (K, C), f32 (VPU MAC)
    p["bd"] = lin(ks[12], kernel_size, (1, conv_inner))
    p["w2"] = lin(ks[13], conv_inner, (conv_inner, d_model)).astype(jnp.bfloat16)
    p["b2"] = lin(ks[14], conv_inner, (1, d_model))
    return p


# ---------------------------------------------------------------------------
if __name__ == "__main__":
    # PCmer(num_layers=2, num_heads=2, dim_model=32, ...); SelfAttention uses
    # its default dim_head=64 (inner=128).  Small demo: batch=2, seq=8.
    NUM_LAYERS, NUM_HEADS, DIM_MODEL = 2, 2, 32
    B, N = 2, 8

    key = jax.random.PRNGKey(0)
    kx, kp = jax.random.split(key)
    phone = jax.random.normal(kx, (B, N, DIM_MODEL), jnp.float32)
    layer_keys = jax.random.split(kp, NUM_LAYERS)
    layers = [init_layer_params(k, DIM_MODEL, NUM_HEADS) for k in layer_keys]

    out = pcmer_forward(phone, layers)
    out = jax.block_until_ready(out)

    assert out.shape == (B, N, DIM_MODEL) and out.dtype == jnp.float32
    assert bool(jnp.all(jnp.isfinite(out)))
    print("KERNEL_OK")
</pallas_src>

<mosaic_0001>
module attributes {stable_mosaic.version = 11 : i64} {
  func.func @encoder_layer_kernel(%arg0: i32, %arg1: memref<1x8x32xf32, #tpu.memory_space<vmem>>, %arg2: memref<1x32xf32, #tpu.memory_space<vmem>>, %arg3: memref<1x32xf32, #tpu.memory_space<vmem>>, %arg4: memref<2x32x64xbf16, #tpu.memory_space<vmem>>, %arg5: memref<2x1x64xf32, #tpu.memory_space<vmem>>, %arg6: memref<2x32x64xbf16, #tpu.memory_space<vmem>>, %arg7: memref<2x1x64xf32, #tpu.memory_space<vmem>>, %arg8: memref<2x32x64xbf16, #tpu.memory_space<vmem>>, %arg9: memref<2x1x64xf32, #tpu.memory_space<vmem>>, %arg10: memref<64x384xbf16, #tpu.memory_space<vmem>>, %arg11: memref<128x32xbf16, #tpu.memory_space<vmem>>, %arg12: memref<1x32xf32, #tpu.memory_space<vmem>>, %arg13: memref<1x32xf32, #tpu.memory_space<vmem>>, %arg14: memref<1x32xf32, #tpu.memory_space<vmem>>, %arg15: memref<32x64xbf16, #tpu.memory_space<vmem>>, %arg16: memref<1x64xf32, #tpu.memory_space<vmem>>, %arg17: memref<32x64xbf16, #tpu.memory_space<vmem>>, %arg18: memref<1x64xf32, #tpu.memory_space<vmem>>, %arg19: memref<31x64xf32, #tpu.memory_space<vmem>>, %arg20: memref<1x64xf32, #tpu.memory_space<vmem>>, %arg21: memref<64x32xbf16, #tpu.memory_space<vmem>>, %arg22: memref<1x32xf32, #tpu.memory_space<vmem>>, %arg23: memref<1x8x32xf32, #tpu.memory_space<vmem>>, %arg24: memref<8x128xf32, #tpu.memory_space<vmem>>, %arg25: memref<40x64xf32, #tpu.memory_space<vmem>>) attributes {dimension_semantics = [#tpu.dimension_semantics<parallel>], iteration_bounds = array<i64: 2>, scalar_prefetch = 0 : i64, scratch_operands = 2 : i64, tpu.core_type = #tpu.core_type<tc>, window_params = [{transform_indices = @transform_0, window_bounds = array<i64: 1, 8, 32>}, {pipeline_mode = #tpu.pipeline_mode<synchronous>, transform_indices = @transform_1, window_bounds = array<i64: 1, 32>}, {pipeline_mode = #tpu.pipeline_mode<synchronous>, transform_indices = @transform_2, window_bounds = array<i64: 1, 32>}, {pipeline_mode = #tpu.pipeline_mode<synchronous>, transform_indices = @transform_3, window_bounds = array<i64: 2, 32, 64>}, {pipeline_mode = #tpu.pipeline_mode<synchronous>, transform_indices = @transform_4, window_bounds = array<i64: 2, 1, 64>}, {pipeline_mode = #tpu.pipeline_mode<synchronous>, transform_indices = @transform_5, window_bounds = array<i64: 2, 32, 64>}, {pipeline_mode = #tpu.pipeline_mode<synchronous>, transform_indices = @transform_6, window_bounds = array<i64: 2, 1, 64>}, {pipeline_mode = #tpu.pipeline_mode<synchronous>, transform_indices = @transform_7, window_bounds = array<i64: 2, 32, 64>}, {pipeline_mode = #tpu.pipeline_mode<synchronous>, transform_indices = @transform_8, window_bounds = array<i64: 2, 1, 64>}, {pipeline_mode = #tpu.pipeline_mode<synchronous>, transform_indices = @transform_9, window_bounds = array<i64: 64, 384>}, {pipeline_mode = #tpu.pipeline_mode<synchronous>, transform_indices = @transform_10, window_bounds = array<i64: 128, 32>}, {pipeline_mode = #tpu.pipeline_mode<synchronous>, transform_indices = @transform_11, window_bounds = array<i64: 1, 32>}, {pipeline_mode = #tpu.pipeline_mode<synchronous>, transform_indices = @transform_12, window_bounds = array<i64: 1, 32>}, {pipeline_mode = #tpu.pipeline_mode<synchronous>, transform_indices = @transform_13, window_bounds = array<i64: 1, 32>}, {pipeline_mode = #tpu.pipeline_mode<synchronous>, transform_indices = @transform_14, window_bounds = array<i64: 32, 64>}, {pipeline_mode = #tpu.pipeline_mode<synchronous>, transform_indices = @transform_15, window_bounds = array<i64: 1, 64>}, {pipeline_mode = #tpu.pipeline_mode<synchronous>, transform_indices = @transform_16, window_bounds = array<i64: 32, 64>}, {pipeline_mode = #tpu.pipeline_mode<synchronous>, transform_indices = @transform_17, window_bounds = array<i64: 1, 64>}, {pipeline_mode = #tpu.pipeline_mode<synchronous>, transform_indices = @transform_18, window_bounds = array<i64: 31, 64>}, {pipeline_mode = #tpu.pipeline_mode<synchronous>, transform_indices = @transform_19, window_bounds = array<i64: 1, 64>}, {pipeline_mode = #tpu.pipeline_mode<synchronous>, transform_indices = @transform_20, window_bounds = array<i64: 64, 32>}, {pipeline_mode = #tpu.pipeline_mode<synchronous>, transform_indices = @transform_21, window_bounds = array<i64: 1, 32>}, {transform_indices = @transform_22, window_bounds = array<i64: 1, 8, 32>}]} {
    %c0 = arith.constant 0 : index
    %c0_0 = arith.constant 0 : index
    %c0_1 = arith.constant 0 : index
    %0 = vector.load %arg1[%c0, %c0_0, %c0_1] : memref<1x8x32xf32, #tpu.memory_space<vmem>>, vector<1x8x32xf32>
    %1 = vector.shape_cast %0 : vector<1x8x32xf32> to vector<8x32xf32>
    %c0_2 = arith.constant 0 : index
    %c0_3 = arith.constant 0 : index
    %2 = vector.load %arg2[%c0_2, %c0_3] : memref<1x32xf32, #tpu.memory_space<vmem>>, vector<1x32xf32>
    %c0_4 = arith.constant 0 : index
    %c0_5 = arith.constant 0 : index
    %3 = vector.load %arg3[%c0_4, %c0_5] : memref<1x32xf32, #tpu.memory_space<vmem>>, vector<1x32xf32>
    %cst = arith.constant dense<0.000000e+00> : vector<8xf32>
    %4 = vector.multi_reduction <add>, %1, %cst [1] : vector<8x32xf32> to vector<8xf32>
    %5 = vector.shape_cast %4 : vector<8xf32> to vector<8x1xf32>
    %cst_6 = arith.constant 3.200000e+01 : f32
    %6 = vector.broadcast %cst_6 : f32 to vector<8x1xf32>
    %7 = arith.divf %5, %6 : vector<8x1xf32>
    %8 = vector.broadcast %7 : vector<8x1xf32> to vector<8x32xf32>
    %9 = arith.subf %1, %8 : vector<8x32xf32>
    %10 = arith.mulf %9, %9 : vector<8x32xf32>
    %cst_7 = arith.constant dense<0.000000e+00> : vector<8xf32>
    %11 = vector.multi_reduction <add>, %10, %cst_7 [1] : vector<8x32xf32> to vector<8xf32>
    %12 = vector.shape_cast %11 : vector<8xf32> to vector<8x1xf32>
    %cst_8 = arith.constant 3.200000e+01 : f32
    %13 = vector.broadcast %cst_8 : f32 to vector<8x1xf32>
    %14 = arith.divf %12, %13 : vector<8x1xf32>
    %cst_9 = arith.constant 9.99999974E-6 : f32
    %15 = vector.broadcast %cst_9 : f32 to vector<8x1xf32>
    %16 = arith.addf %14, %15 : vector<8x1xf32>
    %17 = math.rsqrt %16 : vector<8x1xf32>
    %18 = vector.broadcast %17 : vector<8x1xf32> to vector<8x32xf32>
    %19 = arith.mulf %9, %18 : vector<8x32xf32>
    %20 = vector.broadcast %2 : vector<1x32xf32> to vector<8x32xf32>
    %21 = arith.mulf %19, %20 : vector<8x32xf32>
    %22 = vector.broadcast %3 : vector<1x32xf32> to vector<8x32xf32>
    %23 = arith.addf %21, %22 : vector<8x32xf32>
    %24 = arith.truncf %23 : vector<8x32xf32> to vector<8x32xbf16>
    %c0_10 = arith.constant 0 : index
    %c0_11 = arith.constant 0 : index
    %25 = vector.load %arg10[%c0_10, %c0_11] : memref<64x384xbf16, #tpu.memory_space<vmem>>, vector<64x384xbf16>
    %26 = tpu.iota {dimensions = array<i32: 1>} : vector<1x384xi32>
    %c266_i32 = arith.constant 266 : i32
    %27 = vector.broadcast %c266_i32 : i32 to vector<1x384xi32>
    %28 = arith.cmpi slt, %26, %27 : vector<1x384xi32>
    %c0_12 = arith.constant 0 : index
    %c0_13 = arith.constant 0 : index
    %c0_14 = arith.constant 0 : index
    %29 = vector.load %arg4[%c0_12, %c0_13, %c0_14] : memref<2x32x64xbf16, #tpu.memory_space<vmem>>, vector<1x32x64xbf16>
    %30 = vector.shape_cast %29 : vector<1x32x64xbf16> to vector<32x64xbf16>
    %cst_15 = arith.constant dense<0.000000e+00> : vector<8x64xf32>
    %31 = tpu.matmul %24, %30, %cst_15 {dimension_numbers = #tpu.dot_dimension_numbers<[1], [0], [0], [1], [0, 0, 1, 1], [], []>} : vector<8x32xbf16>, vector<32x64xbf16>, vector<8x64xf32> -> vector<8x64xf32>
    %c0_16 = arith.constant 0 : index
    %c0_17 = arith.constant 0 : index
    %c0_18 = arith.constant 0 : index
    %32 = vector.load %arg5[%c0_16, %c0_17, %c0_18] : memref<2x1x64xf32, #tpu.memory_space<vmem>>, vector<1x1x64xf32>
    %33 = vector.shape_cast %32 : vector<1x1x64xf32> to vector<1x64xf32>
    %34 = vector.broadcast %33 : vector<1x64xf32> to vector<8x64xf32>
    %35 = arith.addf %31, %34 : vector<8x64xf32>
    %c0_19 = arith.constant 0 : index
    %c0_20 = arith.constant 0 : index
    %c0_21 = arith.constant 0 : index
    %36 = vector.load %arg6[%c0_19, %c0_20, %c0_21] : memref<2x32x64xbf16, #tpu.memory_space<vmem>>, vector<1x32x64xbf16>
    %37 = vector.shape_cast %36 : vector<1x32x64xbf16> to vector<32x64xbf16>
    %cst_22 = arith.constant dense<0.000000e+00> : vector<8x64xf32>
    %38 = tpu.matmul %24, %37, %cst_22 {dimension_numbers = #tpu.dot_dimension_numbers<[1], [0], [0], [1], [0, 0, 1, 1], [], []>} : vector<8x32xbf16>, vector<32x64xbf16>, vector<8x64xf32> -> vector<8x64xf32>
    %c0_23 = arith.constant 0 : index
    %c0_24 = arith.constant 0 : index
    %c0_25 = arith.constant 0 : index
    %39 = vector.load %arg7[%c0_23, %c0_24, %c0_25] : memref<2x1x64xf32, #tpu.memory_space<vmem>>, vector<1x1x64xf32>
    %40 = vector.shape_cast %39 : vector<1x1x64xf32> to vector<1x64xf32>
    %41 = vector.broadcast %40 : vector<1x64xf32> to vector<8x64xf32>
    %42 = arith.addf %38, %41 : vector<8x64xf32>
    %c0_26 = arith.constant 0 : index
    %c0_27 = arith.constant 0 : index
    %c0_28 = arith.constant 0 : index
    %43 = vector.load %arg8[%c0_26, %c0_27, %c0_28] : memref<2x32x64xbf16, #tpu.memory_space<vmem>>, vector<1x32x64xbf16>
    %44 = vector.shape_cast %43 : vector<1x32x64xbf16> to vector<32x64xbf16>
    %cst_29 = arith.constant dense<0.000000e+00> : vector<8x64xf32>
    %45 = tpu.matmul %24, %44, %cst_29 {dimension_numbers = #tpu.dot_dimension_numbers<[1], [0], [0], [1], [0, 0, 1, 1], [], []>} : vector<8x32xbf16>, vector<32x64xbf16>, vector<8x64xf32> -> vector<8x64xf32>
    %c0_30 = arith.constant 0 : index
    %c0_31 = arith.constant 0 : index
    %c0_32 = arith.constant 0 : index
    %46 = vector.load %arg9[%c0_30, %c0_31, %c0_32] : memref<2x1x64xf32, #tpu.memory_space<vmem>>, vector<1x1x64xf32>
    %47 = vector.shape_cast %46 : vector<1x1x64xf32> to vector<1x64xf32>
    %48 = vector.broadcast %47 : vector<1x64xf32> to vector<8x64xf32>
    %49 = arith.addf %45, %48 : vector<8x64xf32>
    %cst_33 = arith.constant 0.353553385 : f32
    %50 = vector.broadcast %cst_33 : f32 to vector<8x64xf32>
    %51 = arith.mulf %35, %50 : vector<8x64xf32>
    %52 = arith.truncf %51 : vector<8x64xf32> to vector<8x64xbf16>
    %cst_34 = arith.constant dense<0.000000e+00> : vector<8x384xf32>
    %53 = tpu.matmul %52, %25, %cst_34 {dimension_numbers = #tpu.dot_dimension_numbers<[1], [0], [0], [1], [0, 0, 1, 1], [], []>} : vector<8x64xbf16>, vector<64x384xbf16>, vector<8x384xf32> -> vector<8x384xf32>
    %cst_35 = arith.constant 0.353553385 : f32
    %54 = vector.broadcast %cst_35 : f32 to vector<8x64xf32>
    %55 = arith.mulf %42, %54 : vector<8x64xf32>
    %56 = arith.truncf %55 : vector<8x64xf32> to vector<8x64xbf16>
    %cst_36 = arith.constant dense<0.000000e+00> : vector<8x384xf32>
    %57 = tpu.matmul %56, %25, %cst_36 {dimension_numbers = #tpu.dot_dimension_numbers<[1], [0], [0], [1], [0, 0, 1, 1], [], []>} : vector<8x64xbf16>, vector<64x384xbf16>, vector<8x384xf32> -> vector<8x384xf32>
    %58 = arith.mulf %35, %35 : vector<8x64xf32>
    %cst_37 = arith.constant dense<0.000000e+00> : vector<8xf32>
    %59 = vector.multi_reduction <add>, %58, %cst_37 [1] : vector<8x64xf32> to vector<8xf32>
    %60 = vector.shape_cast %59 : vector<8xf32> to vector<8x1xf32>
    %cst_38 = arith.constant 6.250000e-02 : f32
    %61 = vector.broadcast %cst_38 : f32 to vector<8x1xf32>
    %62 = arith.mulf %60, %61 : vector<8x1xf32>
    %63 = arith.mulf %42, %42 : vector<8x64xf32>
    %cst_39 = arith.constant dense<0.000000e+00> : vector<8xf32>
    %64 = vector.multi_reduction <add>, %63, %cst_39 [1] : vector<8x64xf32> to vector<8xf32>
    %65 = vector.shape_cast %64 : vector<8xf32> to vector<8x1xf32>
    %cst_40 = arith.constant 6.250000e-02 : f32
    %66 = vector.broadcast %cst_40 : f32 to vector<8x1xf32>
    %67 = arith.mulf %65, %66 : vector<8x1xf32>
    %cst_41 = arith.constant -1.000000e+30 : f32
    %68 = vector.shape_cast %28 : vector<1x384xi1> to vector<1x384xi1>
    %69 = vector.broadcast %68 : vector<1x384xi1> to vector<8x384xi1>
    %70 = vector.broadcast %cst_41 : f32 to vector<8x384xf32>
    %71 = arith.select %69, %53, %70 : vector<8x384xi1>, vector<8x384xf32>
    %cst_42 = arith.constant dense<0xFF800000> : vector<8xf32>
    %72 = vector.multi_reduction <maximumf>, %71, %cst_42 [1] : vector<8x384xf32> to vector<8xf32>
    %73 = vector.shape_cast %72 : vector<8xf32> to vector<8x1xf32>
    %74 = vector.broadcast %62 : vector<8x1xf32> to vector<8x384xf32>
    %75 = arith.subf %53, %74 : vector<8x384xf32>
    %76 = vector.broadcast %73 : vector<8x1xf32> to vector<8x384xf32>
    %77 = arith.subf %75, %76 : vector<8x384xf32>
    %78 = math.exp %77 : vector<8x384xf32>
    %cst_43 = arith.constant 9.99999974E-5 : f32
    %79 = vector.broadcast %cst_43 : f32 to vector<8x384xf32>
    %80 = arith.addf %78, %79 : vector<8x384xf32>
    %cst_44 = arith.constant 0.0613139346 : f32
    %81 = vector.broadcast %cst_44 : f32 to vector<8x384xf32>
    %82 = arith.mulf %81, %80 : vector<8x384xf32>
    %cst_45 = arith.constant 0.000000e+00 : f32
    %83 = vector.shape_cast %28 : vector<1x384xi1> to vector<1x384xi1>
    %84 = vector.broadcast %83 : vector<1x384xi1> to vector<8x384xi1>
    %85 = vector.broadcast %cst_45 : f32 to vector<8x384xf32>
    %86 = arith.select %84, %82, %85 : vector<8x384xi1>, vector<8x384xf32>
    %87 = vector.broadcast %67 : vector<8x1xf32> to vector<8x384xf32>
    %88 = arith.subf %57, %87 : vector<8x384xf32>
    %cst_46 = arith.constant 9.99999974E-5 : f32
    %89 = vector.broadcast %cst_46 : f32 to vector<8x384xf32>
    %90 = arith.addf %88, %89 : vector<8x384xf32>
    %91 = math.exp %90 : vector<8x384xf32>
    %cst_47 = arith.constant 0.0613139346 : f32
    %92 = vector.broadcast %cst_47 : f32 to vector<8x384xf32>
    %93 = arith.mulf %92, %91 : vector<8x384xf32>
    %cst_48 = arith.constant 0.000000e+00 : f32
    %94 = vector.shape_cast %28 : vector<1x384xi1> to vector<1x384xi1>
    %95 = vector.broadcast %94 : vector<1x384xi1> to vector<8x384xi1>
    %96 = vector.broadcast %cst_48 : f32 to vector<8x384xf32>
    %97 = arith.select %95, %93, %96 : vector<8x384xi1>, vector<8x384xf32>
    %98 = arith.truncf %97 : vector<8x384xf32> to vector<8x384xbf16>
    %99 = arith.truncf %49 : vector<8x64xf32> to vector<8x64xbf16>
    %cst_49 = arith.constant dense<0.000000e+00> : vector<384x64xf32>
    %100 = tpu.matmul %98, %99, %cst_49 {dimension_numbers = #tpu.dot_dimension_numbers<[0], [0], [1], [1], [0, 1, 1, 1], [], []>} : vector<8x384xbf16>, vector<8x64xbf16>, vector<384x64xf32> -> vector<384x64xf32>
    %cst_50 = arith.constant dense<0.000000e+00> : vector<384xf32>
    %101 = vector.multi_reduction <add>, %97, %cst_50 [0] : vector<8x384xf32> to vector<384xf32>
    %102 = vector.shape_cast %101 : vector<384xf32> to vector<1x384xf32>
    %103 = vector.broadcast %102 : vector<1x384xf32> to vector<8x384xf32>
    %104 = arith.mulf %86, %103 : vector<8x384xf32>
    %cst_51 = arith.constant dense<0.000000e+00> : vector<8xf32>
    %105 = vector.multi_reduction <add>, %104, %cst_51 [1] : vector<8x384xf32> to vector<8xf32>
    %106 = vector.shape_cast %105 : vector<8xf32> to vector<8x1xf32>
    %cst_52 = arith.constant 9.99999993E-9 : f32
    %107 = vector.broadcast %cst_52 : f32 to vector<8x1xf32>
    %108 = arith.addf %106, %107 : vector<8x1xf32>
    %109 = arith.truncf %86 : vector<8x384xf32> to vector<8x384xbf16>
    %110 = arith.truncf %100 : vector<384x64xf32> to vector<384x64xbf16>
    %cst_53 = arith.constant dense<0.000000e+00> : vector<8x64xf32>
    %111 = tpu.matmul %109, %110, %cst_53 {dimension_numbers = #tpu.dot_dimension_numbers<[1], [0], [0], [1], [0, 0, 1, 1], [], []>} : vector<8x384xbf16>, vector<384x64xbf16>, vector<8x64xf32> -> vector<8x64xf32>
    %112 = tpu.reciprocal %108 {approx = true} : vector<8x1xf32> -> vector<8x1xf32>
    %113 = vector.broadcast %112 : vector<8x1xf32> to vector<8x64xf32>
    %114 = arith.mulf %111, %113 : vector<8x64xf32>
    %c0_54 = arith.constant 0 : index
    %c0_55 = arith.constant 0 : index
    %115 = vector.load %arg24[%c0_54, %c0_55] : memref<8x128xf32, #tpu.memory_space<vmem>>, vector<8x64xf32>
    tpu.vector_store %arg24[%c0_54, %c0_55], %114 {strides = array<i32>} : memref<8x128xf32, #tpu.memory_space<vmem>>, vector<8x64xf32>,
    %c1 = arith.constant 1 : index
    %c0_56 = arith.constant 0 : index
    %c0_57 = arith.constant 0 : index
    %116 = vector.load %arg4[%c1, %c0_56, %c0_57] : memref<2x32x64xbf16, #tpu.memory_space<vmem>>, vector<1x32x64xbf16>
    %117 = vector.shape_cast %116 : vector<1x32x64xbf16> to vector<32x64xbf16>
    %cst_58 = arith.constant dense<0.000000e+00> : vector<8x64xf32>
    %118 = tpu.matmul %24, %117, %cst_58 {dimension_numbers = #tpu.dot_dimension_numbers<[1], [0], [0], [1], [0, 0, 1, 1], [], []>} : vector<8x32xbf16>, vector<32x64xbf16>, vector<8x64xf32> -> vector<8x64xf32>
    %c1_59 = arith.constant 1 : index
    %c0_60 = arith.constant 0 : index
    %c0_61 = arith.constant 0 : index
    %119 = vector.load %arg5[%c1_59, %c0_60, %c0_61] : memref<2x1x64xf32, #tpu.memory_space<vmem>>, vector<1x1x64xf32>
    %120 = vector.shape_cast %119 : vector<1x1x64xf32> to vector<1x64xf32>
    %121 = vector.broadcast %120 : vector<1x64xf32> to vector<8x64xf32>
    %122 = arith.addf %118, %121 : vector<8x64xf32>
    %c1_62 = arith.constant 1 : index
    %c0_63 = arith.constant 0 : index
    %c0_64 = arith.constant 0 : index
    %123 = vector.load %arg6[%c1_62, %c0_63, %c0_64] : memref<2x32x64xbf16, #tpu.memory_space<vmem>>, vector<1x32x64xbf16>
    %124 = vector.shape_cast %123 : vector<1x32x64xbf16> to vector<32x64xbf16>
    %cst_65 = arith.constant dense<0.000000e+00> : vector<8x64xf32>
    %125 = tpu.matmul %24, %124, %cst_65 {dimension_numbers = #tpu.dot_dimension_numbers<[1], [0], [0], [1], [0, 0, 1, 1], [], []>} : vector<8x32xbf16>, vector<32x64xbf16>, vector<8x64xf32> -> vector<8x64xf32>
    %c1_66 = arith.constant 1 : index
    %c0_67 = arith.constant 0 : index
    %c0_68 = arith.constant 0 : index
    %126 = vector.load %arg7[%c1_66, %c0_67, %c0_68] : memref<2x1x64xf32, #tpu.memory_space<vmem>>, vector<1x1x64xf32>
    %127 = vector.shape_cast %126 : vector<1x1x64xf32> to vector<1x64xf32>
    %128 = vector.broadcast %127 : vector<1x64xf32> to vector<8x64xf32>
    %129 = arith.addf %125, %128 : vector<8x64xf32>
    %c1_69 = arith.constant 1 : index
    %c0_70 = arith.constant 0 : index
    %c0_71 = arith.constant 0 : index
    %130 = vector.load %arg8[%c1_69, %c0_70, %c0_71] : memref<2x32x64xbf16, #tpu.memory_space<vmem>>, vector<1x32x64xbf16>
    %131 = vector.shape_cast %130 : vector<1x32x64xbf16> to vector<32x64xbf16>
    %cst_72 = arith.constant dense<0.000000e+00> : vector<8x64xf32>
    %132 = tpu.matmul %24, %131, %cst_72 {dimension_numbers = #tpu.dot_dimension_numbers<[1], [0], [0], [1], [0, 0, 1, 1], [], []>} : vector<8x32xbf16>, vector<32x64xbf16>, vector<8x64xf32> -> vector<8x64xf32>
    %c1_73 = arith.constant 1 : index
    %c0_74 = arith.constant 0 : index
    %c0_75 = arith.constant 0 : index
    %133 = vector.load %arg9[%c1_73, %c0_74, %c0_75] : memref<2x1x64xf32, #tpu.memory_space<vmem>>, vector<1x1x64xf32>
    %134 = vector.shape_cast %133 : vector<1x1x64xf32> to vector<1x64xf32>
    %135 = vector.broadcast %134 : vector<1x64xf32> to vector<8x64xf32>
    %136 = arith.addf %132, %135 : vector<8x64xf32>
    %cst_76 = arith.constant 0.353553385 : f32
    %137 = vector.broadcast %cst_76 : f32 to vector<8x64xf32>
    %138 = arith.mulf %122, %137 : vector<8x64xf32>
    %139 = arith.truncf %138 : vector<8x64xf32> to vector<8x64xbf16>
    %cst_77 = arith.constant dense<0.000000e+00> : vector<8x384xf32>
    %140 = tpu.matmul %139, %25, %cst_77 {dimension_numbers = #tpu.dot_dimension_numbers<[1], [0], [0], [1], [0, 0, 1, 1], [], []>} : vector<8x64xbf16>, vector<64x384xbf16>, vector<8x384xf32> -> vector<8x384xf32>
    %cst_78 = arith.constant 0.353553385 : f32
    %141 = vector.broadcast %cst_78 : f32 to vector<8x64xf32>
    %142 = arith.mulf %129, %141 : vector<8x64xf32>
    %143 = arith.truncf %142 : vector<8x64xf32> to vector<8x64xbf16>
    %cst_79 = arith.constant dense<0.000000e+00> : vector<8x384xf32>
    %144 = tpu.matmul %143, %25, %cst_79 {dimension_numbers = #tpu.dot_dimension_numbers<[1], [0], [0], [1], [0, 0, 1, 1], [], []>} : vector<8x64xbf16>, vector<64x384xbf16>, vector<8x384xf32> -> vector<8x384xf32>
    %145 = arith.mulf %122, %122 : vector<8x64xf32>
    %cst_80 = arith.constant dense<0.000000e+00> : vector<8xf32>
    %146 = vector.multi_reduction <add>, %145, %cst_80 [1] : vector<8x64xf32> to vector<8xf32>
    %147 = vector.shape_cast %146 : vector<8xf32> to vector<8x1xf32>
    %cst_81 = arith.constant 6.250000e-02 : f32
    %148 = vector.broadcast %cst_81 : f32 to vector<8x1xf32>
    %149 = arith.mulf %147, %148 : vector<8x1xf32>
    %150 = arith.mulf %129, %129 : vector<8x64xf32>
    %cst_82 = arith.constant dense<0.000000e+00> : vector<8xf32>
    %151 = vector.multi_reduction <add>, %150, %cst_82 [1] : vector<8x64xf32> to vector<8xf32>
    %152 = vector.shape_cast %151 : vector<8xf32> to vector<8x1xf32>
    %cst_83 = arith.constant 6.250000e-02 : f32
    %153 = vector.broadcast %cst_83 : f32 to vector<8x1xf32>
    %154 = arith.mulf %152, %153 : vector<8x1xf32>
    %cst_84 = arith.constant -1.000000e+30 : f32
    %155 = vector.shape_cast %28 : vector<1x384xi1> to vector<1x384xi1>
    %156 = vector.broadcast %155 : vector<1x384xi1> to vector<8x384xi1>
    %157 = vector.broadcast %cst_84 : f32 to vector<8x384xf32>
    %158 = arith.select %156, %140, %157 : vector<8x384xi1>, vector<8x384xf32>
    %cst_85 = arith.constant dense<0xFF800000> : vector<8xf32>
    %159 = vector.multi_reduction <maximumf>, %158, %cst_85 [1] : vector<8x384xf32> to vector<8xf32>
    %160 = vector.shape_cast %159 : vector<8xf32> to vector<8x1xf32>
    %161 = vector.broadcast %149 : vector<8x1xf32> to vector<8x384xf32>
    %162 = arith.subf %140, %161 : vector<8x384xf32>
    %163 = vector.broadcast %160 : vector<8x1xf32> to vector<8x384xf32>
    %164 = arith.subf %162, %163 : vector<8x384xf32>
    %165 = math.exp %164 : vector<8x384xf32>
    %cst_86 = arith.constant 9.99999974E-5 : f32
    %166 = vector.broadcast %cst_86 : f32 to vector<8x384xf32>
    %167 = arith.addf %165, %166 : vector<8x384xf32>
    %cst_87 = arith.constant 0.0613139346 : f32
    %168 = vector.broadcast %cst_87 : f32 to vector<8x384xf32>
    %169 = arith.mulf %168, %167 : vector<8x384xf32>
    %cst_88 = arith.constant 0.000000e+00 : f32
    %170 = vector.shape_cast %28 : vector<1x384xi1> to vector<1x384xi1>
    %171 = vector.broadcast %170 : vector<1x384xi1> to vector<8x384xi1>
    %172 = vector.broadcast %cst_88 : f32 to vector<8x384xf32>
    %173 = arith.select %171, %169, %172 : vector<8x384xi1>, vector<8x384xf32>
    %174 = vector.broadcast %154 : vector<8x1xf32> to vector<8x384xf32>
    %175 = arith.subf %144, %174 : vector<8x384xf32>
    %cst_89 = arith.constant 9.99999974E-5 : f32
    %176 = vector.broadcast %cst_89 : f32 to vector<8x384xf32>
    %177 = arith.addf %175, %176 : vector<8x384xf32>
    %178 = math.exp %177 : vector<8x384xf32>
    %cst_90 = arith.constant 0.0613139346 : f32
    %179 = vector.broadcast %cst_90 : f32 to vector<8x384xf32>
    %180 = arith.mulf %179, %178 : vector<8x384xf32>
    %cst_91 = arith.constant 0.000000e+00 : f32
    %181 = vector.shape_cast %28 : vector<1x384xi1> to vector<1x384xi1>
    %182 = vector.broadcast %181 : vector<1x384xi1> to vector<8x384xi1>
    %183 = vector.broadcast %cst_91 : f32 to vector<8x384xf32>
    %184 = arith.select %182, %180, %183 : vector<8x384xi1>, vector<8x384xf32>
    %185 = arith.truncf %184 : vector<8x384xf32> to vector<8x384xbf16>
    %186 = arith.truncf %136 : vector<8x64xf32> to vector<8x64xbf16>
    %cst_92 = arith.constant dense<0.000000e+00> : vector<384x64xf32>
    %187 = tpu.matmul %185, %186, %cst_92 {dimension_numbers = #tpu.dot_dimension_numbers<[0], [0], [1], [1], [0, 1, 1, 1], [], []>} : vector<8x384xbf16>, vector<8x64xbf16>, vector<384x64xf32> -> vector<384x64xf32>
    %cst_93 = arith.constant dense<0.000000e+00> : vector<384xf32>
    %188 = vector.multi_reduction <add>, %184, %cst_93 [0] : vector<8x384xf32> to vector<384xf32>
    %189 = vector.shape_cast %188 : vector<384xf32> to vector<1x384xf32>
    %190 = vector.broadcast %189 : vector<1x384xf32> to vector<8x384xf32>
    %191 = arith.mulf %173, %190 : vector<8x384xf32>
    %cst_94 = arith.constant dense<0.000000e+00> : vector<8xf32>
    %192 = vector.multi_reduction <add>, %191, %cst_94 [1] : vector<8x384xf32> to vector<8xf32>
    %193 = vector.shape_cast %192 : vector<8xf32> to vector<8x1xf32>
    %cst_95 = arith.constant 9.99999993E-9 : f32
    %194 = vector.broadcast %cst_95 : f32 to vector<8x1xf32>
    %195 = arith.addf %193, %194 : vector<8x1xf32>
    %196 = arith.truncf %173 : vector<8x384xf32> to vector<8x384xbf16>
    %197 = arith.truncf %187 : vector<384x64xf32> to vector<384x64xbf16>
    %cst_96 = arith.constant dense<0.000000e+00> : vector<8x64xf32>
    %198 = tpu.matmul %196, %197, %cst_96 {dimension_numbers = #tpu.dot_dimension_numbers<[1], [0], [0], [1], [0, 0, 1, 1], [], []>} : vector<8x384xbf16>, vector<384x64xbf16>, vector<8x64xf32> -> vector<8x64xf32>
    %199 = tpu.reciprocal %195 {approx = true} : vector<8x1xf32> -> vector<8x1xf32>
    %200 = vector.broadcast %199 : vector<8x1xf32> to vector<8x64xf32>
    %201 = arith.mulf %198, %200 : vector<8x64xf32>
    %c0_97 = arith.constant 0 : index
    %c64 = arith.constant 64 : index
    %202 = vector.load %arg24[%c0_97, %c64] : memref<8x128xf32, #tpu.memory_space<vmem>>, vector<8x64xf32>
    tpu.vector_store %arg24[%c0_97, %c64], %201 {strides = array<i32>} : memref<8x128xf32, #tpu.memory_space<vmem>>, vector<8x64xf32>,
    %c0_98 = arith.constant 0 : index
    %c0_99 = arith.constant 0 : index
    %203 = vector.load %arg24[%c0_98, %c0_99] : memref<8x128xf32, #tpu.memory_space<vmem>>, vector<8x128xf32>
    %204 = arith.truncf %203 : vector<8x128xf32> to vector<8x128xbf16>
    %c0_100 = arith.constant 0 : index
    %c0_101 = arith.constant 0 : index
    %205 = vector.load %arg11[%c0_100, %c0_101] : memref<128x32xbf16, #tpu.memory_space<vmem>>, vector<128x32xbf16>
    %cst_102 = arith.constant dense<0.000000e+00> : vector<8x32xf32>
    %206 = tpu.matmul %204, %205, %cst_102 {dimension_numbers = #tpu.dot_dimension_numbers<[1], [0], [0], [1], [0, 0, 1, 1], [], []>} : vector<8x128xbf16>, vector<128x32xbf16>, vector<8x32xf32> -> vector<8x32xf32>
    %207 = arith.addf %1, %206 : vector<8x32xf32>
    %c0_103 = arith.constant 0 : index
    %c0_104 = arith.constant 0 : index
    %208 = vector.load %arg12[%c0_103, %c0_104] : memref<1x32xf32, #tpu.memory_space<vmem>>, vector<1x32xf32>
    %209 = vector.broadcast %208 : vector<1x32xf32> to vector<8x32xf32>
    %210 = arith.addf %207, %209 : vector<8x32xf32>
    %c0_105 = arith.constant 0 : index
    %c0_106 = arith.constant 0 : index
    %211 = vector.load %arg13[%c0_105, %c0_106] : memref<1x32xf32, #tpu.memory_space<vmem>>, vector<1x32xf32>
    %c0_107 = arith.constant 0 : index
    %c0_108 = arith.constant 0 : index
    %212 = vector.load %arg14[%c0_107, %c0_108] : memref<1x32xf32, #tpu.memory_space<vmem>>, vector<1x32xf32>
    %cst_109 = arith.constant dense<0.000000e+00> : vector<8xf32>
    %213 = vector.multi_reduction <add>, %210, %cst_109 [1] : vector<8x32xf32> to vector<8xf32>
    %214 = vector.shape_cast %213 : vector<8xf32> to vector<8x1xf32>
    %cst_110 = arith.constant 3.200000e+01 : f32
    %215 = vector.broadcast %cst_110 : f32 to vector<8x1xf32>
    %216 = arith.divf %214, %215 : vector<8x1xf32>
    %217 = vector.broadcast %216 : vector<8x1xf32> to vector<8x32xf32>
    %218 = arith.subf %210, %217 : vector<8x32xf32>
    %219 = arith.mulf %218, %218 : vector<8x32xf32>
    %cst_111 = arith.constant dense<0.000000e+00> : vector<8xf32>
    %220 = vector.multi_reduction <add>, %219, %cst_111 [1] : vector<8x32xf32> to vector<8xf32>
    %221 = vector.shape_cast %220 : vector<8xf32> to vector<8x1xf32>
    %cst_112 = arith.constant 3.200000e+01 : f32
    %222 = vector.broadcast %cst_112 : f32 to vector<8x1xf32>
    %223 = arith.divf %221, %222 : vector<8x1xf32>
    %cst_113 = arith.constant 9.99999974E-6 : f32
    %224 = vector.broadcast %cst_113 : f32 to vector<8x1xf32>
    %225 = arith.addf %223, %224 : vector<8x1xf32>
    %226 = math.rsqrt %225 : vector<8x1xf32>
    %227 = vector.broadcast %226 : vector<8x1xf32> to vector<8x32xf32>
    %228 = arith.mulf %218, %227 : vector<8x32xf32>
    %229 = vector.broadcast %211 : vector<1x32xf32> to vector<8x32xf32>
    %230 = arith.mulf %228, %229 : vector<8x32xf32>
    %231 = vector.broadcast %212 : vector<1x32xf32> to vector<8x32xf32>
    %232 = arith.addf %230, %231 : vector<8x32xf32>
    %233 = arith.truncf %232 : vector<8x32xf32> to vector<8x32xbf16>
    %c0_114 = arith.constant 0 : index
    %c0_115 = arith.constant 0 : index
    %234 = vector.load %arg15[%c0_114, %c0_115] : memref<32x64xbf16, #tpu.memory_space<vmem>>, vector<32x64xbf16>
    %cst_116 = arith.constant dense<0.000000e+00> : vector<8x64xf32>
    %235 = tpu.matmul %233, %234, %cst_116 {dimension_numbers = #tpu.dot_dimension_numbers<[1], [0], [0], [1], [0, 0, 1, 1], [], []>} : vector<8x32xbf16>, vector<32x64xbf16>, vector<8x64xf32> -> vector<8x64xf32>
    %c0_117 = arith.constant 0 : index
    %c0_118 = arith.constant 0 : index
    %236 = vector.load %arg16[%c0_117, %c0_118] : memref<1x64xf32, #tpu.memory_space<vmem>>, vector<1x64xf32>
    %237 = vector.broadcast %236 : vector<1x64xf32> to vector<8x64xf32>
    %238 = arith.addf %235, %237 : vector<8x64xf32>
    %c0_119 = arith.constant 0 : index
    %c0_120 = arith.constant 0 : index
    %239 = vector.load %arg17[%c0_119, %c0_120] : memref<32x64xbf16, #tpu.memory_space<vmem>>, vector<32x64xbf16>
    %cst_121 = arith.constant dense<0.000000e+00> : vector<8x64xf32>
    %240 = tpu.matmul %233, %239, %cst_121 {dimension_numbers = #tpu.dot_dimension_numbers<[1], [0], [0], [1], [0, 0, 1, 1], [], []>} : vector<8x32xbf16>, vector<32x64xbf16>, vector<8x64xf32> -> vector<8x64xf32>
    %c0_122 = arith.constant 0 : index
    %c0_123 = arith.constant 0 : index
    %241 = vector.load %arg18[%c0_122, %c0_123] : memref<1x64xf32, #tpu.memory_space<vmem>>, vector<1x64xf32>
    %242 = vector.broadcast %241 : vector<1x64xf32> to vector<8x64xf32>
    %243 = arith.addf %240, %242 : vector<8x64xf32>
    %244 = arith.negf %243 : vector<8x64xf32>
    %245 = math.exp %244 : vector<8x64xf32>
    %cst_124 = arith.constant 1.000000e+00 : f32
    %246 = vector.broadcast %cst_124 : f32 to vector<8x64xf32>
    %247 = arith.addf %246, %245 : vector<8x64xf32>
    %248 = arith.divf %246, %247 : vector<8x64xf32>
    %249 = arith.mulf %238, %248 : vector<8x64xf32>
    %cst_125 = arith.constant 0.000000e+00 : f32
    %250 = vector.broadcast %cst_125 : f32 to vector<16x64xf32>
    %c0_126 = arith.constant 0 : index
    %c0_127 = arith.constant 0 : index
    %251 = vector.load %arg25[%c0_126, %c0_127] : memref<40x64xf32, #tpu.memory_space<vmem>>, vector<16x64xf32>
    tpu.vector_store %arg25[%c0_126, %c0_127], %250 {strides = array<i32>} : memref<40x64xf32, #tpu.memory_space<vmem>>, vector<16x64xf32>,
    %cst_128 = arith.constant 0.000000e+00 : f32
    %252 = vector.broadcast %cst_128 : f32 to vector<16x64xf32>
    %c24 = arith.constant 24 : index
    %c0_129 = arith.constant 0 : index
    %253 = vector.load %arg25[%c24, %c0_129] : memref<40x64xf32, #tpu.memory_space<vmem>>, vector<16x64xf32>
    tpu.vector_store %arg25[%c24, %c0_129], %252 {strides = array<i32>} : memref<40x64xf32, #tpu.memory_space<vmem>>, vector<16x64xf32>,
    %c16 = arith.constant 16 : index
    %c0_130 = arith.constant 0 : index
    %254 = vector.load %arg25[%c16, %c0_130] : memref<40x64xf32, #tpu.memory_space<vmem>>, vector<8x64xf32>
    tpu.vector_store %arg25[%c16, %c0_130], %249 {strides = array<i32>} : memref<40x64xf32, #tpu.memory_space<vmem>>, vector<8x64xf32>,
    %c0_131 = arith.constant 0 : index
    %c0_132 = arith.constant 0 : index
    %255 = vector.load %arg25[%c0_131, %c0_132] : memref<40x64xf32, #tpu.memory_space<vmem>>, vector<40x64xf32>
    %c0_133 = arith.constant 0 : index
    %c0_134 = arith.constant 0 : index
    %256 = vector.load %arg19[%c0_133, %c0_134] : memref<31x64xf32, #tpu.memory_space<vmem>>, vector<31x64xf32>
    %cst_135 = arith.constant 0.000000e+00 : f32
    %257 = vector.broadcast %cst_135 : f32 to vector<8x64xf32>
    %c0_i32 = arith.constant 0 : i32
    %258 = tpu.dynamic_rotate %255 by %c0_i32 dim 0 : vector<40x64xf32>, i32 -> vector<40x64xf32>
    %259 = vector.extract_strided_slice %258 {offsets = [8, 0], sizes = [8, 64], strides = [1, 1]} : vector<40x64xf32> to vector<8x64xf32>
    %260 = vector.extract_strided_slice %256 {offsets = [7, 0], sizes = [1, 64], strides = [1, 1]} : vector<31x64xf32> to vector<1x64xf32>
    %261 = vector.broadcast %260 : vector<1x64xf32> to vector<8x64xf32>
    %262 = arith.mulf %259, %261 : vector<8x64xf32>
    %263 = arith.addf %257, %262 : vector<8x64xf32>
    %264 = vector.extract_strided_slice %258 {offsets = [16, 0], sizes = [8, 64], strides = [1, 1]} : vector<40x64xf32> to vector<8x64xf32>
    %265 = vector.extract_strided_slice %256 {offsets = [15, 0], sizes = [1, 64], strides = [1, 1]} : vector<31x64xf32> to vector<1x64xf32>
    %266 = vector.broadcast %265 : vector<1x64xf32> to vector<8x64xf32>
    %267 = arith.mulf %264, %266 : vector<8x64xf32>
    %268 = arith.addf %263, %267 : vector<8x64xf32>
    %269 = vector.extract_strided_slice %258 {offsets = [24, 0], sizes = [8, 64], strides = [1, 1]} : vector<40x64xf32> to vector<8x64xf32>
    %270 = vector.extract_strided_slice %256 {offsets = [23, 0], sizes = [1, 64], strides = [1, 1]} : vector<31x64xf32> to vector<1x64xf32>
    %271 = vector.broadcast %270 : vector<1x64xf32> to vector<8x64xf32>
    %272 = arith.mulf %269, %271 : vector<8x64xf32>
    %273 = arith.addf %268, %272 : vector<8x64xf32>
    %c39_i32 = arith.constant 39 : i32
    %274 = tpu.dynamic_rotate %255 by %c39_i32 dim 0 : vector<40x64xf32>, i32 -> vector<40x64xf32>
    %275 = vector.extract_strided_slice %274 {offsets = [0, 0], sizes = [8, 64], strides = [1, 1]} : vector<40x64xf32> to vector<8x64xf32>
    %276 = vector.extract_strided_slice %256 {offsets = [0, 0], sizes = [1, 64], strides = [1, 1]} : vector<31x64xf32> to vector<1x64xf32>
    %277 = vector.broadcast %276 : vector<1x64xf32> to vector<8x64xf32>
    %278 = arith.mulf %275, %277 : vector<8x64xf32>
    %279 = arith.addf %273, %278 : vector<8x64xf32>
    %280 = vector.extract_strided_slice %274 {offsets = [8, 0], sizes = [8, 64], strides = [1, 1]} : vector<40x64xf32> to vector<8x64xf32>
    %281 = vector.extract_strided_slice %256 {offsets = [8, 0], sizes = [1, 64], strides = [1, 1]} : vector<31x64xf32> to vector<1x64xf32>
    %282 = vector.broadcast %281 : vector<1x64xf32> to vector<8x64xf32>
    %283 = arith.mulf %280, %282 : vector<8x64xf32>
    %284 = arith.addf %279, %283 : vector<8x64xf32>
    %285 = vector.extract_strided_slice %274 {offsets = [16, 0], sizes = [8, 64], strides = [1, 1]} : vector<40x64xf32> to vector<8x64xf32>
    %286 = vector.extract_strided_slice %256 {offsets = [16, 0], sizes = [1, 64], strides = [1, 1]} : vector<31x64xf32> to vector<1x64xf32>
    %287 = vector.broadcast %286 : vector<1x64xf32> to vector<8x64xf32>
    %288 = arith.mulf %285, %287 : vector<8x64xf32>
    %289 = arith.addf %284, %288 : vector<8x64xf32>
    %290 = vector.extract_strided_slice %274 {offsets = [24, 0], sizes = [8, 64], strides = [1, 1]} : vector<40x64xf32> to vector<8x64xf32>
    %291 = vector.extract_strided_slice %256 {offsets = [24, 0], sizes = [1, 64], strides = [1, 1]} : vector<31x64xf32> to vector<1x64xf32>
    %292 = vector.broadcast %291 : vector<1x64xf32> to vector<8x64xf32>
    %293 = arith.mulf %290, %292 : vector<8x64xf32>
    %294 = arith.addf %289, %293 : vector<8x64xf32>
    %c38_i32 = arith.constant 38 : i32
    %295 = tpu.dynamic_rotate %255 by %c38_i32 dim 0 : vector<40x64xf32>, i32 -> vector<40x64xf32>
    %296 = vector.extract_strided_slice %295 {offsets = [0, 0], sizes = [8, 64], strides = [1, 1]} : vector<40x64xf32> to vector<8x64xf32>
    %297 = vector.extract_strided_slice %256 {offsets = [1, 0], sizes = [1, 64], strides = [1, 1]} : vector<31x64xf32> to vector<1x64xf32>
    %298 = vector.broadcast %297 : vector<1x64xf32> to vector<8x64xf32>
    %299 = arith.mulf %296, %298 : vector<8x64xf32>
    %300 = arith.addf %294, %299 : vector<8x64xf32>
    %301 = vector.extract_strided_slice %295 {offsets = [8, 0], sizes = [8, 64], strides = [1, 1]} : vector<40x64xf32> to vector<8x64xf32>
    %302 = vector.extract_strided_slice %256 {offsets = [9, 0], sizes = [1, 64], strides = [1, 1]} : vector<31x64xf32> to vector<1x64xf32>
    %303 = vector.broadcast %302 : vector<1x64xf32> to vector<8x64xf32>
    %304 = arith.mulf %301, %303 : vector<8x64xf32>
    %305 = arith.addf %300, %304 : vector<8x64xf32>
    %306 = vector.extract_strided_slice %295 {offsets = [16, 0], sizes = [8, 64], strides = [1, 1]} : vector<40x64xf32> to vector<8x64xf32>
    %307 = vector.extract_strided_slice %256 {offsets = [17, 0], sizes = [1, 64], strides = [1, 1]} : vector<31x64xf32> to vector<1x64xf32>
    %308 = vector.broadcast %307 : vector<1x64xf32> to vector<8x64xf32>
    %309 = arith.mulf %306, %308 : vector<8x64xf32>
    %310 = arith.addf %305, %309 : vector<8x64xf32>
    %311 = vector.extract_strided_slice %295 {offsets = [24, 0], sizes = [8, 64], strides = [1, 1]} : vector<40x64xf32> to vector<8x64xf32>
    %312 = vector.extract_strided_slice %256 {offsets = [25, 0], sizes = [1, 64], strides = [1, 1]} : vector<31x64xf32> to vector<1x64xf32>
    %313 = vector.broadcast %312 : vector<1x64xf32> to vector<8x64xf32>
    %314 = arith.mulf %311, %313 : vector<8x64xf32>
    %315 = arith.addf %310, %314 : vector<8x64xf32>
    %c37_i32 = arith.constant 37 : i32
    %316 = tpu.dynamic_rotate %255 by %c37_i32 dim 0 : vector<40x64xf32>, i32 -> vector<40x64xf32>
    %317 = vector.extract_strided_slice %316 {offsets = [0, 0], sizes = [8, 64], strides = [1, 1]} : vector<40x64xf32> to vector<8x64xf32>
    %318 = vector.extract_strided_slice %256 {offsets = [2, 0], sizes = [1, 64], strides = [1, 1]} : vector<31x64xf32> to vector<1x64xf32>
    %319 = vector.broadcast %318 : vector<1x64xf32> to vector<8x64xf32>
    %320 = arith.mulf %317, %319 : vector<8x64xf32>
    %321 = arith.addf %315, %320 : vector<8x64xf32>
    %322 = vector.extract_strided_slice %316 {offsets = [8, 0], sizes = [8, 64], strides = [1, 1]} : vector<40x64xf32> to vector<8x64xf32>
    %323 = vector.extract_strided_slice %256 {offsets = [10, 0], sizes = [1, 64], strides = [1, 1]} : vector<31x64xf32> to vector<1x64xf32>
    %324 = vector.broadcast %323 : vector<1x64xf32> to vector<8x64xf32>
    %325 = arith.mulf %322, %324 : vector<8x64xf32>
    %326 = arith.addf %321, %325 : vector<8x64xf32>
    %327 = vector.extract_strided_slice %316 {offsets = [16, 0], sizes = [8, 64], strides = [1, 1]} : vector<40x64xf32> to vector<8x64xf32>
    %328 = vector.extract_strided_slice %256 {offsets = [18, 0], sizes = [1, 64], strides = [1, 1]} : vector<31x64xf32> to vector<1x64xf32>
    %329 = vector.broadcast %328 : vector<1x64xf32> to vector<8x64xf32>
    %330 = arith.mulf %327, %329 : vector<8x64xf32>
    %331 = arith.addf %326, %330 : vector<8x64xf32>
    %332 = vector.extract_strided_slice %316 {offsets = [24, 0], sizes = [8, 64], strides = [1, 1]} : vector<40x64xf32> to vector<8x64xf32>
    %333 = vector.extract_strided_slice %256 {offsets = [26, 0], sizes = [1, 64], strides = [1, 1]} : vector<31x64xf32> to vector<1x64xf32>
    %334 = vector.broadcast %333 : vector<1x64xf32> to vector<8x64xf32>
    %335 = arith.mulf %332, %334 : vector<8x64xf32>
    %336 = arith.addf %331, %335 : vector<8x64xf32>
    %c36_i32 = arith.constant 36 : i32
    %337 = tpu.dynamic_rotate %255 by %c36_i32 dim 0 : vector<40x64xf32>, i32 -> vector<40x64xf32>
    %338 = vector.extract_strided_slice %337 {offsets = [0, 0], sizes = [8, 64], strides = [1, 1]} : vector<40x64xf32> to vector<8x64xf32>
    %339 = vector.extract_strided_slice %256 {offsets = [3, 0], sizes = [1, 64], strides = [1, 1]} : vector<31x64xf32> to vector<1x64xf32>
    %340 = vector.broadcast %339 : vector<1x64xf32> to vector<8x64xf32>
    %341 = arith.mulf %338, %340 : vector<8x64xf32>
    %342 = arith.addf %336, %341 : vector<8x64xf32>
    %343 = vector.extract_strided_slice %337 {offsets = [8, 0], sizes = [8, 64], strides = [1, 1]} : vector<40x64xf32> to vector<8x64xf32>
    %344 = vector.extract_strided_slice %256 {offsets = [11, 0], sizes = [1, 64], strides = [1, 1]} : vector<31x64xf32> to vector<1x64xf32>
    %345 = vector.broadcast %344 : vector<1x64xf32> to vector<8x64xf32>
    %346 = arith.mulf %343, %345 : vector<8x64xf32>
    %347 = arith.addf %342, %346 : vector<8x64xf32>
    %348 = vector.extract_strided_slice %337 {offsets = [16, 0], sizes = [8, 64], strides = [1, 1]} : vector<40x64xf32> to vector<8x64xf32>
    %349 = vector.extract_strided_slice %256 {offsets = [19, 0], sizes = [1, 64], strides = [1, 1]} : vector<31x64xf32> to vector<1x64xf32>
    %350 = vector.broadcast %349 : vector<1x64xf32> to vector<8x64xf32>
    %351 = arith.mulf %348, %350 : vector<8x64xf32>
    %352 = arith.addf %347, %351 : vector<8x64xf32>
    %353 = vector.extract_strided_slice %337 {offsets = [24, 0], sizes = [8, 64], strides = [1, 1]} : vector<40x64xf32> to vector<8x64xf32>
    %354 = vector.extract_strided_slice %256 {offsets = [27, 0], sizes = [1, 64], strides = [1, 1]} : vector<31x64xf32> to vector<1x64xf32>
    %355 = vector.broadcast %354 : vector<1x64xf32> to vector<8x64xf32>
    %356 = arith.mulf %353, %355 : vector<8x64xf32>
    %357 = arith.addf %352, %356 : vector<8x64xf32>
    %c35_i32 = arith.constant 35 : i32
    %358 = tpu.dynamic_rotate %255 by %c35_i32 dim 0 : vector<40x64xf32>, i32 -> vector<40x64xf32>
    %359 = vector.extract_strided_slice %358 {offsets = [0, 0], sizes = [8, 64], strides = [1, 1]} : vector<40x64xf32> to vector<8x64xf32>
    %360 = vector.extract_strided_slice %256 {offsets = [4, 0], sizes = [1, 64], strides = [1, 1]} : vector<31x64xf32> to vector<1x64xf32>
    %361 = vector.broadcast %360 : vector<1x64xf32> to vector<8x64xf32>
    %362 = arith.mulf %359, %361 : vector<8x64xf32>
    %363 = arith.addf %357, %362 : vector<8x64xf32>
    %364 = vector.extract_strided_slice %358 {offsets = [8, 0], sizes = [8, 64], strides = [1, 1]} : vector<40x64xf32> to vector<8x64xf32>
    %365 = vector.extract_strided_slice %256 {offsets = [12, 0], sizes = [1, 64], strides = [1, 1]} : vector<31x64xf32> to vector<1x64xf32>
    %366 = vector.broadcast %365 : vector<1x64xf32> to vector<8x64xf32>
    %367 = arith.mulf %364, %366 : vector<8x64xf32>
    %368 = arith.addf %363, %367 : vector<8x64xf32>
    %369 = vector.extract_strided_slice %358 {offsets = [16, 0], sizes = [8, 64], strides = [1, 1]} : vector<40x64xf32> to vector<8x64xf32>
    %370 = vector.extract_strided_slice %256 {offsets = [20, 0], sizes = [1, 64], strides = [1, 1]} : vector<31x64xf32> to vector<1x64xf32>
    %371 = vector.broadcast %370 : vector<1x64xf32> to vector<8x64xf32>
    %372 = arith.mulf %369, %371 : vector<8x64xf32>
    %373 = arith.addf %368, %372 : vector<8x64xf32>
    %374 = vector.extract_strided_slice %358 {offsets = [24, 0], sizes = [8, 64], strides = [1, 1]} : vector<40x64xf32> to vector<8x64xf32>
    %375 = vector.extract_strided_slice %256 {offsets = [28, 0], sizes = [1, 64], strides = [1, 1]} : vector<31x64xf32> to vector<1x64xf32>
    %376 = vector.broadcast %375 : vector<1x64xf32> to vector<8x64xf32>
    %377 = arith.mulf %374, %376 : vector<8x64xf32>
    %378 = arith.addf %373, %377 : vector<8x64xf32>
    %c34_i32 = arith.constant 34 : i32
    %379 = tpu.dynamic_rotate %255 by %c34_i32 dim 0 : vector<40x64xf32>, i32 -> vector<40x64xf32>
    %380 = vector.extract_strided_slice %379 {offsets = [0, 0], sizes = [8, 64], strides = [1, 1]} : vector<40x64xf32> to vector<8x64xf32>
    %381 = vector.extract_strided_slice %256 {offsets = [5, 0], sizes = [1, 64], strides = [1, 1]} : vector<31x64xf32> to vector<1x64xf32>
    %382 = vector.broadcast %381 : vector<1x64xf32> to vector<8x64xf32>
    %383 = arith.mulf %380, %382 : vector<8x64xf32>
    %384 = arith.addf %378, %383 : vector<8x64xf32>
    %385 = vector.extract_strided_slice %379 {offsets = [8, 0], sizes = [8, 64], strides = [1, 1]} : vector<40x64xf32> to vector<8x64xf32>
    %386 = vector.extract_strided_slice %256 {offsets = [13, 0], sizes = [1, 64], strides = [1, 1]} : vector<31x64xf32> to vector<1x64xf32>
    %387 = vector.broadcast %386 : vector<1x64xf32> to vector<8x64xf32>
    %388 = arith.mulf %385, %387 : vector<8x64xf32>
    %389 = arith.addf %384, %388 : vector<8x64xf32>
    %390 = vector.extract_strided_slice %379 {offsets = [16, 0], sizes = [8, 64], strides = [1, 1]} : vector<40x64xf32> to vector<8x64xf32>
    %391 = vector.extract_strided_slice %256 {offsets = [21, 0], sizes = [1, 64], strides = [1, 1]} : vector<31x64xf32> to vector<1x64xf32>
    %392 = vector.broadcast %391 : vector<1x64xf32> to vector<8x64xf32>
    %393 = arith.mulf %390, %392 : vector<8x64xf32>
    %394 = arith.addf %389, %393 : vector<8x64xf32>
    %395 = vector.extract_strided_slice %379 {offsets = [24, 0], sizes = [8, 64], strides = [1, 1]} : vector<40x64xf32> to vector<8x64xf32>
    %396 = vector.extract_strided_slice %256 {offsets = [29, 0], sizes = [1, 64], strides = [1, 1]} : vector<31x64xf32> to vector<1x64xf32>
    %397 = vector.broadcast %396 : vector<1x64xf32> to vector<8x64xf32>
    %398 = arith.mulf %395, %397 : vector<8x64xf32>
    %399 = arith.addf %394, %398 : vector<8x64xf32>
    %c33_i32 = arith.constant 33 : i32
    %400 = tpu.dynamic_rotate %255 by %c33_i32 dim 0 : vector<40x64xf32>, i32 -> vector<40x64xf32>
    %401 = vector.extract_strided_slice %400 {offsets = [0, 0], sizes = [8, 64], strides = [1, 1]} : vector<40x64xf32> to vector<8x64xf32>
    %402 = vector.extract_strided_slice %256 {offsets = [6, 0], sizes = [1, 64], strides = [1, 1]} : vector<31x64xf32> to vector<1x64xf32>
    %403 = vector.broadcast %402 : vector<1x64xf32> to vector<8x64xf32>
    %404 = arith.mulf %401, %403 : vector<8x64xf32>
    %405 = arith.addf %399, %404 : vector<8x64xf32>
    %406 = vector.extract_strided_slice %400 {offsets = [8, 0], sizes = [8, 64], strides = [1, 1]} : vector<40x64xf32> to vector<8x64xf32>
    %407 = vector.extract_strided_slice %256 {offsets = [14, 0], sizes = [1, 64], strides = [1, 1]} : vector<31x64xf32> to vector<1x64xf32>
    %408 = vector.broadcast %407 : vector<1x64xf32> to vector<8x64xf32>
    %409 = arith.mulf %406, %408 : vector<8x64xf32>
    %410 = arith.addf %405, %409 : vector<8x64xf32>
    %411 = vector.extract_strided_slice %400 {offsets = [16, 0], sizes = [8, 64], strides = [1, 1]} : vector<40x64xf32> to vector<8x64xf32>
    %412 = vector.extract_strided_slice %256 {offsets = [22, 0], sizes = [1, 64], strides = [1, 1]} : vector<31x64xf32> to vector<1x64xf32>
    %413 = vector.broadcast %412 : vector<1x64xf32> to vector<8x64xf32>
    %414 = arith.mulf %411, %413 : vector<8x64xf32>
    %415 = arith.addf %410, %414 : vector<8x64xf32>
    %416 = vector.extract_strided_slice %400 {offsets = [24, 0], sizes = [8, 64], strides = [1, 1]} : vector<40x64xf32> to vector<8x64xf32>
    %417 = vector.extract_strided_slice %256 {offsets = [30, 0], sizes = [1, 64], strides = [1, 1]} : vector<31x64xf32> to vector<1x64xf32>
    %418 = vector.broadcast %417 : vector<1x64xf32> to vector<8x64xf32>
    %419 = arith.mulf %416, %418 : vector<8x64xf32>
    %420 = arith.addf %415, %419 : vector<8x64xf32>
    %c0_136 = arith.constant 0 : index
    %c0_137 = arith.constant 0 : index
    %421 = vector.load %arg20[%c0_136, %c0_137] : memref<1x64xf32, #tpu.memory_space<vmem>>, vector<1x64xf32>
    %422 = vector.broadcast %421 : vector<1x64xf32> to vector<8x64xf32>
    %423 = arith.addf %420, %422 : vector<8x64xf32>
    %424 = arith.negf %423 : vector<8x64xf32>
    %425 = math.exp %424 : vector<8x64xf32>
    %cst_138 = arith.constant 1.000000e+00 : f32
    %426 = vector.broadcast %cst_138 : f32 to vector<8x64xf32>
    %427 = arith.addf %426, %425 : vector<8x64xf32>
    %428 = arith.divf %426, %427 : vector<8x64xf32>
    %429 = arith.mulf %423, %428 : vector<8x64xf32>
    %430 = arith.truncf %429 : vector<8x64xf32> to vector<8x64xbf16>
    %c0_139 = arith.constant 0 : index
    %c0_140 = arith.constant 0 : index
    %431 = vector.load %arg21[%c0_139, %c0_140] : memref<64x32xbf16, #tpu.memory_space<vmem>>, vector<64x32xbf16>
    %cst_141 = arith.constant dense<0.000000e+00> : vector<8x32xf32>
    %432 = tpu.matmul %430, %431, %cst_141 {dimension_numbers = #tpu.dot_dimension_numbers<[1], [0], [0], [1], [0, 0, 1, 1], [], []>} : vector<8x64xbf16>, vector<64x32xbf16>, vector<8x32xf32> -> vector<8x32xf32>
    %433 = arith.addf %210, %432 : vector<8x32xf32>
    %c0_142 = arith.constant 0 : index
    %c0_143 = arith.constant 0 : index
    %434 = vector.load %arg22[%c0_142, %c0_143] : memref<1x32xf32, #tpu.memory_space<vmem>>, vector<1x32xf32>
    %435 = vector.broadcast %434 : vector<1x32xf32> to vector<8x32xf32>
    %436 = arith.addf %433, %435 : vector<8x32xf32>
    %c0_144 = arith.constant 0 : index
    %c0_145 = arith.constant 0 : index
    %c0_146 = arith.constant 0 : index
    %437 = vector.load %arg23[%c0_144, %c0_145, %c0_146] : memref<1x8x32xf32, #tpu.memory_space<vmem>>, vector<1x8x32xf32>
    %438 = vector.shape_cast %437 : vector<1x8x32xf32> to vector<8x32xf32>
    %439 = vector.shape_cast %436 : vector<8x32xf32> to vector<1x8x32xf32>
    tpu.vector_store %arg23[%c0_144, %c0_145, %c0_146], %439 {strides = array<i32>} : memref<1x8x32xf32, #tpu.memory_space<vmem>>, vector<1x8x32xf32>,
    return
  }
  func.func @transform_0(%arg0: i32) -> (i32, i32, i32) {
    %c0_i32 = arith.constant 0 : i32
    %c0_i32_0 = arith.constant 0 : i32
    %c0_i32_1 = arith.constant 0 : i32
    return %arg0, %c0_i32, %c0_i32_0 : i32, i32, i32
  }
  func.func @transform_1(%arg0: i32) -> (i32, i32) {
    %c0_i32 = arith.constant 0 : i32
    %c0_i32_0 = arith.constant 0 : i32
    %c0_i32_1 = arith.constant 0 : i32
    return %c0_i32, %c0_i32_0 : i32, i32
  }
  func.func @transform_2(%arg0: i32) -> (i32, i32) {
    %c0_i32 = arith.constant 0 : i32
    %c0_i32_0 = arith.constant 0 : i32
    %c0_i32_1 = arith.constant 0 : i32
    return %c0_i32, %c0_i32_0 : i32, i32
  }
  func.func @transform_3(%arg0: i32) -> (i32, i32, i32) {
    %c0_i32 = arith.constant 0 : i32
    %c0_i32_0 = arith.constant 0 : i32
    %c0_i32_1 = arith.constant 0 : i32
    %c0_i32_2 = arith.constant 0 : i32
    return %c0_i32, %c0_i32_0, %c0_i32_1 : i32, i32, i32
  }
  func.func @transform_4(%arg0: i32) -> (i32, i32, i32) {
    %c0_i32 = arith.constant 0 : i32
    %c0_i32_0 = arith.constant 0 : i32
    %c0_i32_1 = arith.constant 0 : i32
    %c0_i32_2 = arith.constant 0 : i32
    return %c0_i32, %c0_i32_0, %c0_i32_1 : i32, i32, i32
  }
  func.func @transform_5(%arg0: i32) -> (i32, i32, i32) {
    %c0_i32 = arith.constant 0 : i32
    %c0_i32_0 = arith.constant 0 : i32
    %c0_i32_1 = arith.constant 0 : i32
    %c0_i32_2 = arith.constant 0 : i32
    return %c0_i32, %c0_i32_0, %c0_i32_1 : i32, i32, i32
  }
  func.func @transform_6(%arg0: i32) -> (i32, i32, i32) {
    %c0_i32 = arith.constant 0 : i32
    %c0_i32_0 = arith.constant 0 : i32
    %c0_i32_1 = arith.constant 0 : i32
    %c0_i32_2 = arith.constant 0 : i32
    return %c0_i32, %c0_i32_0, %c0_i32_1 : i32, i32, i32
  }
  func.func @transform_7(%arg0: i32) -> (i32, i32, i32) {
    %c0_i32 = arith.constant 0 : i32
    %c0_i32_0 = arith.constant 0 : i32
    %c0_i32_1 = arith.constant 0 : i32
    %c0_i32_2 = arith.constant 0 : i32
    return %c0_i32, %c0_i32_0, %c0_i32_1 : i32, i32, i32
  }
  func.func @transform_8(%arg0: i32) -> (i32, i32, i32) {
    %c0_i32 = arith.constant 0 : i32
    %c0_i32_0 = arith.constant 0 : i32
    %c0_i32_1 = arith.constant 0 : i32
    %c0_i32_2 = arith.constant 0 : i32
    return %c0_i32, %c0_i32_0, %c0_i32_1 : i32, i32, i32
  }
  func.func @transform_9(%arg0: i32) -> (i32, i32) {
    %c0_i32 = arith.constant 0 : i32
    %c0_i32_0 = arith.constant 0 : i32
    %c0_i32_1 = arith.constant 0 : i32
    return %c0_i32, %c0_i32_0 : i32, i32
  }
  func.func @transform_10(%arg0: i32) -> (i32, i32) {
    %c0_i32 = arith.constant 0 : i32
    %c0_i32_0 = arith.constant 0 : i32
    %c0_i32_1 = arith.constant 0 : i32
    return %c0_i32, %c0_i32_0 : i32, i32
  }
  func.func @transform_11(%arg0: i32) -> (i32, i32) {
    %c0_i32 = arith.constant 0 : i32
    %c0_i32_0 = arith.constant 0 : i32
    %c0_i32_1 = arith.constant 0 : i32
    return %c0_i32, %c0_i32_0 : i32, i32
  }
  func.func @transform_12(%arg0: i32) -> (i32, i32) {
    %c0_i32 = arith.constant 0 : i32
    %c0_i32_0 = arith.constant 0 : i32
    %c0_i32_1 = arith.constant 0 : i32
    return %c0_i32, %c0_i32_0 : i32, i32
  }
  func.func @transform_13(%arg0: i32) -> (i32, i32) {
    %c0_i32 = arith.constant 0 : i32
    %c0_i32_0 = arith.constant 0 : i32
    %c0_i32_1 = arith.constant 0 : i32
    return %c0_i32, %c0_i32_0 : i32, i32
  }
  func.func @transform_14(%arg0: i32) -> (i32, i32) {
    %c0_i32 = arith.constant 0 : i32
    %c0_i32_0 = arith.constant 0 : i32
    %c0_i32_1 = arith.constant 0 : i32
    return %c0_i32, %c0_i32_0 : i32, i32
  }
  func.func @transform_15(%arg0: i32) -> (i32, i32) {
    %c0_i32 = arith.constant 0 : i32
    %c0_i32_0 = arith.constant 0 : i32
    %c0_i32_1 = arith.constant 0 : i32
    return %c0_i32, %c0_i32_0 : i32, i32
  }
  func.func @transform_16(%arg0: i32) -> (i32, i32) {
    %c0_i32 = arith.constant 0 : i32
    %c0_i32_0 = arith.constant 0 : i32
    %c0_i32_1 = arith.constant 0 : i32
    return %c0_i32, %c0_i32_0 : i32, i32
  }
  func.func @transform_17(%arg0: i32) -> (i32, i32) {
    %c0_i32 = arith.constant 0 : i32
    %c0_i32_0 = arith.constant 0 : i32
    %c0_i32_1 = arith.constant 0 : i32
    return %c0_i32, %c0_i32_0 : i32, i32
  }
  func.func @transform_18(%arg0: i32) -> (i32, i32) {
    %c0_i32 = arith.constant 0 : i32
    %c0_i32_0 = arith.constant 0 : i32
    %c0_i32_1 = arith.constant 0 : i32
    return %c0_i32, %c0_i32_0 : i32, i32
  }
  func.func @transform_19(%arg0: i32) -> (i32, i32) {
    %c0_i32 = arith.constant 0 : i32
    %c0_i32_0 = arith.constant 0 : i32
    %c0_i32_1 = arith.constant 0 : i32
    return %c0_i32, %c0_i32_0 : i32, i32
  }
  func.func @transform_20(%arg0: i32) -> (i32, i32) {
    %c0_i32 = arith.constant 0 : i32
    %c0_i32_0 = arith.constant 0 : i32
    %c0_i32_1 = arith.constant 0 : i32
    return %c0_i32, %c0_i32_0 : i32, i32
  }
  func.func @transform_21(%arg0: i32) -> (i32, i32) {
    %c0_i32 = arith.constant 0 : i32
    %c0_i32_0 = arith.constant 0 : i32
    %c0_i32_1 = arith.constant 0 : i32
    return %c0_i32, %c0_i32_0 : i32, i32
  }
  func.func @transform_22(%arg0: i32) -> (i32, i32, i32) {
    %c0_i32 = arith.constant 0 : i32
    %c0_i32_0 = arith.constant 0 : i32
    %c0_i32_1 = arith.constant 0 : i32
    return %arg0, %c0_i32, %c0_i32_0 : i32, i32, i32
  }
}

</mosaic_0001>

<bundles_post_ra>
// kernel: tpu_custom_call.1
= control target key start
LH: loop header
LB: loop body
LE: loop exit
PB: predicated region body
PF: predicated region fallthrough
CT: control target
= control target key end

     0   :  { %s6371_s0 = inlined_call_operand.hbm [shape: f32[2,8,32], index: 0, kind: input, shape index: {}]   ;;  %s6372_s1 = inlined_call_operand.hbm [shape: f32[1,32], index: 1, kind: input, shape index: {}]   ;;  %s6373_s2 = inlined_call_operand.hbm [shape: f32[1,32], index: 2, kind: input, shape index: {}]   ;;  %s6374_s3 = inlined_call_operand.vmem [shape: bf16[2,32,64], index: 3, kind: input, shape index: {}]   ;;  %s6375_s4 = inlined_call_operand.hbm [shape: f32[2,1,64], index: 4, kind: input, shape index: {}]   ;;  %s6376_s5 = inlined_call_operand.vmem [shape: bf16[2,32,64], index: 5, kind: input, shape index: {}]   ;;  %s6377_s6 = inlined_call_operand.hbm [shape: f32[2,1,64], index: 6, kind: input, shape index: {}]   ;;  %s6378_s7 = inlined_call_operand.hbm [shape: bf16[2,32,64], index: 7, kind: input, shape index: {}]   ;;  %s6379_s8 = inlined_call_operand.hbm [shape: f32[2,1,64], index: 8, kind: input, shape index: {}]   ;;  %s6380_s9 = inlined_call_operand.vmem [shape: bf16[64,384], index: 9, kind: input, shape index: {}]   ;;  %s6381_s10 = inlined_call_operand.vmem [shape: bf16[128,32], index: 10, kind: input, shape index: {}]   ;;  %s6382_s11 = inlined_call_operand.hbm [shape: f32[1,32], index: 11, kind: input, shape index: {}]   ;;  %s6383_s12 = inlined_call_operand.hbm [shape: f32[1,32], index: 12, kind: input, shape index: {}]   ;;  %s6384_s13 = inlined_call_operand.hbm [shape: f32[1,32], index: 13, kind: input, shape index: {}]   ;;  %s6385_s14 = inlined_call_operand.hbm [shape: bf16[32,64], index: 14, kind: input, shape index: {}]   ;;  %s6386_s15 = inlined_call_operand.hbm [shape: f32[1,64], index: 15, kind: input, shape index: {}]   ;;  %s6387_s16 = inlined_call_operand.hbm [shape: bf16[32,64], index: 16, kind: input, shape index: {}]   ;;  %s6388_s17 = inlined_call_operand.hbm [shape: f32[1,64], index: 17, kind: input, shape index: {}]   ;;  %s6389_s18 = inlined_call_operand.vmem [shape: f32[31,64], index: 18, kind: input, shape index: {}]   ;;  %s6390_s19 = inlined_call_operand.vmem [shape: f32[1,64], index: 19, kind: input, shape index: {}]   ;;  %s6391_s20 = inlined_call_operand.vmem [shape: bf16[64,32], index: 20, kind: input, shape index: {}]   ;;  %s6392_s21 = inlined_call_operand.vmem [shape: f32[1,32], index: 21, kind: input, shape index: {}]   ;;  %s6393_s22 = inlined_call_operand.hbm [shape: f32[2,8,32], index: 22, kind: output, shape index: {}]  }
   0x1   :  { %6427 = sst [smem:[#allocation39_spill]] %s6371_s0 }
   0x2   :  { %6428 = sst [smem:[#allocation40_spill]] %s6372_s1 }
   0x3   :  { %6429 = sst [smem:[#allocation41_spill]] %s6373_s2 }
   0x4   :  { %6430 = sst [smem:[#allocation42_spill]] %s6374_s3 }
   0x5   :  { %6431 = sst [smem:[#allocation43_spill]] %s6375_s4 }
   0x6   :  { %6432 = sst [smem:[#allocation44_spill]] %s6376_s5 }
   0x7   :  { %6433 = sst [smem:[#allocation45_spill]] %s6377_s6 }
   0x8   :  { %6434 = sst [smem:[#allocation46_spill]] %s6378_s7 }
   0x9   :  { %6435 = sst [smem:[#allocation47_spill]] %s6379_s8 }
   0xa   :  { %6436 = sst [smem:[#allocation48_spill]] %s6380_s9 }
   0xb   :  { %6437 = sst [smem:[#allocation49_spill]] %s6381_s10 }
   0xc   :  { %6438 = sst [smem:[#allocation50_spill]] %s6382_s11 }
   0xd   :  { %6439 = sst [smem:[#allocation51_spill]] %s6383_s12 }
   0xe   :  { %6440 = sst [smem:[#allocation52_spill]] %s6384_s13 }
   0xf   :  { %6441 = sst [smem:[#allocation53_spill]] %s6389_s18 }
  0x10   :  { %6442 = sst [smem:[#allocation54_spill]] %s6390_s19 }
  0x11   :  { %6443 = sst [smem:[#allocation55_spill]] %s6391_s20 }
  0x12   :  { %6444 = sst [smem:[#allocation56_spill]] %s6392_s21 }
  0x13   :  { %6445 = sst [smem:[#allocation57_spill]] %s6393_s22 }
  0x14   :  { %27 = vsyncpa [#allocation5], 0 }
  0x15   :  { %29 = vsyncpa [#allocation5 + $0x1], 0 }
  0x16   :  { %30 = vsyncpa [#allocation8], 0 }
  0x17   :  { %31 = vsyncpa [#allocation11], 0 }
  0x18   :  { %32 = vsyncpa [#allocation14], 0 }
  0x19   :  { %33 = vsyncpa [#allocation17], 0 }
  0x1a   :  { %34 = vsyncpa [#allocation20], 0 }
  0x1b   :  { %35 = vsyncpa [#allocation23], 0 }
  0x1c   :  { %36 = vsyncpa [#allocation26], 0 }
  0x1d   :  { %37 = vsyncpa [#allocation6], 0 }
  0x1e   :  { %39 = vsyncpa [#allocation6 + $0x1], 0  ;;  %s5218_s3 = smov 0   ;;  %s5220_s28 = smov 0  }
  0x1f   :  { %s5222_s29 = smov 0   ;;  %s5224_s30 = smov 0  }
  0x20 LB: > { %s5080_s4 = smov [#allocation7]   ;;  %s5239_s23 = sadd.s32 4294967295, %s5078_s30   ;;  %s5078_s30 = sphi %s5224_s30, %s6506_s30   ;;  %s5074_s29 = sphi %s5222_s29, %s6505_s29   ;;  %s5070_s28 = sphi %s5220_s28, %s6504_s28   ;;  %s5066_s3 = sphi %s5218_s3, %s6503_s3  }
  0x21   : > { %s556_s0 = sshll.u32 %s5080_s4, 4  ;;  %6446 = sst [smem:[#allocation37_spill]] %s5239_s23  ;;  %s5244_s0 = int_to_ptr.vmem [resolvable:$true] %s556_s0 }
  0x22   : > { %p3691_p0 = scmp.ge.s32.totalorder %s5078_s30, 1  ;;  %p6416_p1 = scmp.eq.s32.totalorder %s5239_s23, 0 }
  0x23   : > { %p543_p2 = scmp.lt.s32.totalorder %s5078_s30, 3  ;;  %s5081_s5 = smov [#allocation10]  }
  0x24   : > { %s580_s24 = sshll.u32 %s5081_s5, 4  ;;  %s5082_s25 = smov [#allocation13]   ;;  %s5253_s24 = int_to_ptr.vmem [resolvable:$true] %s580_s24 }
  0x25   : > { %p5246_p3 = pnand %p3691_p0, %p543_p2  ;;  %s609_s26 = sshll.u32 %s5082_s25, 4  ;;  %s5261_s26 = int_to_ptr.vmem [resolvable:$true] %s609_s26 }
  0x26   : > { %s6450_s4 = sld [smem:[#allocation40_spill]] }
  0x27   : > { %s6447_s1 = scalar_select %p5246_p3, 1, 0 }
  0x28   : > { %p4376_p5 = pneg %p5246_p3 }
  0x29   : > { %6448 = sst [smem:[#allocation38_spill]] %s6447_s1 }
  0x2a   : > { %p5257_p6 = pnand %p4376_p5, %p6416_p1 }
  0x2c   : > { %s4590_s22 = scalar_lea.hbm %s6450_s4, 16  ;;  %p5271_p8 = pneg %p5257_p6 }
  0x2d   : > { %p4591_p7 = scmp.ne.s32.totalorder %s6450_s4, %s4590_s22  ;;  %p4597_p11 = scmp.lt.u32.totalorder %s4590_s22, %s6450_s4 }
  0x2f   : > { %p4593_p9 = pnand %p5271_p8, %p4591_p7 }
  0x31   : > { %p4594_p10 = pneg %p4593_p9 }
  0x33   : > { %p4599_p12 = pnand %p4597_p11, %p4594_p10 }
  0x35   : > { %4602 = shalt.err (!%p4599_p12)
}
  0x36   : > { %s4603_s19 = scalar_lea.vmem %s5244_s0, 16  ;;  %s4610_s21 = scalar_lea.vmem %s5244_s0, 32 }
  0x37   : > { %p4604_p13 = scmp.ne.s32.totalorder %s5244_s0, %s4603_s19  ;;  %p4611_p5 = scmp.lt.s32.totalorder %s5244_s0, %s5244_s0 }
  0x38   : > { %p4612_p7 = scmp.lt.s32.totalorder %s4610_s21, %s4603_s19 }
  0x39   : > { %p4606_p0 = pnand %p4604_p13, %p5271_p8 }
  0x3a   : > { %p4613_p9 = por %p4612_p7, %p4611_p5 }
  0x3b   : > { %p4607_p2 = pneg %p4606_p0 }
  0x3d   : > { %p4614_p4 = pnand %p4613_p9, %p4607_p2 }
  0x3f   : > { %4617 = shalt.err (!%p4614_p4)
}
  0x40   : > { %4379 = dma.hbm_to_vmem [thread:$0]  (!%p5257_p6), %s6450_s4, 16, %s5244_s0, [#allocation8]  }
  0x41   : > { %s6452_s25 = sld [smem:[#allocation43_spill]] }
  0x47   : > { %s4618_s20 = scalar_lea.hbm %s6452_s25, 32 }
  0x48   : > { %p4619_p10 = scmp.ne.s32.totalorder %s6452_s25, %s4618_s20  ;;  %p4625_p4 = scmp.lt.u32.totalorder %s4618_s20, %s6452_s25 }
  0x4a   : > { %p4621_p11 = pnand %p4619_p10, %p5271_p8 }
  0x4c   : > { %p4622_p12 = pneg %p4621_p11 }
  0x4e   : > { %p4627_p13 = pnand %p4625_p4, %p4622_p12 }
  0x50   : > { %4630 = shalt.err (!%p4627_p13)
}
  0x51   : > { %s4631_s0 = scalar_lea.vmem %s5253_s24, 32  ;;  %p4639_p7 = scmp.lt.s32.totalorder %s5253_s24, %s5253_s24 }
  0x52   : > { %p4632_p0 = scmp.ne.s32.totalorder %s5253_s24, %s4631_s0  ;;  %p4640_p9 = scmp.lt.s32.totalorder %s4631_s0, %s4631_s0 }
  0x54   : > { %p4634_p2 = pnand %p4632_p0, %p5271_p8  ;;  %p4641_p10 = por %p4640_p9, %p4639_p7 }
  0x56   : > { %p4635_p5 = pneg %p4634_p2 }
  0x58   : > { %p4642_p11 = pnand %p4641_p10, %p4635_p5 }
  0x5a   : > { %4645 = shalt.err (!%p4642_p11)
}
  0x5b   : > { %s6407_s9 = smov 16   ;;  %s6409_s10 = smov 1  }
  0x5c   : > { %4385 = dma.hbm_to_vmem [thread:$0]  (!%p5257_p6), %s6452_s25, 32, %s5253_s24, [#allocation11], %s6407_s9, %s6407_s9, %s6409_s10  }
  0x5d   : > { %s6453_s7 = sld [smem:[#allocation46_spill]] }
  0x63   : > { %s4646_s27 = scalar_lea.hbm %s6453_s7, 512 }
  0x64   : > { %p4647_p12 = scmp.ne.s32.totalorder %s6453_s7, %s4646_s27  ;;  %p4653_p0 = scmp.lt.u32.totalorder %s4646_s27, %s6453_s7 }
  0x66   : > { %p4649_p4 = pnand %p4647_p12, %p5271_p8 }
  0x68   : > { %p4650_p13 = pneg %p4649_p4 }
  0x6a   : > { %p4655_p2 = pnand %p4653_p0, %p4650_p13 }
  0x6c   : > { %4658 = shalt.err (!%p4655_p2)
}
  0x6d   : > { %s4659_s24 = scalar_lea.vmem %s5261_s26, 512  ;;  %p4667_p10 = scmp.lt.s32.totalorder %s5261_s26, %s5261_s26 }
  0x6e   : > { %p4660_p5 = scmp.ne.s32.totalorder %s5261_s26, %s4659_s24  ;;  %p4668_p11 = scmp.lt.s32.totalorder %s4659_s24, %s4659_s24 }
  0x70   : > { %p4662_p7 = pnand %p4660_p5, %p5271_p8  ;;  %p4669_p12 = por %p4668_p11, %p4667_p10 }
  0x72   : > { %p4663_p9 = pneg %p4662_p7 }
  0x74   : > { %p4670_p4 = pnand %p4669_p12, %p4663_p9 }
  0x76   : > { %4673 = shalt.err (!%p4670_p4)
}
  0x77   : > { %s6418_s20 = smov 64   ;;  %s6420_s4 = smov 4  }
  0x78   : > { %4391 = dma.hbm_to_vmem [thread:$0]  (!%p5257_p6), %s6453_s7, 512, %s5261_s26, [#allocation14], %s6418_s20, %s6418_s20, %s6420_s4  }
  0x79   : > { %s5087_s2 = smov [#allocation16]   ;;  %s5088_s19 = smov [#allocation19]  }
  0x7a   : > { %s642_s27 = sshll.u32 %s5087_s2, 4  ;;  %s664_s21 = sshll.u32 %s5088_s19, 4  ;;  %s643_s27 = int_to_ptr.vmem [resolvable:$true] %s642_s27  ;;  %s665_s21 = int_to_ptr.vmem [resolvable:$true] %s664_s21 }
  0x7b   : > { %s6454_s11 = sld [smem:[#allocation50_spill]] }
  0x81   : > { %s4674_s9 = scalar_lea.hbm %s6454_s11, 16 }
  0x82   : > { %p4675_p13 = scmp.ne.s32.totalorder %s6454_s11, %s4674_s9  ;;  %p4681_p5 = scmp.lt.u32.totalorder %s4674_s9, %s6454_s11 }
  0x84   : > { %p4677_p0 = pnand %p4675_p13, %p5271_p8 }
  0x86   : > { %p4678_p2 = pneg %p4677_p0 }
  0x88   : > { %p4683_p7 = pnand %p4681_p5, %p4678_p2 }
  0x8a   : > { %4686 = shalt.err (!%p4683_p7)
}
  0x8b   : > { %s4687_s26 = scalar_lea.vmem %s643_s27, 16  ;;  %s4694_s18 = scalar_lea.vmem %s643_s27, 32 }
  0x8c   : > { %p4688_p9 = scmp.ne.s32.totalorder %s643_s27, %s4687_s26  ;;  %p4695_p12 = scmp.lt.s32.totalorder %s643_s27, %s643_s27 }
  0x8d   : > { %p4696_p4 = scmp.lt.s32.totalorder %s4694_s18, %s4687_s26 }
  0x8e   : > { %p4690_p10 = pnand %p4688_p9, %p5271_p8 }
  0x8f   : > { %p4697_p1 = por %p4696_p4, %p4695_p12 }
  0x90   : > { %p4691_p11 = pneg %p4690_p10 }
  0x92   : > { %p4698_p3 = pnand %p4697_p1, %p4691_p11 }
  0x94   : > { %4701 = shalt.err (!%p4698_p3)
}
  0x95   : > { %4397 = dma.hbm_to_vmem [thread:$0]  (!%p5257_p6), %s6454_s11, 16, %s643_s27, [#allocation17]  }
  0x96   : > { %s6455_s13 = sld [smem:[#allocation52_spill]] }
  0x9c   : > { %s4702_s9 = scalar_lea.hbm %s6455_s13, 16 }
  0x9d   : > { %p4703_p13 = scmp.ne.s32.totalorder %s6455_s13, %s4702_s9  ;;  %p4709_p3 = scmp.lt.u32.totalorder %s4702_s9, %s6455_s13 }
  0x9f   : > { %p4705_p0 = pnand %p4703_p13, %p5271_p8 }
  0xa1   : > { %p4706_p1 = pneg %p4705_p0 }
  0xa3   : > { %p4711_p2 = pnand %p4709_p3, %p4706_p1 }
  0xa5   : > { %4714 = shalt.err (!%p4711_p2)
}
  0xa6   : > { %s4715_s24 = scalar_lea.vmem %s665_s21, 16  ;;  %s4722_s27 = scalar_lea.vmem %s665_s21, 32 }
  0xa7   : > { %p4716_p5 = scmp.ne.s32.totalorder %s665_s21, %s4715_s24  ;;  %p4723_p10 = scmp.lt.s32.totalorder %s665_s21, %s665_s21 }
  0xa8   : > { %p4724_p11 = scmp.lt.s32.totalorder %s4722_s27, %s4715_s24 }
  0xa9   : > { %p4718_p7 = pnand %p4716_p5, %p5271_p8 }
  0xaa   : > { %p4725_p12 = por %p4724_p11, %p4723_p10 }
  0xab   : > { %p4719_p9 = pneg %p4718_p7 }
  0xad   : > { %p4726_p4 = pnand %p4725_p12, %p4719_p9 }
  0xaf   : > { %4729 = shalt.err (!%p4726_p4)
}
  0xb0   : > { %4403 = dma.hbm_to_vmem [thread:$0]  (!%p5257_p6), %s6455_s13, 16, %s665_s21, [#allocation20]  }
  0xb1   : > { %s5089_s25 = smov [#allocation22]   ;;  %s5090_s23 = smov [#allocation9]  }
  0xb2   : > { %s688_s10 = sshll.u32 %s5089_s25, 4  ;;  %s567_s1 = sshll.u32 %s5090_s23, 4  ;;  %s689_s10 = int_to_ptr.vmem [resolvable:$true] %s688_s10  ;;  %s568_s1 = int_to_ptr.vmem [resolvable:$true] %s567_s1 }
  0xb3   : > { %s4730_s2 = scalar_lea.hbm %s6386_s15, 16 }
  0xb4   : > { %p4731_p13 = scmp.ne.s32.totalorder %s6386_s15, %s4730_s2  ;;  %p4737_p3 = scmp.lt.u32.totalorder %s4730_s2, %s6386_s15 }
  0xb6   : > { %p4733_p0 = pnand %p4731_p13, %p5271_p8 }
  0xb8   : > { %p4734_p1 = pneg %p4733_p0 }
  0xba   : > { %p4739_p2 = pnand %p4737_p3, %p4734_p1 }
  0xbc   : > { %4742 = shalt.err (!%p4739_p2)
}
  0xbd   : > { %s4743_s21 = scalar_lea.vmem %s689_s10, 16  ;;  %s4750_s26 = scalar_lea.vmem %s689_s10, 32 }
  0xbe   : > { %p4744_p5 = scmp.ne.s32.totalorder %s689_s10, %s4743_s21  ;;  %p4751_p10 = scmp.lt.s32.totalorder %s689_s10, %s689_s10 }
  0xbf   : > { %p4752_p11 = scmp.lt.s32.totalorder %s4750_s26, %s4743_s21 }
  0xc0   : > { %p4746_p7 = pnand %p4744_p5, %p5271_p8 }
  0xc1   : > { %p4753_p12 = por %p4752_p11, %p4751_p10 }
  0xc2   : > { %p4747_p9 = pneg %p4746_p7 }
  0xc4   : > { %p4754_p4 = pnand %p4753_p12, %p4747_p9 }
  0xc6   : > { %4757 = shalt.err (!%p4754_p4)
}
  0xc7   : > { %4409 = dma.hbm_to_vmem [thread:$0]  (!%p5257_p6), %s6386_s15, 16, %s689_s10, [#allocation23]  }
  0xc8   : > { %s6456_s22 = sld [smem:[#allocation41_spill]] }
  0xce   : > { %s4758_s2 = scalar_lea.hbm %s6456_s22, 16 }
  0xcf   : > { %p4759_p13 = scmp.ne.s32.totalorder %s6456_s22, %s4758_s2  ;;  %p4765_p3 = scmp.lt.u32.totalorder %s4758_s2, %s6456_s22 }
  0xd1   : > { %p4761_p0 = pnand %p4759_p13, %p5271_p8 }
  0xd3   : > { %p4762_p1 = pneg %p4761_p0 }
  0xd5   : > { %p4767_p2 = pnand %p4765_p3, %p4762_p1 }
  0xd7   : > { %4770 = shalt.err (!%p4767_p2)
}
  0xd8   : > { %s4771_s21 = scalar_lea.vmem %s568_s1, 16  ;;  %s4778_s10 = scalar_lea.vmem %s568_s1, 32 }
  0xd9   : > { %p4772_p5 = scmp.ne.s32.totalorder %s568_s1, %s4771_s21  ;;  %p4779_p10 = scmp.lt.s32.totalorder %s568_s1, %s568_s1 }
  0xda   : > { %p4780_p11 = scmp.lt.s32.totalorder %s4778_s10, %s4771_s21 }
  0xdb   : > { %p4774_p7 = pnand %p4772_p5, %p5271_p8 }
  0xdc   : > { %p4781_p12 = por %p4780_p11, %p4779_p10 }
  0xdd   : > { %p4775_p9 = pneg %p4774_p7 }
  0xdf   : > { %p4782_p4 = pnand %p4781_p12, %p4775_p9 }
  0xe1   : > { %4785 = shalt.err (!%p4782_p4)
}
  0xe2   : > { %4382 = dma.hbm_to_vmem [thread:$0]  (!%p5257_p6), %s6456_s22, 16, %s568_s1, [#allocation8]  }
  0xe3   : > { %s5091_s25 = smov [#allocation12]   ;;  %s5092_s9 = smov [#allocation15]  }
  0xe4   : > { %s596_s23 = sshll.u32 %s5091_s25, 4  ;;  %s622_s2 = sshll.u32 %s5092_s9, 4  ;;  %s597_s23 = int_to_ptr.vmem [resolvable:$true] %s596_s23  ;;  %s623_s2 = int_to_ptr.vmem [resolvable:$true] %s622_s2 }
  0xe5   : > { %s6457_s24 = sld [smem:[#allocation45_spill]] }
  0xeb   : > { %s4786_s27 = scalar_lea.hbm %s6457_s24, 32 }
  0xec   : > { %p4787_p13 = scmp.ne.s32.totalorder %s6457_s24, %s4786_s27  ;;  %p4793_p3 = scmp.lt.u32.totalorder %s4786_s27, %s6457_s24 }
  0xee   : > { %p4789_p0 = pnand %p4787_p13, %p5271_p8 }
  0xf0   : > { %p4790_p1 = pneg %p4789_p0 }
  0xf2   : > { %p4795_p2 = pnand %p4793_p3, %p4790_p1 }
  0xf4   : > { %4798 = shalt.err (!%p4795_p2)
}
  0xf5   : > { %s4799_s1 = scalar_lea.vmem %s597_s23, 32  ;;  %p4807_p10 = scmp.lt.s32.totalorder %s597_s23, %s597_s23 }
  0xf6   : > { %p4800_p5 = scmp.ne.s32.totalorder %s597_s23, %s4799_s1  ;;  %p4808_p11 = scmp.lt.s32.totalorder %s4799_s1, %s4799_s1 }
  0xf8   : > { %p4802_p7 = pnand %p4800_p5, %p5271_p8  ;;  %p4809_p12 = por %p4808_p11, %p4807_p10 }
  0xfa   : > { %p4803_p9 = pneg %p4802_p7 }
  0xfc   : > { %p4810_p4 = pnand %p4809_p12, %p4803_p9 }
  0xfe   : > { %4813 = shalt.err (!%p4810_p4)
}
  0xff   : > { %s6458_s18 = smov 1   ;;  %s6459_s25 = smov 16  }
 0x100   : > { %4388 = dma.hbm_to_vmem [thread:$0]  (!%p5257_p6), %s6457_s24, 32, %s597_s23, [#allocation11], %s6459_s25, %s6459_s25, %s6458_s18  }
 0x101   : > { %s6460_s8 = sld [smem:[#allocation47_spill]] }
 0x107   : > { %s4814_s27 = scalar_lea.hbm %s6460_s8, 32 }
 0x108   : > { %p4815_p13 = scmp.ne.s32.totalorder %s6460_s8, %s4814_s27  ;;  %p4821_p3 = scmp.lt.u32.totalorder %s4814_s27, %s6460_s8 }
 0x10a   : > { %p4817_p0 = pnand %p4815_p13, %p5271_p8 }
 0x10c   : > { %p4818_p1 = pneg %p4817_p0 }
 0x10e   : > { %p4823_p2 = pnand %p4821_p3, %p4818_p1 }
 0x110   : > { %4826 = shalt.err (!%p4823_p2)
}
 0x111   : > { %s4827_s20 = scalar_lea.vmem %s623_s2, 32  ;;  %p4835_p10 = scmp.lt.s32.totalorder %s623_s2, %s623_s2 }
 0x112   : > { %p4828_p5 = scmp.ne.s32.totalorder %s623_s2, %s4827_s20  ;;  %p4836_p11 = scmp.lt.s32.totalorder %s4827_s20, %s4827_s20 }
 0x114   : > { %p4830_p7 = pnand %p4828_p5, %p5271_p8  ;;  %p4837_p12 = por %p4836_p11, %p4835_p10 }
 0x116   : > { %p4831_p9 = pneg %p4830_p7 }
 0x118   : > { %p4838_p4 = pnand %p4837_p12, %p4831_p9 }
 0x11a   : > { %4841 = shalt.err (!%p4838_p4)
}
 0x11b   : > { %4394 = dma.hbm_to_vmem [thread:$0]  (!%p5257_p6), %s6460_s8, 32, %s623_s2, [#allocation14], %s6459_s25, %s6459_s25, %s6458_s18  }
 0x11c   : > { %s5093_s19 = smov [#allocation18]   ;;  %s5094_s27 = smov [#allocation21]  }
 0x11d   : > { %s653_s0 = sshll.u32 %s5093_s19, 4  ;;  %s674_s21 = sshll.u32 %s5094_s27, 4  ;;  %s654_s0 = int_to_ptr.vmem [resolvable:$true] %s653_s0  ;;  %s675_s21 = int_to_ptr.vmem [resolvable:$true] %s674_s21 }
 0x11e   : > { %s6461_s12 = sld [smem:[#allocation51_spill]] }
 0x124   : > { %s4842_s1 = scalar_lea.hbm %s6461_s12, 16 }
 0x125   : > { %p4843_p13 = scmp.ne.s32.totalorder %s6461_s12, %s4842_s1  ;;  %p4849_p3 = scmp.lt.u32.totalorder %s4842_s1, %s6461_s12 }
 0x127   : > { %p4845_p0 = pnand %p4843_p13, %p5271_p8 }
 0x129   : > { %p4846_p1 = pneg %p4845_p0 }
 0x12b   : > { %p4851_p2 = pnand %p4849_p3, %p4846_p1 }
 0x12d   : > { %4854 = shalt.err (!%p4851_p2)
}
 0x12e   : > { %s4855_s2 = scalar_lea.vmem %s654_s0, 16  ;;  %s4862_s18 = scalar_lea.vmem %s654_s0, 32 }
 0x12f   : > { %p4856_p5 = scmp.ne.s32.totalorder %s654_s0, %s4855_s2  ;;  %p4863_p10 = scmp.lt.s32.totalorder %s654_s0, %s654_s0 }
 0x130   : > { %p4864_p11 = scmp.lt.s32.totalorder %s4862_s18, %s4855_s2 }
 0x131   : > { %p4858_p7 = pnand %p4856_p5, %p5271_p8 }
 0x132   : > { %p4865_p12 = por %p4864_p11, %p4863_p10 }
 0x133   : > { %p4859_p9 = pneg %p4858_p7 }
 0x135   : > { %p4866_p4 = pnand %p4865_p12, %p4859_p9 }
 0x137   : > { %4869 = shalt.err (!%p4866_p4)
}
 0x138   : > { %4400 = dma.hbm_to_vmem [thread:$0]  (!%p5257_p6), %s6461_s12, 16, %s654_s0, [#allocation17]  }
 0x139   : > { %s4870_s19 = scalar_lea.hbm %s6385_s14, 256 }
 0x13a   : > { %p4871_p13 = scmp.ne.s32.totalorder %s6385_s14, %s4870_s19  ;;  %p4877_p3 = scmp.lt.u32.totalorder %s4870_s19, %s6385_s14 }
 0x13c   : > { %p4873_p0 = pnand %p4871_p13, %p5271_p8 }
 0x13e   : > { %p4874_p1 = pneg %p4873_p0 }
 0x140   : > { %p4879_p2 = pnand %p4877_p3, %p4874_p1 }
 0x142   : > { %4882 = shalt.err (!%p4879_p2)
}
 0x143   : > { %s4883_s20 = scalar_lea.vmem %s675_s21, 256  ;;  %p4891_p10 = scmp.lt.s32.totalorder %s675_s21, %s675_s21 }
 0x144   : > { %p4884_p5 = scmp.ne.s32.totalorder %s675_s21, %s4883_s20  ;;  %p4892_p11 = scmp.lt.s32.totalorder %s4883_s20, %s4883_s20 }
 0x146   : > { %p4886_p7 = pnand %p4884_p5, %p5271_p8  ;;  %p4893_p12 = por %p4892_p11, %p4891_p10 }
 0x148   : > { %p4887_p9 = pneg %p4886_p7 }
 0x14a   : > { %p4894_p4 = pnand %p4893_p12, %p4887_p9 }
 0x14c   : > { %4897 = shalt.err (!%p4894_p4)
}
 0x14d   : > { %s6462_s0 = smov 4   ;;  %s6463_s23 = smov 64  }
 0x14e   : > { %4406 = dma.hbm_to_vmem [thread:$0]  (!%p5257_p6), %s6385_s14, 256, %s675_s21, [#allocation20], %s6463_s23, %s6463_s23, %s6462_s0  }
 0x14f   : > { %s5095_s4 = smov [#allocation24]   ;;  %s5096_s7 = smov [#allocation25]  }
 0x150   : > { %s698_s25 = sshll.u32 %s5095_s4, 4  ;;  %s712_s9 = sshll.u32 %s5096_s7, 4  ;;  %s699_s25 = int_to_ptr.vmem [resolvable:$true] %s698_s25  ;;  %s713_s9 = int_to_ptr.vmem [resolvable:$true] %s712_s9 }
 0x151   : > { %s4898_s10 = scalar_lea.hbm %s6387_s16, 256 }
 0x152   : > { %p4899_p13 = scmp.ne.s32.totalorder %s6387_s16, %s4898_s10  ;;  %p4905_p3 = scmp.lt.u32.totalorder %s4898_s10, %s6387_s16 }
 0x154   : > { %p4901_p0 = pnand %p4899_p13, %p5271_p8 }
 0x156   : > { %p4902_p1 = pneg %p4901_p0 }
 0x158   : > { %p4907_p2 = pnand %p4905_p3, %p4902_p1 }
 0x15a   : > { %4910 = shalt.err (!%p4907_p2)
}
 0x15b   : > { %s4911_s21 = scalar_lea.vmem %s699_s25, 256  ;;  %p4919_p10 = scmp.lt.s32.totalorder %s699_s25, %s699_s25 }
 0x15c   : > { %p4912_p5 = scmp.ne.s32.totalorder %s699_s25, %s4911_s21  ;;  %p4920_p11 = scmp.lt.s32.totalorder %s4911_s21, %s4911_s21 }
 0x15e   : > { %p4914_p7 = pnand %p4912_p5, %p5271_p8  ;;  %p4921_p12 = por %p4920_p11, %p4919_p10 }
 0x160   : > { %p4915_p9 = pneg %p4914_p7 }
 0x162   : > { %p4922_p4 = pnand %p4921_p12, %p4915_p9 }
 0x164   : > { %4925 = shalt.err (!%p4922_p4)
}
 0x165   : > { %4412 = dma.hbm_to_vmem [thread:$0]  (!%p5257_p6), %s6387_s16, 256, %s699_s25, [#allocation23], %s6463_s23, %s6463_s23, %s6462_s0  }
 0x166   : > { %s4926_s27 = scalar_lea.hbm %s6388_s17, 16 }
 0x167   : > { %p4927_p13 = scmp.ne.s32.totalorder %s6388_s17, %s4926_s27  ;;  %p4933_p3 = scmp.lt.u32.totalorder %s4926_s27, %s6388_s17 }
 0x169   : > { %p4929_p0 = pnand %p4927_p13, %p5271_p8 }
 0x16b   : > { %p4930_p1 = pneg %p4929_p0 }
 0x16d   : > { %p4935_p2 = pnand %p4933_p3, %p4930_p1 }
 0x16f   : > { %4938 = shalt.err (!%p4935_p2)
}
 0x170   : > { %s4939_s2 = scalar_lea.vmem %s713_s9, 16  ;;  %s4946_s0 = scalar_lea.vmem %s713_s9, 32 }
 0x171   : > { %p4940_p5 = scmp.ne.s32.totalorder %s713_s9, %s4939_s2  ;;  %p4947_p10 = scmp.lt.s32.totalorder %s713_s9, %s713_s9 }
 0x172   : > { %p4948_p11 = scmp.lt.s32.totalorder %s4946_s0, %s4939_s2 }
 0x173   : > { %p4942_p7 = pnand %p4940_p5, %p5271_p8 }
 0x174   : > { %p4949_p12 = por %p4948_p11, %p4947_p10 }
 0x175   : > { %p4943_p9 = pneg %p4942_p7 }
 0x177   : > { %p4950_p4 = pnand %p4949_p12, %p4943_p9 }
 0x179   : > { %4953 = shalt.err (!%p4950_p4)
}
 0x17a   : > { %s6464_s5 = sld [smem:[#allocation37_spill]]  ;;  %s3690_s21 = sadd.s32 4294967294, %s5078_s30  }
 0x17b   : > { %4415 = dma.hbm_to_vmem [thread:$0]  (!%p5257_p6), %s6388_s17, 16, %s713_s9, [#allocation26]  }
 0x17c   : > { %s5539_s6 = sadd.s32 1, %s5078_s30   ;;  %s52_s18 = sadd.s32 1, %s5074_s29 }
 0x17d   : > { %s49_s4 = ssub.s32 %s5078_s30, %s5539_s6  ;;  %p59_p8 = scmp.ne.s32.totalorder %s5074_s29, %s5070_s28 }
 0x17e   : > { %p50_p13 = scmp.eq.s32.totalorder %s49_s4, 0  ;;  %p60_p0 = scmp.eq.s32.totalorder %s5078_s30, 0 }
 0x17f   : > { %p65_p1 = scmp.ne.s32.totalorder %s5070_s28, %s5066_s3  ;;  %p536_p9 = scmp.eq.s32.totalorder %s3690_s21, 1 }
 0x180   : > { %p530_p3 = scmp.eq.s32.totalorder %s6464_s5, 1  ;;  %p61_p2 = por %p60_p0, %p59_p8 }
 0x181   : > { %s5551_s7 = scalar_select %p50_p13, %s5074_s29, %s52_s18  }
 0x182   : > { %p6465_p5 = scmp.eq.s32.totalorder %s6464_s5, 0  ;;  %p5559_p6 = por %p530_p3, %p59_p8 }
 0x183   : > { %p4437_p10 = scmp.lt.s32.totalorder %s5078_s30, 2  ;;  %s735_s27 = sand.u32 1, %s5074_s29  }
 0x184   : > { %p5555_p7 = por %p6465_p5, %p65_p1  ;;  %p5565_p11 = por %p536_p9, %p65_p1 }
 0x185   : > { %s6467_s9 = scalar_select %p5559_p6, 1, 0 }
 0x186   : > { %s6468_s10 = scalar_select %p5565_p11, 1, 0 }
 0x187   : > { %s3706_s26 = sshll.u32 %s735_s27, 3  ;;  %s3707_s1 = sshll.u32 %s5078_s30, 7 }
 0x188   : > { %s6469_s0 = sld [smem:[#allocation39_spill]]  ;;  %s739_s25 = scalar_lea.vmem [#allocation4], %s3706_s26 }
 0x189   : > { %s746_s5 = sshll.u32 %s739_s25, 4  ;;  %p5575_p12 = pnand %p4437_p10, %p61_p2  ;;  %s5579_s5 = int_to_ptr.vmem [resolvable:$true] %s746_s5 }
 0x18a   : > { %s736_s18 = scalar_lea.sflag [#allocation5], %s735_s27 }
 0x18b   : > { %p4956_p8 = pneg %p5575_p12 }
 0x18e   : > { %s5573_s23 = scalar_lea.hbm %s6469_s0, %s3707_s1  ;;  %s4959_s20 = scalar_lea.hbm %s6469_s0, 256 }
 0x18f   : > { %s4954_s4 = scalar_lea.hbm %s5573_s23, 128  ;;  %p4960_p1 = scmp.lt.u32.totalorder %s5573_s23, %s6469_s0 }
 0x190   : > { %p4955_p4 = scmp.ne.s32.totalorder %s5573_s23, %s4954_s4  ;;  %p4961_p3 = scmp.lt.u32.totalorder %s4959_s20, %s4954_s4 }
 0x191   : > { %p4963_p5 = scmp.lt.u32.totalorder %s4954_s4, %s5573_s23 }
 0x192   : > { %p4957_p13 = pnand %p4956_p8, %p4955_p4  ;;  %p4962_p2 = por %p4961_p3, %p4960_p1 }
 0x194   : > { %p4958_p0 = pneg %p4957_p13  ;;  %p4964_p9 = por %p4963_p5, %p4962_p2 }
 0x196   : > { %p4965_p10 = pnand %p4964_p9, %p4958_p0 }
 0x198   : > { %4968 = shalt.err (!%p4965_p10)
}
 0x199   : > { %s4969_s27 = scalar_lea.vmem %s5579_s5, 128  ;;  %s5097_s1 = smov [#allocation4]  }
 0x19a   : > { %p4970_p4 = scmp.ne.s32.totalorder %s5579_s5, %s4969_s27  ;;  %s4974_s26 = sshll.u32 %s5097_s1, 4  ;;  %s4975_s26 = int_to_ptr.vmem [resolvable:$false] %s4974_s26 }
 0x19b   : > { %s4976_s2 = scalar_lea.vmem %s4975_s26, 256  ;;  %p4977_p6 = scmp.lt.s32.totalorder %s5579_s5, %s4975_s26 }
 0x19c   : > { %p4972_p13 = pnand %p4970_p4, %p4956_p8  ;;  %p4978_p1 = scmp.lt.s32.totalorder %s4976_s2, %s4969_s27 }
 0x19e   : > { %p4973_p11 = pneg %p4972_p13  ;;  %p4979_p3 = por %p4978_p1, %p4977_p6 }
 0x1a0   : > { %p4980_p2 = pnand %p4979_p3, %p4973_p11 }
 0x1a2   : > { %4983 = shalt.err (!%p4980_p2)
}
 0x1a3   : > { %4419 = dma.hbm_to_vmem [thread:$0]  (!%p5575_p12), %s5573_s23, 128, %s5579_s5, %s736_s18  }
 0x1a4   : > { %s6471_s4 = sld [smem:[#allocation38_spill]] }
 0x1aa   : > { %p6472_p0 = scmp.ne.s32.totalorder %s6471_s4, 0 }
 0x1ab   : > { %s5609_s20 = sand.u32 (!%p6472_p0), 1, %s5070_s28  }
 0x1ac   : > { %755 = sbr.rel (%p6472_p0) target bundleno = 4007 (0xfa7), region = 108  ;;  %s6423_s25 = sshll.u32 (!%p6472_p0), %s5609_s20, 3 }
 0x1ad   : > { %s758_s27 = scalar_lea.sflag (!%p6472_p0), [#allocation5], %s5609_s20  ;;  %s5615_s1 = scalar_lea.vmem (!%p6472_p0), [#allocation4], %s6423_s25 }
 0x1b3   : > { %5029 = dma.done.wait (%p5555_p7), %s758_s27, 128  }
 0x1b4   : > { %5031 = vsyncadd (%p5555_p7), %s758_s27, 4294967168  ;;  %s6473_s23 = sld [smem:[#allocation37_spill]] }
 0x1ba   : > { %p6474_p6 = scmp.eq.s32.totalorder %s6473_s23, 0 }
 0x1bc   : > { %5033 = dma.done.wait (%p6474_p6), [#allocation8], 32   ;;  %p6475_p11 = pmov %p6474_p6 }
 0x1bd   : > { %p6476_p12 = pmov %p6474_p6 }
 0x1be   : > { %5035 = vsyncadd (%p6475_p11), [#allocation8], 4294967264 }
 0x1bf   : > { %5037 = dma.done.wait (%p6476_p12), [#allocation11], 64   ;;  %p6477_p8 = pmov %p6474_p6 }
 0x1c0   : > { %p6478_p5 = pmov %p6474_p6 }
 0x1c1   : > { %5039 = vsyncadd (%p6477_p8), [#allocation11], 4294967232 }
 0x1c2   : > { %5041 = dma.done.wait (%p6478_p5), [#allocation14], 544   ;;  %p6479_p9 = pmov %p6478_p5 }
 0x1c3   : > { %p6480_p7 = pmov %p6478_p5 }
 0x1c4   : > { %5043 = vsyncadd (%p6479_p9), [#allocation14], 4294966752 }
 0x1c5   : > { %5045 = dma.done.wait (%p6480_p7), [#allocation17], 32   ;;  %p6481_p10 = pmov %p6478_p5 }
 0x1c6   : > { %p6482_p4 = pmov %p6478_p5 }
 0x1c7   : > { %5047 = vsyncadd (%p6481_p10), [#allocation17], 4294967264 }
 0x1c8   : > { %5049 = dma.done.wait (%p6482_p4), [#allocation20], 272   ;;  %p6483_p13 = pmov %p6482_p4 }
 0x1c9   : > { %p6484_p1 = pmov %p6482_p4 }
 0x1ca   : > { %5051 = vsyncadd (%p6483_p13), [#allocation20], 4294967024 }
 0x1cb   : > { %5053 = dma.done.wait (%p6484_p1), [#allocation23], 272   ;;  %p6485_p3 = pmov %p6484_p1 }
 0x1cc   : > { %p6486_p2 = pmov %p6484_p1 }
 0x1cd   : > { %5055 = vsyncadd (%p6485_p3), [#allocation23], 4294967024 }
 0x1ce   : > { %5057 = dma.done.wait (%p6486_p2), [#allocation26], 16   ;;  %p6487_p0 = pmov %p6484_p1 }
 0x1cf   : > { %vm878_vm0 = vcmask 261120   ;;  %v875_v0 = vld [vmem:[%s5615_s1] sm:$0xff]  ;;  %s6488_s21 = sld [smem:[#allocation42_spill]]  ;;  %s6489_s2 = sld [smem:[#allocation44_spill]]  ;;  %v5098_v9 = vmov 0.0   ;;  %vm5099_vm1 = vmmov 0   ;;  %v924_v63 = vlaneseq }
 0x1d0   : > { %5059 = vsyncadd (%p6487_p0), [#allocation26], 4294967280  ;;  %v879_v1 = vsel %vm878_vm0, %v875_v0, 0.0  ;;  %4034 = vmatprep.subr.bf16.mxu0 %v5098_v9  ;;  %4042 = vmatprep.subr.bf16.mxu1 %v5098_v9  ;;  %s6490_s25 = sld [smem:[#allocation48_spill]]  ;;  %v3724_v17 = vld [vmem:[#allocation7] ss:$0 sm:$0xff] }
 0x1d1   : > { %880 = vadd.xlane.f32.xlu0 %v879_v1  ;;  %4038 = vmatprep.mubr.msk.bf16.mxu0 %vm5099_vm1, %v5098_v9  ;;  %v3725_v19 = vld [vmem:[#allocation9] ss:$0 sm:$0xff]  ;;  %v4509_v22 = vld [vmem:[#allocation13] sm:$0xff]   ;;  %v4510_v26 = vld [vmem:[#allocation13 + $0x8] sm:$0xff]   ;;  %vm1189_vm2 = vcmask 523264   ;;  %v5100_v36 = vmov 0  }
 0x1d2   : > { %4046 = vmatprep.mubr.msk.bf16.mxu1 %vm5099_vm1, %v5098_v9  ;;  %3109 = vst.msk [vmem:[#allocation3] sm:$0xff] %vm1189_vm2, %v5098_v9  ;;  %3110 = vst.msk [vmem:[#allocation3 + $0x8] sm:$0xff] %vm1189_vm2, %v5098_v9  ;;  %v3726_v37 = vld [vmem:[#allocation10] ss:$0 sm:$0xff]  ;;  %v3730_v38 = vld [vmem:[#allocation12] ss:$0 sm:$0xff] }
 0x1d3   : > { %3111 = vst.msk [vmem:[#allocation3 + $0x18] sm:$0xff] %vm1189_vm2, %v5098_v9  ;;  %3112 = vst.msk [vmem:[#allocation3 + $0x20] sm:$0xff] %vm1189_vm2, %v5098_v9  ;;  %v3734_v57 = vld [vmem:[#allocation15] ss:$0 sm:$0xff]  ;;  %vm1547_vm3 = vcmask 1043456   ;;  %vm1474_vm5 = vcmask 64512  }
 0x1d4   : > { %s6493_s26 = sld [smem:[#allocation49_spill]]  ;;  %s5101_s5 = smov 64   ;;  %vm2826_vm7 = vcmask 1048064  }
 0x1d5   : > { %v4505_v7 = vld [vmem:[%s6488_s21] sm:$0xff]   ;;  %v4507_v10 = vld [vmem:[%s6488_s21 + $0x8] sm:$0xff]   ;;  %s6494_s4 = sld [smem:[#allocation55_spill]]  ;;  %s6495_s27 = sld [smem:[#allocation53_spill]] }
 0x1d6   : > { %v4506_v8 = vld [vmem:[%s6489_s2] sm:$0xff]   ;;  %4035 = vmatpush3.bf16.msra.mxu0 %v4505_v7  ;;  %v4508_v11 = vld [vmem:[%s6489_s2 + $0x8] sm:$0xff]   ;;  %v5720_v30 = vld [vmem:[%s6490_s25 + $0x30] ss:$12 sps:$4 sm:$0xff]   ;;  %s6498_s18 = sshll.u32 %s5609_s20, 3  ;;  %s6499_s12 = sld [smem:[#allocation57_spill]] }
 0x1d7   : > { %4043 = vmatpush3.bf16.msra.mxu1 %v4506_v8  ;;  %4036 = vmatprep.subr.bf16.mxu0 %v5098_v9  ;;  %v5676_v12 = vld [vmem:[%s6490_s25 + $0x4] ss:$12 sps:$4 sm:$0xff]   ;;  %v5684_v24 = vld [vmem:[%s6490_s25] ss:$12 sps:$4 sm:$0xff]   ;;  %v5689_v25 = vld [vmem:[%s6490_s25 + $0x1c] ss:$12 sps:$4 sm:$0xff]  }
 0x1d8   : > { %4044 = vmatprep.subr.bf16.mxu1 %v5098_v9  ;;  %v5702_v27 = vld [vmem:[%s6490_s25 + $0x18] ss:$12 sps:$4 sm:$0xff]   ;;  %v5708_v28 = vld [vmem:[%s6490_s25 + $0x34] ss:$12 sps:$4 sm:$0xff]   ;;  %v5757_v35 = vld [vmem:[%s6490_s25 + $0x50] ss:$12 sps:$4 sm:$0xff]  }
 0x1d9   : > { %v5713_v29 = vld [vmem:[%s6490_s25 + $0x8] ss:$12 sps:$4 sm:$0xff]   ;;  %v5729_v31 = vld [vmem:[%s6490_s25 + $0x20] ss:$12 sps:$4 sm:$0xff]   ;;  %v5739_v32 = vld [vmem:[%s6490_s25 + $0x38] ss:$12 sps:$4 sm:$0xff]  }
 0x1da   : > { %4037 = vmatpush3.bf16.msra.mxu0 %v4507_v10  ;;  %v5747_v33 = vld [vmem:[%s6490_s25 + $0x4c] ss:$12 sps:$4 sm:$0xff]   ;;  %v5752_v34 = vld [vmem:[%s6490_s25 + $0x48] ss:$12 sps:$4 sm:$0xff]   ;;  %s873_s8 = scalar_lea.vmem [#allocation27], %s6498_s18  ;;  %p6500_p11 = scmp.ne.s32.totalorder %s6467_s9, 0 }
 0x1db   : > { %4045 = vmatpush3.bf16.msra.mxu1 %v4508_v11  ;;  %4050 = vmatprep.subr.bf16.mxu0 %v5098_v9  ;;  %s5102_s0 = smov [#allocation27]  }
 0x1dc   : > { %1193 = vmatprep.subr.bf16.mxu1 %v5676_v12 }
 0x25e   : > { %v881_v2 = vpop.xlane.xlu0 %880 }
 0x25f   : > { %v883_v3 = vmul.f32 0.03125, %v881_v2 }
 0x261   : > { %v884_v4 = vsub.f32 %v875_v0, %v883_v3  ;;  %v925_v0 = vand.u32 127, %v924_v63 }
 0x263   : > { %v885_v5 = vmul.f32 %v884_v4, %v884_v4  ;;  %v5802_v1 = vadd.s32 256, %v925_v0 }
 0x265   : > { %v886_v6 = vsel %vm878_vm0, %v885_v5, 0.0  ;;  %vm930_vm4 = vcmp.lt.s32.totalorder %v5802_v1, 266 }
 0x266   : > { %887 = vadd.xlane.f32.xlu0 %v886_v6  ;;  %vm5900_vm6 = vmpackc.low %vm930_vm4, %vm930_vm4 }
 0x2f3   : > { %v888_v13 = vpop.xlane.xlu0 %887 }
 0x2f4   : > { %v889_v14 = vmul.f32 0.03125, %v888_v13 }
 0x2f6   : > { %v890_v15 = vadd.f32 1e-05, %v889_v14 }
 0x2f8   : > { %4549 = vrsqrt.f32 %v890_v15 }
 0x302   : > { %v4550_v16 = vpop.eup %4549 }
 0x303   : > { %v892_v18 = vmul.f32 %v4550_v16, %v884_v4 }
 0x305   : > { %v899_v20 = vmul.f32 %v3724_v17, %v892_v18 }
 0x307   : > { %v906_v21 = vadd.f32 %v3725_v19, %v899_v20 }
 0x309   : > { %v5679_v23 = vpack.c.bf16 %v906_v21, %v906_v21 }
 0x30b   : > { %4039 = vmatmul.mubr.msk.bf16.vlgmr.msra.gmra.mrb[0].mxu0 %vm878_vm0, %v5679_v23  ;;  %4047 = vmatmul.mubr.msk.bf16.vlgmr.msra.gmra.mrb[0].mxu1 %vm878_vm0, %v5679_v23 }
 0x30c   : > { %4051 = vmatpush3.bf16.msra.mxu0 %v4509_v22  ;;  %4054 = vmatprep.mubr.msk.bf16.mxu0 %vm5099_vm1, %v5098_v9 }
 0x30d   : > { %4052 = vmatprep.subr.bf16.mxu0 %v5098_v9  ;;  %1194 = vmatpush1.bf16.msra.mxu1 %v5684_v24 }
 0x30e   : > { %1195 = vmatprep.subr.bf16.mxu1 %v5689_v25  ;;  %1225 = vmatprep.mubr.bf16.mxu1 %v5100_v36 }
 0x310   : > { %4053 = vmatpush3.bf16.msra.mxu0 %v4510_v26 }
 0x311   : > { %4058 = vmatprep.subr.bf16.mxu0 %v5098_v9  ;;  %1196 = vmatpush1.bf16.msra.mxu1 %v5702_v27 }
 0x312   : > { %1197 = vmatprep.subr.bf16.mxu1 %v5708_v28 }
 0x313   : > { %4055 = vmatmul.mubr.msk.bf16.vlgmr.msra.gmra.mrb[4].mxu0 %vm878_vm0, %v5679_v23 }
 0x314   : > { %4059 = vmatpush3.bf16.msra.mxu0 %v5713_v29  ;;  %4066 = vmatprep.mubr.msk.bf16.mxu0 %vm5099_vm1, %v5098_v9 }
 0x315   : > { %4060 = vmatprep.subr.bf16.mxu0 %v5098_v9  ;;  %1198 = vmatpush1.bf16.msra.mxu1 %v5720_v30 }
 0x316   : > { %1199 = vmatprep.subr.bf16.mxu1 %v5747_v33 }
 0x318   : > { %4061 = vmatpush3.bf16.msra.mxu0 %v5729_v31 }
 0x319   : > { %4062 = vmatprep.subr.bf16.mxu0 %v5098_v9  ;;  %1200 = vmatpush1.bf16.msra.mxu1 %v5752_v34 }
 0x31a   : > { %1279 = vmatprep.subr.bf16.mxu1 %v5676_v12 }
 0x31c   : > { %4063 = vmatpush3.bf16.msra.mxu0 %v5739_v32 }
 0x31d   : > { %4064 = vmatprep.subr.bf16.mxu0 %v5098_v9 }
 0x320   : > { %4065 = vmatpush3.bf16.msra.mxu0 %v5757_v35 }
 0x321   : > { %4070 = vmatprep.subr.bf16.mxu0 %v5098_v9 }
 0x3de   : > { %v991_v39 = vpop.f32.mrb[0].mxu0  ;;  %v1054_v40 = vpop.f32.mrb[0].mxu1 }
 0x3df   : > { %v5773_v41 = vadd.f32 %v3726_v37, %v991_v39  ;;  %v1055_v42 = vadd.f32 %v3730_v38, %v1054_v40  ;;  %v4040_v43 = vpop.f32.mrb[1].mxu0  ;;  %v4048_v44 = vpop.f32.mrb[1].mxu1 }
 0x3e0   : > { %v994_v45 = vpop.f32.mrb[2].mxu0  ;;  %v1057_v46 = vpop.f32.mrb[2].mxu1 }
 0x3e1   : > { %v1123_v47 = vmul.f32 0.35355338, %v5773_v41  ;;  %v4041_v48 = vpop.f32.mrb[3].mxu0  ;;  %v4049_v49 = vpop.f32.mrb[3].mxu1  ;;  %v1365_v50 = vmul.f32 %v1055_v42, %v1055_v42  ;;  %v1274_v59 = vmul.f32 0.35355338, %v1055_v42 }
 0x3e3   : > { %v1124_v51 = vpack.c.bf16 %v1123_v47, %v1123_v47  ;;  %v1366_v52 = vsel %vm1189_vm2, %v1365_v50, 0.0  ;;  %v1275_v61 = vpack.c.bf16 %v1274_v59, %v1274_v59 }
 0x3e4   : > { %1367 = vadd.xlane.f32.xlu1 %v1366_v52 }
 0x3e5   : > { %3750 = vmatmul.mubr.msk.bf16.vlgmr.msra.gmra.mrb[4].mxu1 %vm1189_vm2, %v1124_v51  ;;  %4067 = vmatmul.mubr.msk.bf16.vlgmr.msra.gmra.mrb[8].mxu0 %vm1189_vm2, %v1124_v51 }
 0x3e6   : > { %1280 = vmatpush1.bf16.msra.mxu1 %v5684_v24  ;;  %4071 = vmatpush3.bf16.msra.mxu0 %v5713_v29  ;;  %v1117_v53 = vpop.f32.mrb[4].mxu0 }
 0x3e7   : > { %v4056_v54 = vpop.f32.mrb[5].mxu0  ;;  %1281 = vmatprep.subr.bf16.mxu1 %v5689_v25  ;;  %4072 = vmatprep.subr.bf16.mxu0 %v5098_v9  ;;  %v1118_v58 = vadd.f32 %v3734_v57, %v1117_v53 }
 0x3e8   : > { %v1120_v55 = vpop.f32.mrb[6].mxu0  ;;  %1311 = vmatprep.mubr.bf16.mxu1 %v5100_v36  ;;  %4078 = vmatprep.mubr.msk.bf16.mxu0 %vm5099_vm1, %v5098_v9 }
 0x3e9   : > { %v4057_v56 = vpop.f32.mrb[7].mxu0  ;;  %v1425_v60 = vpack.c.bf16 %v1118_v58, %v1118_v58  ;;  %v1360_v58 = vmul.f32 %v5773_v41, %v5773_v41 }
 0x3ea   : > { %1282 = vmatpush1.bf16.msra.mxu1 %v5702_v27  ;;  %4073 = vmatpush3.bf16.msra.mxu0 %v5729_v31 }
 0x3eb   : > { %1283 = vmatprep.subr.bf16.mxu1 %v5708_v28  ;;  %4074 = vmatprep.subr.bf16.mxu0 %v5098_v9  ;;  %v1549_v62 = vsel %vm1547_vm3, %v1425_v60, 0  ;;  %v1361_v59 = vsel %vm1189_vm2, %v1360_v58, 0.0 }
 0x3ee   : > { %1284 = vmatpush1.bf16.msra.mxu1 %v5720_v30  ;;  %4075 = vmatpush3.bf16.msra.mxu0 %v5739_v32 }
 0x3ef   : > { %1285 = vmatprep.subr.bf16.mxu1 %v5747_v33  ;;  %4076 = vmatprep.subr.bf16.mxu0 %v5098_v9 }
 0x3f2   : > { %1286 = vmatpush1.bf16.msra.mxu1 %v5752_v34  ;;  %4077 = vmatpush3.bf16.msra.mxu0 %v5757_v35 }
 0x3f3   : > { %4318 = vmatprep.subr.msk.bf16.mxu1 %vm1547_vm3, %v1425_v60 }
 0x3f5   : > { %3752 = vmatmul.mubr.msk.bf16.vlgmr.msra.gmra.mrb[8].mxu1 %vm1189_vm2, %v1275_v61  ;;  %4079 = vmatmul.mubr.msk.bf16.vlgmr.msra.gmra.mrb[12].mxu0 %vm1189_vm2, %v1275_v61 }
 0x3f6   : > { %4083 = vmatpush3.bf16.msra.mxu1 %v1549_v62 }
 0x3f7   : > { %2112 = vmatprep.subr.bf16.mxu1 %v5676_v12 }
 0x471   : > { %v1368_v15 = vpop.xlane.xlu1 %1367 }
 0x472   : > { %v1369_v16 = vmul.f32 0.0625, %v1368_v15 }
 0x4b8   : > { %v5804_v2 = vpop.f32.mrb[4].mxu1  ;;  %v5807_v3 = vpop.f32.mrb[8].mxu0 }
 0x4b9   : > { %v5809_v4 = vpop.f32.mrb[5].mxu1  ;;  %v4068_v5 = vpop.f32.mrb[9].mxu0  ;;  %v1378_v10 = vsel %vm930_vm4, %v5807_v3, -1e+30 }
 0x4ba   : > { %v1379_v6 = vmax.f32 %v5804_v2, %v5809_v4  ;;  %v1231_v7 = vpop.f32.mrb[6].mxu1  ;;  %v1271_v8 = vpop.f32.mrb[10].mxu0 }
 0x4bb   : > { %v1232_v11 = vpop.f32.mrb[7].mxu1  ;;  %v4069_v13 = vpop.f32.mrb[11].mxu0 }
 0x4bc   : > { %v1380_v14 = vmax.f32 %v1379_v6, %v1378_v10 }
 0x4c8   : > { %v1313_v17 = vpop.f32.mrb[8].mxu1  ;;  %v1354_v18 = vpop.f32.mrb[12].mxu0 }
 0x4c9   : > { %v1404_v19 = vsub.f32 %v1313_v17, %v1369_v16  ;;  %v1315_v20 = vpop.f32.mrb[9].mxu1  ;;  %v4080_v21 = vpop.f32.mrb[13].mxu0  ;;  %v1406_v46 = vsub.f32 %v1354_v18, %v1369_v16 }
 0x4ca   : > { %v1405_v22 = vsub.f32 %v1315_v20, %v1369_v16  ;;  %v1317_v26 = vpop.f32.mrb[10].mxu1  ;;  %v1357_v37 = vpop.f32.mrb[14].mxu0 }
 0x4cb   : > { %v1407_v38 = vadd.f32 0.0001, %v1404_v19  ;;  %v1318_v39 = vpop.f32.mrb[11].mxu1  ;;  %v4081_v40 = vpop.f32.mrb[15].mxu0  ;;  %v1409_v51 = vadd.f32 0.0001, %v1406_v46 }
 0x4cc   : > { %v1408_v42 = vadd.f32 0.0001, %v1405_v22 }
 0x4cd   : > { %v1410_v43 = vmul.f32 1.442695, %v1407_v38  ;;  %v1414_v53 = vmul.f32 1.442695, %v1409_v51 }
 0x4ce   : > { %v1412_v44 = vmul.f32 1.442695, %v1408_v42 }
 0x4cf   : > { %4551 = vpow2.f32 %v1410_v43 }
 0x4d0   : > { %4553 = vpow2.f32 %v1412_v44 }
 0x4d1   : > { %4555 = vpow2.f32 %v1414_v53 }
 0x4d9   : > { %v4552_v45 = vpop.eup %4551 }
 0x4da   : > { %v5816_v47 = vmul.f32 0.061313935, %v4552_v45  ;;  %v4554_v48 = vpop.eup %4553 }
 0x4db   : > { %v5818_v49 = vmul.f32 0.061313935, %v4554_v48  ;;  %v4556_v54 = vpop.eup %4555 }
 0x4dc   : > { %v1422_v50 = vpack.c.bf16 %v5816_v47, %v5816_v47  ;;  %v1418_v55 = vmul.f32 0.061313935, %v4556_v54  ;;  %v1776_v43 = vrot.slane %v5816_v47, 4 }
 0x4dd   : > { %v1423_v52 = vpack.c.bf16 %v5818_v49, %v5818_v49  ;;  %v1782_v44 = vrot.slane %v5818_v49, 4 }
 0x4de   : > { %1426 = vxpose.xlu1.c.b16.start.end [1/1] (short) %v1422_v50, 128  ;;  %v5826_v56 = vsel %vm930_vm4, %v1418_v55, 0.0  ;;  %v1777_v51 = vadd.f32 %v1776_v43, %v5816_v47 }
 0x4df   : > { %1442 = vxpose.xlu0.c.b16.start.end [1/1] (short) %v1423_v52, 128  ;;  %v1424_v57 = vpack.c.bf16 %v5826_v56, %v5826_v56  ;;  %v1783_v52 = vadd.f32 %v1782_v44, %v5818_v49 }
 0x4e0   : > { %v1778_v58 = vrot.slane %v1777_v51, 2 }
 0x4fb   : > { %1458 = vxpose.xlu1.c.b16.start.end [1/1] (short) %v1424_v57, 128 }
 0x508   : > { %1362 = vadd.xlane.f32.xlu0 %v1361_v59  ;;  %v1784_v59 = vrot.slane %v1783_v52, 2 }
 0x524   : > { %1381 = vmax.xlane.f32.xlu1 %v1380_v14 }
 0x544   : > { %v1434_v60 = vpop.trf.xlu1 }
 0x545   : > { %4084 = vmatprep.mubr.msk.bf16.mxu1 %vm1474_vm5, %v1434_v60  ;;  %v1450_v0 = vpop.trf.xlu0  ;;  %v1779_v60 = vadd.f32 %v1778_v58, %v1777_v51 }
 0x548   : > { %v1435_v61 = vpop.trf.xlu1 }
 0x549   : > { %4085 = vmatmul.mubr.msk.bf16.vlgmr.msra.gmra.mrb[12].mxu1 %vm1474_vm5, %v1435_v61  ;;  %v1451_v7 = vpop.trf.xlu0  ;;  %v1785_v61 = vadd.f32 %v1784_v59, %v1783_v52 }
 0x54a   : > { %2113 = vmatpush1.bf16.msra.mxu1 %v5684_v24 }
 0x54b   : > { %2114 = vmatprep.subr.bf16.mxu1 %v5689_v25 }
 0x54c   : > { %v1436_v62 = vpop.trf.xlu1 }
 0x54d   : > { %4088 = vmatprep.mubr.msk.bf16.mxu1 %vm1474_vm5, %v1436_v62  ;;  %v1452_v10 = vpop.trf.xlu0 }
 0x54e   : > { %2115 = vmatpush1.bf16.msra.mxu1 %v5702_v27 }
 0x54f   : > { %2116 = vmatprep.subr.bf16.mxu1 %v5708_v28 }
 0x550   : > { %v1437_v41 = vpop.trf.xlu1 }
 0x551   : > { %4089 = vmatmul.mubr.msk.bf16.gmra.mrb[16].mxu1 %vm1474_vm5, %v1437_v41  ;;  %v1453_v13 = vpop.trf.xlu0  ;;  %v1780_v41 = vrot.slane %v1779_v60, 1 }
 0x552   : > { %2117 = vmatpush1.bf16.msra.mxu1 %v5720_v30 }
 0x553   : > { %2118 = vmatprep.subr.bf16.mxu1 %v5747_v33 }
 0x554   : > { %v1438_v5 = vpop.trf.xlu1 }
 0x555   : > { %4092 = vmatprep.mubr.msk.bf16.mxu1 %vm1474_vm5, %v1438_v5  ;;  %v1454_v14 = vpop.trf.xlu0  ;;  %v1786_v5 = vrot.slane %v1785_v61, 1 }
 0x556   : > { %2119 = vmatpush1.bf16.msra.mxu1 %v5752_v34 }
 0x557   : > { %2198 = vmatprep.subr.bf16.mxu1 %v5676_v12 }
 0x558   : > { %v1439_v6 = vpop.trf.xlu1 }
 0x559   : > { %4093 = vmatmul.mubr.msk.bf16.gmra.mrb[20].mxu1 %vm1474_vm5, %v1439_v6  ;;  %v1455_v12 = vpop.trf.xlu0 }
 0x55c   : > { %v1440_v8 = vpop.trf.xlu1 }
 0x55d   : > { %4096 = vmatprep.mubr.msk.bf16.mxu1 %vm1474_vm5, %v1440_v8  ;;  %v1456_v16 = vpop.trf.xlu0 }
 0x560   : > { %v1441_v11 = vpop.trf.xlu1 }
 0x561   : > { %4097 = vmatmul.mubr.msk.bf16.gmra.mrb[24].mxu1 %vm1474_vm5, %v1441_v11  ;;  %v1457_v18 = vpop.trf.xlu0 }
 0x562   : > { %4100 = vmatprep.mubr.msk.bf16.mxu1 %vm1474_vm5, %v1450_v0 }
 0x564   : > { %v1466_v15 = vpop.trf.xlu1 }
 0x568   : > { %v1467_v17 = vpop.trf.xlu1 }
 0x569   : > { %4101 = vmatmul.mubr.msk.bf16.gmra.mrb[28].mxu1 %vm1474_vm5, %v1451_v7 }
 0x56a   : > { %4104 = vmatprep.mubr.msk.bf16.mxu1 %vm1474_vm5, %v1452_v10 }
 0x56c   : > { %v1468_v19 = vpop.trf.xlu1 }
 0x570   : > { %v1469_v20 = vpop.trf.xlu1 }
 0x571   : > { %4105 = vmatmul.mubr.msk.bf16.gmra.mrb[32].mxu1 %vm1474_vm5, %v1453_v13 }
 0x572   : > { %4108 = vmatprep.mubr.msk.bf16.mxu1 %vm1474_vm5, %v1454_v14  ;;  %v1787_v14 = vadd.f32 %v1786_v5, %v1785_v61 }
 0x574   : > { %v1470_v21 = vpop.trf.xlu1 }
 0x578   : > { %v1471_v22 = vpop.trf.xlu1 }
 0x579   : > { %4109 = vmatmul.mubr.msk.bf16.gmra.mrb[36].mxu1 %vm1474_vm5, %v1455_v12 }
 0x57a   : > { %4112 = vmatprep.mubr.msk.bf16.mxu1 %vm1474_vm5, %v1456_v16 }
 0x57c   : > { %v1472_v38 = vpop.trf.xlu1 }
 0x580   : > { %v1473_v42 = vpop.trf.xlu1 }
 0x581   : > { %4113 = vmatmul.mubr.msk.bf16.gmra.mrb[40].mxu1 %vm1474_vm5, %v1457_v18 }
 0x582   : > { %4116 = vmatprep.mubr.msk.bf16.mxu1 %vm1474_vm5, %v1466_v15 }
 0x589   : > { %4117 = vmatmul.mubr.msk.bf16.gmra.mrb[44].mxu1 %vm1474_vm5, %v1467_v17 }
 0x58a   : > { %4120 = vmatprep.mubr.msk.bf16.mxu1 %vm1474_vm5, %v1468_v19 }
 0x591   : > { %4121 = vmatmul.mubr.msk.bf16.gmra.mrb[48].mxu1 %vm1474_vm5, %v1469_v20 }
 0x592   : > { %4124 = vmatprep.mubr.msk.bf16.mxu1 %vm1474_vm5, %v1470_v21 }
 0x595   : > { %v1363_v26 = vpop.xlane.xlu0 %1362 }
 0x596   : > { %v1364_v37 = vmul.f32 0.0625, %v1363_v26 }
 0x598   : > { %v1383_v39 = vsub.f32 %v5804_v2, %v1364_v37  ;;  %v1385_v40 = vsub.f32 %v5807_v3, %v1364_v37  ;;  %v1384_v45 = vsub.f32 %v5809_v4, %v1364_v37  ;;  %v1788_v2 = vrot.slane %v5826_v56, 4 }
 0x599   : > { %4125 = vmatmul.mubr.msk.bf16.gmra.mrb[52].mxu1 %vm1474_vm5, %v1471_v22 }
 0x59a   : > { %4128 = vmatprep.mubr.msk.bf16.mxu1 %vm1474_vm5, %v1472_v38  ;;  %v1789_v57 = vadd.f32 %v1788_v2, %v5826_v56  ;;  %v1781_v56 = vadd.f32 %v1780_v41, %v1779_v60 }
 0x59c   : > { %v1790_v4 = vrot.slane %v1789_v57, 2 }
 0x59e   : > { %v1791_v62 = vadd.f32 %v1790_v4, %v1789_v57 }
 0x5a0   : > { %v1792_v8 = vrot.slane %v1791_v62, 1 }
 0x5a1   : > { %4129 = vmatmul.mubr.msk.bf16.gmra.mrb[56].mxu1 %vm1474_vm5, %v1473_v42 }
 0x5a2   : > { %2144 = vmatprep.mubr.bf16.mxu1 %v5100_v36  ;;  %v1793_v17 = vadd.f32 %v1792_v8, %v1791_v62 }
 0x5b1   : > { %v1382_v46 = vpop.xlane.xlu1 %1381 }
 0x5b2   : > { %v1386_v48 = vsub.f32 %v1383_v39, %v1382_v46  ;;  %v1387_v3 = vsub.f32 %v1384_v45, %v1382_v46  ;;  %v1388_v50 = vsub.f32 %v1385_v40, %v1382_v46 }
 0x5b4   : > { %v1389_v53 = vmul.f32 1.442695, %v1386_v48  ;;  %v1391_v54 = vmul.f32 1.442695, %v1387_v3  ;;  %v1393_v55 = vmul.f32 1.442695, %v1388_v50 }
 0x5b6   : > { %4557 = vpow2.f32 %v1389_v53 }
 0x5b7   : > { %4559 = vpow2.f32 %v1391_v54 }
 0x5b8   : > { %4561 = vpow2.f32 %v1393_v55 }
 0x5c0   : > { %v4558_v0 = vpop.eup %4557 }
 0x5c1   : > { %v4560_v47 = vpop.eup %4559  ;;  %v1395_v6 = vadd.f32 0.0001, %v4558_v0 }
 0x5c2   : > { %v4562_v49 = vpop.eup %4561  ;;  %v1396_v7 = vadd.f32 0.0001, %v4560_v47 }
 0x5c3   : > { %v1397_v10 = vadd.f32 0.0001, %v4562_v49  ;;  %v5875_v11 = vmul.f32 0.061313935, %v1395_v6 }
 0x5c4   : > { %v1399_v13 = vmul.f32 0.061313935, %v1396_v7 }
 0x5c5   : > { %v5877_v12 = vmul.f32 0.061313935, %v1397_v10  ;;  %v1794_v15 = vmul.f32 %v1781_v56, %v5875_v11 }
 0x5c6   : > { %v1803_v16 = vpack.c.bf16 %v1399_v13, %v1399_v13  ;;  %v1795_v18 = vmul.f32 %v1787_v14, %v1399_v13 }
 0x5c7   : > { %v1403_v19 = vsel %vm930_vm4, %v5877_v12, 0.0 }
 0x5c8   : > { %1861 = vmatprep.mubr.bf16.mxu0 %v1803_v16  ;;  %v1796_v20 = vmul.f32 %v1793_v17, %v1403_v19  ;;  %v1797_v21 = vadd.f32 %v1795_v18, %v1794_v15 }
 0x5ca   : > { %v5883_v22 = vadd.f32 %v1797_v21, %v1796_v20 }
 0x61c   : > { %v4086_v26 = vpop.f32.mrb[12].mxu1 }
 0x61d   : > { %v1585_v37 = vpop.f32.mrb[13].mxu1 }
 0x61e   : > { %v4087_v38 = vpop.f32.mrb[14].mxu1 }
 0x61f   : > { %v1806_v39 = vpack.c.bf16 %v4087_v38, %v4086_v26  ;;  %v1588_v40 = vpop.f32.mrb[15].mxu1 }
 0x620   : > { %v1805_v42 = vpack.c.bf16 %v1588_v40, %v1585_v37 }
 0x624   : > { %v4090_v43 = vpop.f32.mrb[16].mxu1 }
 0x625   : > { %v1601_v44 = vpop.f32.mrb[17].mxu1 }
 0x626   : > { %v4091_v45 = vpop.f32.mrb[18].mxu1 }
 0x627   : > { %v1808_v46 = vpack.c.bf16 %v4091_v45, %v4090_v43  ;;  %v1604_v2 = vpop.f32.mrb[19].mxu1 }
 0x628   : > { %v1807_v48 = vpack.c.bf16 %v1604_v2, %v1601_v44 }
 0x62c   : > { %v4094_v3 = vpop.f32.mrb[20].mxu1 }
 0x62d   : > { %v1617_v50 = vpop.f32.mrb[21].mxu1 }
 0x62e   : > { %v4095_v51 = vpop.f32.mrb[22].mxu1 }
 0x62f   : > { %v1810_v52 = vpack.c.bf16 %v4095_v51, %v4094_v3  ;;  %v1620_v53 = vpop.f32.mrb[23].mxu1 }
 0x630   : > { %v1809_v54 = vpack.c.bf16 %v1620_v53, %v1617_v50 }
 0x634   : > { %v4098_v55 = vpop.f32.mrb[24].mxu1 }
 0x635   : > { %v1633_v57 = vpop.f32.mrb[25].mxu1 }
 0x636   : > { %v4099_v58 = vpop.f32.mrb[26].mxu1 }
 0x637   : > { %v1812_v59 = vpack.c.bf16 %v4099_v58, %v4098_v55  ;;  %v1636_v4 = vpop.f32.mrb[27].mxu1 }
 0x638   : > { %v1811_v60 = vpack.c.bf16 %v1636_v4, %v1633_v57 }
 0x63c   : > { %v4102_v61 = vpop.f32.mrb[28].mxu1 }
 0x63d   : > { %v1649_v62 = vpop.f32.mrb[29].mxu1 }
 0x63e   : > { %v4103_v41 = vpop.f32.mrb[30].mxu1 }
 0x63f   : > { %v1814_v0 = vpack.c.bf16 %v4103_v41, %v4102_v61  ;;  %v1652_v5 = vpop.f32.mrb[31].mxu1 }
 0x640   : > { %v1813_v47 = vpack.c.bf16 %v1652_v5, %v1649_v62  ;;  %v4527_v5 = vld [vmem:[%s6488_s21 + $0x10] sm:$0xff]  }
 0x642   : > { %3908 = vmatprep.subr.bf16.mxu0 %v1813_v47  ;;  %v3779_v47 = vpack.c.bf16 %v5877_v12, %v5877_v12  ;;  %v4529_v12 = vld [vmem:[%s6489_s2 + $0x10] sm:$0xff]  }
 0x643   : > { %3909 = vmatpush3.bf16.msra.mxu0 %v1805_v42 }
 0x644   : > { %v4106_v6 = vpop.f32.mrb[32].mxu1  ;;  %3910 = vmatprep.subr.bf16.mxu0 %v1814_v0  ;;  %v4535_v0 = vld [vmem:[%s6493_s26 + $0x10] sm:$0xff]  }
 0x645   : > { %v1665_v49 = vpop.f32.mrb[33].mxu1 }
 0x646   : > { %v4107_v7 = vpop.f32.mrb[34].mxu1 }
 0x647   : > { %v1816_v8 = vpack.c.bf16 %v4107_v7, %v4106_v6  ;;  %v1668_v10 = vpop.f32.mrb[35].mxu1  ;;  %3911 = vmatpush3.bf16.msra.mxu0 %v1806_v39  ;;  %v4528_v6 = vld [vmem:[%s6488_s21 + $0x18] sm:$0xff]  }
 0x648   : > { %v1815_v56 = vpack.c.bf16 %v1668_v10, %v1665_v49  ;;  %v4530_v49 = vld [vmem:[%s6489_s2 + $0x18] sm:$0xff]   ;;  %s6496_s2 = sld [smem:[#allocation54_spill]] }
 0x649   : > { %v4531_v7 = vld [vmem:[#allocation13 + $0x10] sm:$0xff]  }
 0x64a   : > { %3912 = vmatprep.subr.bf16.mxu0 %v1815_v56 }
 0x64b   : > { %3913 = vmatpush3.bf16.msra.mxu0 %v1807_v48 }
 0x64c   : > { %v4110_v13 = vpop.f32.mrb[36].mxu1  ;;  %3914 = vmatprep.subr.bf16.mxu0 %v1816_v8  ;;  %v4532_v8 = vld [vmem:[#allocation13 + $0x18] sm:$0xff]  }
 0x64d   : > { %v1681_v14 = vpop.f32.mrb[37].mxu1 }
 0x64e   : > { %v4111_v15 = vpop.f32.mrb[38].mxu1 }
 0x64f   : > { %v1818_v16 = vpack.c.bf16 %v4111_v15, %v4110_v13  ;;  %v1684_v17 = vpop.f32.mrb[39].mxu1  ;;  %3915 = vmatpush3.bf16.msra.mxu0 %v1808_v46  ;;  %v1802_v46 = vpack.c.bf16 %v5875_v11, %v5875_v11 }
 0x650   : > { %v1817_v18 = vpack.c.bf16 %v1684_v17, %v1681_v14 }
 0x652   : > { %3916 = vmatprep.subr.bf16.mxu0 %v1817_v18 }
 0x653   : > { %3917 = vmatpush3.bf16.msra.mxu0 %v1809_v54 }
 0x654   : > { %v4114_v19 = vpop.f32.mrb[40].mxu1  ;;  %3918 = vmatprep.subr.bf16.mxu0 %v1818_v16 }
 0x655   : > { %v1697_v20 = vpop.f32.mrb[41].mxu1 }
 0x656   : > { %v4115_v21 = vpop.f32.mrb[42].mxu1 }
 0x657   : > { %v1820_v26 = vpack.c.bf16 %v4115_v21, %v4114_v19  ;;  %v1700_v37 = vpop.f32.mrb[43].mxu1  ;;  %3919 = vmatpush3.bf16.msra.mxu0 %v1810_v52 }
 0x658   : > { %v1819_v38 = vpack.c.bf16 %v1700_v37, %v1697_v20  ;;  %v3785_v20 = vld [vmem:[#allocation10 + $0x1] ss:$0 sm:$0xff] }
 0x65a   : > { %3920 = vmatprep.subr.bf16.mxu0 %v1819_v38 }
 0x65b   : > { %3921 = vmatpush3.bf16.msra.mxu0 %v1811_v60 }
 0x65c   : > { %v4118_v39 = vpop.f32.mrb[44].mxu1  ;;  %3922 = vmatprep.subr.bf16.mxu0 %v1820_v26 }
 0x65d   : > { %v1713_v40 = vpop.f32.mrb[45].mxu1 }
 0x65e   : > { %v4119_v42 = vpop.f32.mrb[46].mxu1 }
 0x65f   : > { %v1822_v43 = vpack.c.bf16 %v4119_v42, %v4118_v39  ;;  %v1716_v44 = vpop.f32.mrb[47].mxu1  ;;  %3923 = vmatpush3.bf16.msra.mxu0 %v1812_v59 }
 0x660   : > { %v1821_v45 = vpack.c.bf16 %v1716_v44, %v1713_v40  ;;  %4132 = vmatprep.subr.bf16.mxu0 %v5098_v9 }
 0x662   : > { %1862 = vmatmul.mubr.bf16.vlgmr.msra.gmra.mrb[16].mxu0 %v1802_v46 }
 0x663   : > { %4133 = vmatpush3.bf16.msra.mxu0 %v1821_v45  ;;  %4148 = vmatprep.mubr.msk.bf16.mxu0 %vm5099_vm1, %v5098_v9 }
 0x664   : > { %v4122_v2 = vpop.f32.mrb[48].mxu1  ;;  %4134 = vmatprep.subr.bf16.mxu0 %v5098_v9 }
 0x665   : > { %v1729_v48 = vpop.f32.mrb[49].mxu1 }
 0x666   : > { %v4123_v3 = vpop.f32.mrb[50].mxu1 }
 0x667   : > { %v1824_v50 = vpack.c.bf16 %v4123_v3, %v4122_v2  ;;  %v1732_v51 = vpop.f32.mrb[51].mxu1  ;;  %4135 = vmatpush3.bf16.msra.mxu0 %v1822_v43  ;;  %v3793_v43 = vld [vmem:[#allocation12 + $0x1] ss:$0 sm:$0xff] }
 0x668   : > { %v1823_v52 = vpack.c.bf16 %v1732_v51, %v1729_v48  ;;  %4136 = vmatprep.subr.bf16.mxu0 %v5098_v9 }
 0x66b   : > { %4137 = vmatpush3.bf16.msra.mxu0 %v1823_v52 }
 0x66c   : > { %v4126_v11 = vpop.f32.mrb[52].mxu1  ;;  %4138 = vmatprep.subr.bf16.mxu0 %v5098_v9 }
 0x66d   : > { %v1745_v53 = vpop.f32.mrb[53].mxu1 }
 0x66e   : > { %v4127_v54 = vpop.f32.mrb[54].mxu1 }
 0x66f   : > { %v1826_v55 = vpack.c.bf16 %v4127_v54, %v4126_v11  ;;  %v1748_v57 = vpop.f32.mrb[55].mxu1  ;;  %4139 = vmatpush3.bf16.msra.mxu0 %v1824_v50 }
 0x670   : > { %v1825_v58 = vpack.c.bf16 %v1748_v57, %v1745_v53  ;;  %4140 = vmatprep.subr.bf16.mxu0 %v5098_v9 }
 0x673   : > { %4141 = vmatpush3.bf16.msra.mxu0 %v1825_v58 }
 0x674   : > { %v4130_v59 = vpop.f32.mrb[56].mxu1  ;;  %4142 = vmatprep.subr.bf16.mxu0 %v5098_v9 }
 0x675   : > { %v1761_v4 = vpop.f32.mrb[57].mxu1 }
 0x676   : > { %v4131_v60 = vpop.f32.mrb[58].mxu1 }
 0x677   : > { %v1828_v61 = vpack.c.bf16 %v4131_v60, %v4130_v59  ;;  %v1764_v62 = vpop.f32.mrb[59].mxu1  ;;  %4143 = vmatpush3.bf16.msra.mxu0 %v1826_v55 }
 0x678   : > { %v1827_v41 = vpack.c.bf16 %v1764_v62, %v1761_v4  ;;  %4144 = vmatprep.subr.bf16.mxu0 %v5098_v9 }
 0x67b   : > { %4145 = vmatpush3.bf16.msra.mxu0 %v1827_v41 }
 0x67c   : > { %4146 = vmatprep.subr.bf16.mxu0 %v5098_v9 }
 0x67f   : > { %4147 = vmatpush3.bf16.msra.mxu0 %v1828_v61 }
 0x680   : > { %4152 = vmatprep.subr.bf16.mxu0 %v5098_v9 }
 0x682   : > { %4149 = vmatmul.mubr.msk.bf16.vlgmr.msra.gmra.mrb[20].mxu0 %vm5900_vm6, %v3779_v47 }
 0x683   : > { %4153 = vmatpush3.bf16.msra.mxu0 %v4527_v5  ;;  %4156 = vmatprep.mubr.msk.bf16.mxu0 %vm5099_vm1, %v5098_v9 }
 0x684   : > { %4154 = vmatprep.subr.bf16.mxu0 %v5098_v9 }
 0x687   : > { %4155 = vmatpush3.bf16.msra.mxu0 %v4528_v6 }
 0x688   : > { %4160 = vmatprep.subr.bf16.mxu0 %v5098_v9 }
 0x68a   : > { %4157 = vmatmul.mubr.msk.bf16.vlgmr.msra.gmra.mrb[24].mxu0 %vm878_vm0, %v5679_v23 }
 0x68b   : > { %4161 = vmatpush3.bf16.msra.mxu0 %v4529_v12  ;;  %4164 = vmatprep.mubr.msk.bf16.mxu0 %vm5099_vm1, %v5098_v9 }
 0x68c   : > { %4162 = vmatprep.subr.bf16.mxu0 %v5098_v9 }
 0x68f   : > { %4163 = vmatpush3.bf16.msra.mxu0 %v4530_v49 }
 0x690   : > { %4168 = vmatprep.subr.bf16.mxu0 %v5098_v9 }
 0x692   : > { %4165 = vmatmul.mubr.msk.bf16.vlgmr.msra.gmra.mrb[28].mxu0 %vm878_vm0, %v5679_v23 }
 0x693   : > { %4169 = vmatpush3.bf16.msra.mxu0 %v4531_v7  ;;  %4172 = vmatprep.mubr.msk.bf16.mxu0 %vm5099_vm1, %v5098_v9 }
 0x694   : > { %4170 = vmatprep.subr.bf16.mxu0 %v5098_v9 }
 0x697   : > { %4171 = vmatpush3.bf16.msra.mxu0 %v4532_v8 }
 0x698   : > { %4176 = vmatprep.subr.bf16.mxu0 %v5098_v9 }
 0x69a   : > { %4173 = vmatmul.mubr.msk.bf16.vlgmr.msra.gmra.mrb[32].mxu0 %vm878_vm0, %v5679_v23 }
 0x69b   : > { %4177 = vmatpush3.bf16.msra.mxu0 %v5713_v29  ;;  %4184 = vmatprep.mubr.msk.bf16.mxu0 %vm5099_vm1, %v5098_v9 }
 0x69c   : > { %4178 = vmatprep.subr.bf16.mxu0 %v5098_v9 }
 0x69f   : > { %4179 = vmatpush3.bf16.msra.mxu0 %v5729_v31 }
 0x6a0   : > { %4180 = vmatprep.subr.bf16.mxu0 %v5098_v9 }
 0x6a3   : > { %4181 = vmatpush3.bf16.msra.mxu0 %v5739_v32 }
 0x6a4   : > { %4182 = vmatprep.subr.bf16.mxu0 %v5098_v9 }
 0x6a7   : > { %4183 = vmatpush3.bf16.msra.mxu0 %v5757_v35 }
 0x6a8   : > { %4188 = vmatprep.subr.bf16.mxu0 %v5098_v9 }
 0x735   : > { %v3924_v23 = vpop.f32.mrb[16].mxu0 }
 0x736   : > { %v3925_v10 = vpop.f32.mrb[17].mxu0 }
 0x737   : > { %v3926_v56 = vadd.f32 %v3925_v10, %v3924_v23  ;;  %v3927_v13 = vpop.f32.mrb[18].mxu0 }
 0x738   : > { %v3928_v14 = vpop.f32.mrb[19].mxu0 }
 0x755   : > { %v1903_v15 = vpop.f32.mrb[20].mxu0 }
 0x756   : > { %v5949_v16 = vadd.f32 %v3926_v56, %v1903_v15  ;;  %v4150_v17 = vpop.f32.mrb[21].mxu0 }
 0x757   : > { %v1906_v18 = vpop.f32.mrb[22].mxu0 }
 0x758   : > { %v4151_v19 = vpop.f32.mrb[23].mxu0 }
 0x75d   : > { %v1971_v21 = vpop.f32.mrb[24].mxu0 }
 0x75e   : > { %v5951_v26 = vadd.f32 %v3785_v20, %v1971_v21  ;;  %v4158_v37 = vpop.f32.mrb[25].mxu0 }
 0x75f   : > { %v1974_v38 = vpop.f32.mrb[26].mxu0 }
 0x760   : > { %v2107_v39 = vmul.f32 0.35355338, %v5951_v26  ;;  %v4159_v40 = vpop.f32.mrb[27].mxu0 }
 0x762   : > { %v2108_v42 = vpack.c.bf16 %v2107_v39, %v2107_v39 }
 0x764   : > { %3801 = vmatmul.mubr.msk.bf16.vlgmr.msra.gmra.mrb[60].mxu1 %vm1189_vm2, %v2108_v42  ;;  %4185 = vmatmul.mubr.msk.bf16.vlgmr.msra.gmra.mrb[36].mxu0 %vm1189_vm2, %v2108_v42 }
 0x765   : > { %2199 = vmatpush1.bf16.msra.mxu1 %v5684_v24  ;;  %4189 = vmatpush3.bf16.msra.mxu0 %v5713_v29  ;;  %v2036_v44 = vpop.f32.mrb[28].mxu0 }
 0x766   : > { %v2037_v45 = vadd.f32 %v3793_v43, %v2036_v44  ;;  %v4166_v46 = vpop.f32.mrb[29].mxu0  ;;  %2200 = vmatprep.subr.bf16.mxu1 %v5689_v25  ;;  %4190 = vmatprep.subr.bf16.mxu0 %v5098_v9  ;;  %v3797_v25 = vld [vmem:[#allocation15 + $0x1] ss:$0 sm:$0xff]  ;;  %v2279_v44 = vmul.f32 %v5951_v26, %v5951_v26 }
 0x767   : > { %v2039_v2 = vpop.f32.mrb[30].mxu0  ;;  %2230 = vmatprep.mubr.bf16.mxu1 %v5100_v36  ;;  %4196 = vmatprep.mubr.msk.bf16.mxu0 %vm5099_vm1, %v5098_v9 }
 0x768   : > { %v4167_v48 = vpop.f32.mrb[31].mxu0  ;;  %v2284_v3 = vmul.f32 %v2037_v45, %v2037_v45  ;;  %v2193_v36 = vmul.f32 0.35355338, %v2037_v45  ;;  %v2280_v45 = vsel %vm1189_vm2, %v2279_v44, 0.0 }
 0x769   : > { %2201 = vmatpush1.bf16.msra.mxu1 %v5702_v27  ;;  %4191 = vmatpush3.bf16.msra.mxu0 %v5729_v31 }
 0x76a   : > { %2202 = vmatprep.subr.bf16.mxu1 %v5708_v28  ;;  %4192 = vmatprep.subr.bf16.mxu0 %v5098_v9  ;;  %v2285_v24 = vsel %vm1189_vm2, %v2284_v3, 0.0  ;;  %v2194_v52 = vpack.c.bf16 %v2193_v36, %v2193_v36 }
 0x76b   : > { %2286 = vadd.xlane.f32.xlu0 %v2285_v24 }
 0x76d   : > { %2203 = vmatpush1.bf16.msra.mxu1 %v5720_v30  ;;  %4193 = vmatpush3.bf16.msra.mxu0 %v5739_v32  ;;  %v2101_v29 = vpop.f32.mrb[32].mxu0 }
 0x76e   : > { %v2102_v50 = vadd.f32 %v3797_v25, %v2101_v29  ;;  %v4174_v51 = vpop.f32.mrb[33].mxu0  ;;  %2204 = vmatprep.subr.bf16.mxu1 %v5747_v33  ;;  %4194 = vmatprep.subr.bf16.mxu0 %v5098_v9 }
 0x76f   : > { %v2104_v27 = vpop.f32.mrb[34].mxu0 }
 0x770   : > { %v2338_v28 = vpack.c.bf16 %v2102_v50, %v2102_v50  ;;  %v4175_v31 = vpop.f32.mrb[35].mxu0 }
 0x771   : > { %2205 = vmatpush1.bf16.msra.mxu1 %v5752_v34  ;;  %4195 = vmatpush3.bf16.msra.mxu0 %v5757_v35 }
 0x772   : > { %v2460_v30 = vsel %vm1547_vm3, %v2338_v28, 0  ;;  %4319 = vmatprep.subr.msk.bf16.mxu1 %vm1547_vm3, %v2338_v28 }
 0x774   : > { %3803 = vmatmul.mubr.msk.bf16.vlgmr.msra.gmra.mrb[64].mxu1 %vm1189_vm2, %v2194_v52  ;;  %4197 = vmatmul.mubr.msk.bf16.vlgmr.msra.gmra.mrb[40].mxu0 %vm1189_vm2, %v2194_v52 }
 0x775   : > { %4201 = vmatpush3.bf16.msra.mxu1 %v2460_v30 }
 0x776   : > { %4290 = vmatprep.subr.bf16.mxu1 %v5098_v9 }
 0x7f8   : > { %v2287_v4 = vpop.xlane.xlu0 %2286 }
 0x7f9   : > { %v2288_v60 = vmul.f32 0.0625, %v2287_v4 }
 0x837   : > { %v5979_v32 = vpop.f32.mrb[60].mxu1  ;;  %v5981_v33 = vpop.f32.mrb[36].mxu0 }
 0x838   : > { %v5983_v11 = vpop.f32.mrb[61].mxu1  ;;  %v4186_v34 = vpop.f32.mrb[37].mxu0  ;;  %v2291_v55 = vsel %vm930_vm4, %v5981_v33, -1e+30 }
 0x839   : > { %v2292_v35 = vmax.f32 %v5979_v32, %v5983_v11  ;;  %v2150_v53 = vpop.f32.mrb[62].mxu1  ;;  %v2190_v54 = vpop.f32.mrb[38].mxu0 }
 0x83a   : > { %v2151_v57 = vpop.f32.mrb[63].mxu1  ;;  %v4187_v58 = vpop.f32.mrb[39].mxu0 }
 0x83b   : > { %v2293_v59 = vmax.f32 %v2292_v35, %v2291_v55 }
 0x847   : > { %v2232_v61 = vpop.f32.mrb[64].mxu1  ;;  %v2273_v62 = vpop.f32.mrb[40].mxu0 }
 0x848   : > { %v2317_v41 = vsub.f32 %v2232_v61, %v2288_v60  ;;  %v2234_v5 = vpop.f32.mrb[65].mxu1  ;;  %v4198_v47 = vpop.f32.mrb[41].mxu0  ;;  %v2319_v15 = vsub.f32 %v2273_v62, %v2288_v60 }
 0x849   : > { %v2318_v6 = vsub.f32 %v2234_v5, %v2288_v60  ;;  %v2236_v12 = vpop.f32.mrb[66].mxu1  ;;  %v2276_v49 = vpop.f32.mrb[42].mxu0 }
 0x84a   : > { %v2320_v7 = vadd.f32 0.0001, %v2317_v41  ;;  %v2237_v8 = vpop.f32.mrb[67].mxu1  ;;  %v4199_v23 = vpop.f32.mrb[43].mxu0  ;;  %v2322_v21 = vadd.f32 0.0001, %v2319_v15 }
 0x84b   : > { %v2321_v10 = vadd.f32 0.0001, %v2318_v6 }
 0x84c   : > { %v2323_v56 = vmul.f32 1.442695, %v2320_v7  ;;  %v2327_v38 = vmul.f32 1.442695, %v2322_v21 }
 0x84d   : > { %v2325_v13 = vmul.f32 1.442695, %v2321_v10 }
 0x84e   : > { %4563 = vpow2.f32 %v2323_v56 }
 0x84f   : > { %4565 = vpow2.f32 %v2325_v13 }
 0x850   : > { %4567 = vpow2.f32 %v2327_v38 }
 0x858   : > { %v4564_v14 = vpop.eup %4563 }
 0x859   : > { %v5990_v17 = vmul.f32 0.061313935, %v4564_v14  ;;  %v4566_v18 = vpop.eup %4565 }
 0x85a   : > { %v5992_v19 = vmul.f32 0.061313935, %v4566_v18  ;;  %v4568_v39 = vpop.eup %4567 }
 0x85b   : > { %v2335_v20 = vpack.c.bf16 %v5990_v17, %v5990_v17  ;;  %v2331_v40 = vmul.f32 0.061313935, %v4568_v39  ;;  %v2687_v61 = vrot.slane %v5990_v17, 4 }
 0x85c   : > { %v2336_v37 = vpack.c.bf16 %v5992_v19, %v5992_v19  ;;  %v2693_v62 = vrot.slane %v5992_v19, 4 }
 0x85d   : > { %2339 = vxpose.xlu0.c.b16.start.end [1/1] (short) %v2335_v20, 128  ;;  %v6000_v42 = vsel %vm930_vm4, %v2331_v40, 0.0  ;;  %v2688_v23 = vadd.f32 %v2687_v61, %v5990_v17 }
 0x85e   : > { %2355 = vxpose.xlu1.c.b16.start.end [1/1] (short) %v2336_v37, 128  ;;  %v2337_v43 = vpack.c.bf16 %v6000_v42, %v6000_v42  ;;  %v2699_v12 = vrot.slane %v6000_v42, 4  ;;  %v2694_v10 = vadd.f32 %v2693_v62, %v5992_v19 }
 0x860   : > { %v2700_v15 = vadd.f32 %v2699_v12, %v6000_v42 }
 0x87a   : > { %2371 = vxpose.xlu0.c.b16.start.end [1/1] (short) %v2337_v43, 128 }
 0x887   : > { %2281 = vadd.xlane.f32.xlu1 %v2280_v45 }
 0x8a3   : > { %2294 = vmax.xlane.f32.xlu0 %v2293_v59 }
 0x8c3   : > { %v2347_v46 = vpop.trf.xlu0 }
 0x8c4   : > { %4202 = vmatprep.mubr.msk.bf16.mxu1 %vm1474_vm5, %v2347_v46  ;;  %v2363_v24 = vpop.trf.xlu1 }
 0x8c7   : > { %v2348_v2 = vpop.trf.xlu0 }
 0x8c8   : > { %4203 = vmatmul.mubr.msk.bf16.vlgmr.msra.gmra.mrb[68].mxu1 %vm1474_vm5, %v2348_v2  ;;  %v2364_v29 = vpop.trf.xlu1 }
 0x8cb   : > { %v2349_v48 = vpop.trf.xlu0 }
 0x8cc   : > { %4206 = vmatprep.mubr.msk.bf16.mxu1 %vm1474_vm5, %v2349_v48  ;;  %v2365_v50 = vpop.trf.xlu1 }
 0x8cf   : > { %v2350_v3 = vpop.trf.xlu0 }
 0x8d0   : > { %4207 = vmatmul.mubr.msk.bf16.gmra.mrb[72].mxu1 %vm1474_vm5, %v2350_v3  ;;  %v2366_v27 = vpop.trf.xlu1 }
 0x8d3   : > { %v2351_v25 = vpop.trf.xlu0 }
 0x8d4   : > { %4210 = vmatprep.mubr.msk.bf16.mxu1 %vm1474_vm5, %v2351_v25  ;;  %v2367_v28 = vpop.trf.xlu1 }
 0x8d7   : > { %v2352_v26 = vpop.trf.xlu0 }
 0x8d8   : > { %4211 = vmatmul.mubr.msk.bf16.gmra.mrb[76].mxu1 %vm1474_vm5, %v2352_v26  ;;  %v2368_v31 = vpop.trf.xlu1 }
 0x8db   : > { %v2353_v36 = vpop.trf.xlu0 }
 0x8dc   : > { %4214 = vmatprep.mubr.msk.bf16.mxu1 %vm1474_vm5, %v2353_v36  ;;  %v2369_v30 = vpop.trf.xlu1 }
 0x8df   : > { %v2354_v51 = vpop.trf.xlu0 }
 0x8e0   : > { %4215 = vmatmul.mubr.msk.bf16.gmra.mrb[80].mxu1 %vm1474_vm5, %v2354_v51  ;;  %v2370_v35 = vpop.trf.xlu1 }
 0x8e1   : > { %4218 = vmatprep.mubr.msk.bf16.mxu1 %vm1474_vm5, %v2363_v24 }
 0x8e3   : > { %v2379_v52 = vpop.trf.xlu0 }
 0x8e7   : > { %v2380_v34 = vpop.trf.xlu0 }
 0x8e8   : > { %4219 = vmatmul.mubr.msk.bf16.gmra.mrb[84].mxu1 %vm1474_vm5, %v2364_v29 }
 0x8e9   : > { %4222 = vmatprep.mubr.msk.bf16.mxu1 %vm1474_vm5, %v2365_v50 }
 0x8eb   : > { %v2381_v53 = vpop.trf.xlu0 }
 0x8ef   : > { %v2382_v54 = vpop.trf.xlu0 }
 0x8f0   : > { %4223 = vmatmul.mubr.msk.bf16.gmra.mrb[88].mxu1 %vm1474_vm5, %v2366_v27 }
 0x8f1   : > { %4226 = vmatprep.mubr.msk.bf16.mxu1 %vm1474_vm5, %v2367_v28 }
 0x8f3   : > { %v2383_v55 = vpop.trf.xlu0 }
 0x8f7   : > { %v2384_v57 = vpop.trf.xlu0 }
 0x8f8   : > { %4227 = vmatmul.mubr.msk.bf16.gmra.mrb[92].mxu1 %vm1474_vm5, %v2368_v31 }
 0x8f9   : > { %4230 = vmatprep.mubr.msk.bf16.mxu1 %vm1474_vm5, %v2369_v30 }
 0x8fb   : > { %v2385_v58 = vpop.trf.xlu0 }
 0x8ff   : > { %v2386_v59 = vpop.trf.xlu0 }
 0x900   : > { %4231 = vmatmul.mubr.msk.bf16.gmra.mrb[96].mxu1 %vm1474_vm5, %v2370_v35 }
 0x901   : > { %4234 = vmatprep.mubr.msk.bf16.mxu1 %vm1474_vm5, %v2379_v52 }
 0x908   : > { %4235 = vmatmul.mubr.msk.bf16.gmra.mrb[100].mxu1 %vm1474_vm5, %v2380_v34 }
 0x909   : > { %4238 = vmatprep.mubr.msk.bf16.mxu1 %vm1474_vm5, %v2381_v53 }
 0x910   : > { %4239 = vmatmul.mubr.msk.bf16.gmra.mrb[104].mxu1 %vm1474_vm5, %v2382_v54 }
 0x911   : > { %4242 = vmatprep.mubr.msk.bf16.mxu1 %vm1474_vm5, %v2383_v55 }
 0x914   : > { %v2282_v4 = vpop.xlane.xlu1 %2281 }
 0x915   : > { %v2283_v60 = vmul.f32 0.0625, %v2282_v4 }
 0x917   : > { %v2296_v41 = vsub.f32 %v5979_v32, %v2283_v60  ;;  %v2297_v5 = vsub.f32 %v5983_v11, %v2283_v60  ;;  %v2298_v47 = vsub.f32 %v5981_v33, %v2283_v60  ;;  %v2689_v32 = vrot.slane %v2688_v23, 2 }
 0x918   : > { %4243 = vmatmul.mubr.msk.bf16.gmra.mrb[108].mxu1 %vm1474_vm5, %v2384_v57  ;;  %v2695_v11 = vrot.slane %v2694_v10, 2  ;;  %v2701_v33 = vrot.slane %v2700_v15, 2 }
 0x919   : > { %4246 = vmatprep.mubr.msk.bf16.mxu1 %vm1474_vm5, %v2385_v58  ;;  %v2690_v18 = vadd.f32 %v2689_v32, %v2688_v23 }
 0x91a   : > { %v2696_v20 = vadd.f32 %v2695_v11, %v2694_v10  ;;  %v2702_v21 = vadd.f32 %v2701_v33, %v2700_v15 }
 0x91b   : > { %v2691_v37 = vrot.slane %v2690_v18, 1 }
 0x91c   : > { %v2697_v39 = vrot.slane %v2696_v20, 1  ;;  %v2703_v44 = vrot.slane %v2702_v21, 1 }
 0x91d   : > { %v2692_v42 = vadd.f32 %v2691_v37, %v2690_v18 }
 0x91e   : > { %v2698_v48 = vadd.f32 %v2697_v39, %v2696_v20  ;;  %v2704_v26 = vadd.f32 %v2703_v44, %v2702_v21 }
 0x920   : > { %4247 = vmatmul.mubr.msk.bf16.gmra.mrb[112].mxu1 %vm1474_vm5, %v2386_v59 }
 0x921   : > { %4294 = vmatprep.mubr.msk.bf16.mxu1 %vm5099_vm1, %v5098_v9 }
 0x930   : > { %v2295_v6 = vpop.xlane.xlu0 %2294 }
 0x931   : > { %v2299_v49 = vsub.f32 %v2296_v41, %v2295_v6  ;;  %v2300_v7 = vsub.f32 %v2297_v5, %v2295_v6  ;;  %v2301_v8 = vsub.f32 %v2298_v47, %v2295_v6 }
 0x933   : > { %v2302_v56 = vmul.f32 1.442695, %v2299_v49  ;;  %v2304_v13 = vmul.f32 1.442695, %v2300_v7  ;;  %v2306_v14 = vmul.f32 1.442695, %v2301_v8 }
 0x935   : > { %4569 = vpow2.f32 %v2302_v56 }
 0x936   : > { %4571 = vpow2.f32 %v2304_v13 }
 0x937   : > { %4573 = vpow2.f32 %v2306_v14 }
 0x93f   : > { %v4570_v38 = vpop.eup %4569 }
 0x940   : > { %v4572_v17 = vpop.eup %4571  ;;  %v2308_v40 = vadd.f32 0.0001, %v4570_v38 }
 0x941   : > { %v4574_v19 = vpop.eup %4573  ;;  %v2309_v43 = vadd.f32 0.0001, %v4572_v17 }
 0x942   : > { %v2310_v45 = vadd.f32 0.0001, %v4574_v19  ;;  %v6042_v46 = vmul.f32 0.061313935, %v2308_v40 }
 0x943   : > { %v2312_v2 = vmul.f32 0.061313935, %v2309_v43 }
 0x944   : > { %v6044_v3 = vmul.f32 0.061313935, %v2310_v45  ;;  %v2705_v24 = vmul.f32 %v2692_v42, %v6042_v46 }
 0x945   : > { %v2714_v25 = vpack.c.bf16 %v2312_v2, %v2312_v2  ;;  %v2706_v29 = vmul.f32 %v2698_v48, %v2312_v2 }
 0x946   : > { %v2316_v36 = vsel %vm930_vm4, %v6044_v3, 0.0 }
 0x947   : > { %2772 = vmatprep.mubr.bf16.mxu0 %v2714_v25  ;;  %v2707_v50 = vmul.f32 %v2704_v26, %v2316_v36  ;;  %v2708_v51 = vadd.f32 %v2706_v29, %v2705_v24 }
 0x949   : > { %v2709_v27 = vadd.f32 %v2708_v51, %v2707_v50 }
 0x94b   : > { %2710 = vadd.xlane.f32.xlu1 %v2709_v27  ;;  %v2713_v27 = vpack.c.bf16 %v6042_v46, %v6042_v46 }
 0x94f   : > { %1799 = vadd.xlane.f32.xlu1 %v5883_v22 }
 0x99b   : > { %v4204_v28 = vpop.f32.mrb[68].mxu1 }
 0x99c   : > { %v2496_v31 = vpop.f32.mrb[69].mxu1 }
 0x99d   : > { %v4205_v52 = vpop.f32.mrb[70].mxu1 }
 0x99e   : > { %v2717_v30 = vpack.c.bf16 %v4205_v52, %v4204_v28  ;;  %v2499_v34 = vpop.f32.mrb[71].mxu1 }
 0x99f   : > { %v2716_v35 = vpack.c.bf16 %v2499_v34, %v2496_v31 }
 0x9a3   : > { %v4208_v53 = vpop.f32.mrb[72].mxu1 }
 0x9a4   : > { %v2512_v54 = vpop.f32.mrb[73].mxu1 }
 0x9a5   : > { %v4209_v55 = vpop.f32.mrb[74].mxu1 }
 0x9a6   : > { %v2719_v57 = vpack.c.bf16 %v4209_v55, %v4208_v53  ;;  %v2515_v58 = vpop.f32.mrb[75].mxu1 }
 0x9a7   : > { %v2718_v1 = vpack.c.bf16 %v2515_v58, %v2512_v54 }
 0x9ab   : > { %v4212_v59 = vpop.f32.mrb[76].mxu1 }
 0x9ac   : > { %v2528_v4 = vpop.f32.mrb[77].mxu1 }
 0x9ad   : > { %v4213_v60 = vpop.f32.mrb[78].mxu1 }
 0x9ae   : > { %v2721_v61 = vpack.c.bf16 %v4213_v60, %v4212_v59  ;;  %v2531_v62 = vpop.f32.mrb[79].mxu1 }
 0x9af   : > { %v2720_v41 = vpack.c.bf16 %v2531_v62, %v2528_v4 }
 0x9b3   : > { %v4216_v5 = vpop.f32.mrb[80].mxu1 }
 0x9b4   : > { %v2544_v22 = vpop.f32.mrb[81].mxu1 }
 0x9b5   : > { %v4217_v47 = vpop.f32.mrb[82].mxu1 }
 0x9b6   : > { %v2723_v6 = vpack.c.bf16 %v4217_v47, %v4216_v5  ;;  %v2547_v12 = vpop.f32.mrb[83].mxu1  ;;  %v3830_v5 = vpack.c.bf16 %v6044_v3, %v6044_v3  ;;  %v4534_v47 = vld [vmem:[%s6493_s26 + $0x8] sm:$0xff]   ;;  %v4536_v3 = vld [vmem:[%s6493_s26 + $0x18] sm:$0xff]  }
 0x9b7   : > { %v2722_v49 = vpack.c.bf16 %v2547_v12, %v2544_v22  ;;  %v4533_v22 = vld [vmem:[%s6493_s26] sm:$0xff]   ;;  %v4538_v12 = vld [vmem:[%s6493_s26 + $0x28] sm:$0xff]  }
 0x9bb   : > { %v4220_v7 = vpop.f32.mrb[84].mxu1 }
 0x9bc   : > { %v2560_v8 = vpop.f32.mrb[85].mxu1 }
 0x9bd   : > { %v4221_v23 = vpop.f32.mrb[86].mxu1 }
 0x9be   : > { %v2725_v10 = vpack.c.bf16 %v4221_v23, %v4220_v7  ;;  %v2563_v56 = vpop.f32.mrb[87].mxu1 }
 0x9bf   : > { %v2724_v13 = vpack.c.bf16 %v2563_v56, %v2560_v8 }
 0x9c1   : > { %3983 = vmatprep.subr.bf16.mxu0 %v2724_v13  ;;  %v4539_v13 = vld [vmem:[%s6493_s26 + $0x30] sm:$0xff]  }
 0x9c2   : > { %3984 = vmatpush3.bf16.msra.mxu0 %v2716_v35 }
 0x9c3   : > { %v4224_v14 = vpop.f32.mrb[88].mxu1  ;;  %3985 = vmatprep.subr.bf16.mxu0 %v2725_v10 }
 0x9c4   : > { %v2576_v15 = vpop.f32.mrb[89].mxu1 }
 0x9c5   : > { %v4225_v32 = vpop.f32.mrb[90].mxu1 }
 0x9c6   : > { %v2727_v11 = vpack.c.bf16 %v4225_v32, %v4224_v14  ;;  %v2579_v33 = vpop.f32.mrb[91].mxu1  ;;  %3986 = vmatpush3.bf16.msra.mxu0 %v2717_v30  ;;  %v4540_v14 = vld [vmem:[%s6493_s26 + $0x38] sm:$0xff]  }
 0x9c7   : > { %v2726_v18 = vpack.c.bf16 %v2579_v33, %v2576_v15 }
 0x9c9   : > { %3987 = vmatprep.subr.bf16.mxu0 %v2726_v18 }
 0x9ca   : > { %3988 = vmatpush3.bf16.msra.mxu0 %v2718_v1 }
 0x9cb   : > { %v4228_v20 = vpop.f32.mrb[92].mxu1  ;;  %3989 = vmatprep.subr.bf16.mxu0 %v2727_v11 }
 0x9cc   : > { %v2592_v21 = vpop.f32.mrb[93].mxu1 }
 0x9cd   : > { %v4229_v37 = vpop.f32.mrb[94].mxu1 }
 0x9ce   : > { %v2729_v38 = vpack.c.bf16 %v4229_v37, %v4228_v20  ;;  %v2595_v39 = vpop.f32.mrb[95].mxu1  ;;  %3990 = vmatpush3.bf16.msra.mxu0 %v2719_v57 }
 0x9cf   : > { %v2728_v17 = vpack.c.bf16 %v2595_v39, %v2592_v21 }
 0x9d1   : > { %3991 = vmatprep.subr.bf16.mxu0 %v2728_v17 }
 0x9d2   : > { %3992 = vmatpush3.bf16.msra.mxu0 %v2720_v41 }
 0x9d3   : > { %v4232_v40 = vpop.f32.mrb[96].mxu1  ;;  %3993 = vmatprep.subr.bf16.mxu0 %v2729_v38 }
 0x9d4   : > { %v2608_v19 = vpop.f32.mrb[97].mxu1 }
 0x9d5   : > { %v4233_v43 = vpop.f32.mrb[98].mxu1 }
 0x9d6   : > { %v2731_v44 = vpack.c.bf16 %v4233_v43, %v4232_v40  ;;  %v2611_v45 = vpop.f32.mrb[99].mxu1  ;;  %3994 = vmatpush3.bf16.msra.mxu0 %v2721_v61  ;;  %v3840_v40 = vld [vmem:[#allocation16] ss:$0 sm:$0xff] }
 0x9d7   : > { %v2730_v42 = vpack.c.bf16 %v2611_v45, %v2608_v19  ;;  %v4589_v19 = vld [vmem:[%s5615_s1] sm:$0xff]  ;;  %s3861_s1 = sshll.u32 %s6473_s23, 7  ;;  %s3483_s23 = scalar_lea.sflag [#allocation6], %s5609_s20 }
 0x9d8   : > { %v6051_v2 = vpop.xlane.xlu1 %2710  ;;  %s6326_s13 = scalar_lea.hbm %s6499_s12, %s3861_s1 }
 0x9d9   : > { %3995 = vmatprep.subr.bf16.mxu0 %v2730_v42  ;;  %v2712_v56 = vadd.f32 1e-08, %v6051_v2 }
 0x9da   : > { %3996 = vmatpush3.bf16.msra.mxu0 %v2722_v49 }
 0x9db   : > { %v4236_v48 = vpop.f32.mrb[100].mxu1  ;;  %3997 = vmatprep.subr.bf16.mxu0 %v2731_v44 }
 0x9dc   : > { %v1800_v24 = vpop.xlane.xlu1 %1799  ;;  %v2624_v25 = vpop.f32.mrb[101].mxu1 }
 0x9dd   : > { %v1801_v26 = vadd.f32 1e-08, %v1800_v24  ;;  %v4237_v29 = vpop.f32.mrb[102].mxu1  ;;  %v4541_v24 = vld [vmem:[#allocation21] sm:$0xff]  }
 0x9de   : > { %v2733_v36 = vpack.c.bf16 %v4237_v29, %v4236_v48  ;;  %v2627_v50 = vpop.f32.mrb[103].mxu1  ;;  %3998 = vmatpush3.bf16.msra.mxu0 %v2723_v6  ;;  %v4537_v6 = vld [vmem:[%s6493_s26 + $0x20] sm:$0xff]   ;;  %4291 = vmatpush3.bf16.msra.mxu1 %v4541_v24 }
 0x9df   : > { %4575 = vrcp.f32 %v1801_v26  ;;  %v2732_v51 = vpack.c.bf16 %v2627_v50, %v2624_v25  ;;  %4250 = vmatprep.subr.bf16.mxu0 %v5098_v9  ;;  %4292 = vmatprep.subr.bf16.mxu1 %v5098_v9 }
 0x9e0   : > { %4577 = vrcp.f32 %v2712_v56 }
 0x9e1   : > { %2773 = vmatmul.mubr.bf16.vlgmr.msra.gmra.mrb[44].mxu0 %v2713_v27  ;;  %v4542_v27 = vld [vmem:[#allocation21 + $0x8] sm:$0xff]  }
 0x9e2   : > { %4251 = vmatpush3.bf16.msra.mxu0 %v2732_v51  ;;  %4266 = vmatprep.mubr.msk.bf16.mxu0 %vm5099_vm1, %v5098_v9  ;;  %v4543_v51 = vld [vmem:[#allocation24] sm:$0xff]  }
 0x9e3   : > { %v4240_v28 = vpop.f32.mrb[104].mxu1  ;;  %4252 = vmatprep.subr.bf16.mxu0 %v5098_v9  ;;  %4293 = vmatpush3.bf16.msra.mxu1 %v4542_v27 }
 0x9e4   : > { %v2640_v31 = vpop.f32.mrb[105].mxu1  ;;  %4306 = vmatprep.subr.bf16.mxu1 %v5098_v9 }
 0x9e5   : > { %v4241_v52 = vpop.f32.mrb[106].mxu1 }
 0x9e6   : > { %v2735_v30 = vpack.c.bf16 %v4241_v52, %v4240_v28  ;;  %v2643_v34 = vpop.f32.mrb[107].mxu1  ;;  %4253 = vmatpush3.bf16.msra.mxu0 %v2733_v36  ;;  %v4544_v28 = vld [vmem:[#allocation24 + $0x8] sm:$0xff]  }
 0x9e7   : > { %v2734_v35 = vpack.c.bf16 %v2643_v34, %v2640_v31  ;;  %4254 = vmatprep.subr.bf16.mxu0 %v5098_v9 }
 0x9e9   : > { %v4576_v53 = vpop.eup %4575 }
 0x9ea   : > { %4255 = vmatpush3.bf16.msra.mxu0 %v2734_v35  ;;  %v1910_v46 = vmul.f32 %v4576_v53, %v5949_v16  ;;  %v4578_v33 = vpop.eup %4577  ;;  %v3841_v35 = vld [vmem:[#allocation18] ss:$0 sm:$0xff] }
 0x9eb   : > { %v4244_v54 = vpop.f32.mrb[108].mxu1  ;;  %4256 = vmatprep.subr.bf16.mxu0 %v5098_v9 }
 0x9ec   : > { %v2656_v55 = vpop.f32.mrb[109].mxu1  ;;  %1911 = vst.msk [vmem:[#allocation2] sm:$0xff] %vm1189_vm2, %v1910_v46  ;;  %v3842_v46 = vld [vmem:[#allocation19] ss:$0 sm:$0xff] }
 0x9ed   : > { %v4245_v57 = vpop.f32.mrb[110].mxu1 }
 0x9ee   : > { %v2737_v58 = vpack.c.bf16 %v4245_v57, %v4244_v54  ;;  %v2659_v1 = vpop.f32.mrb[111].mxu1  ;;  %4257 = vmatpush3.bf16.msra.mxu0 %v2735_v30 }
 0x9ef   : > { %v2736_v59 = vpack.c.bf16 %v2659_v1, %v2656_v55  ;;  %4258 = vmatprep.subr.bf16.mxu0 %v5098_v9  ;;  %v4546_v1 = vld [vmem:[%s6494_s4 + $0x8] sm:$0xff]  }
 0x9f2   : > { %4259 = vmatpush3.bf16.msra.mxu0 %v2736_v59  ;;  %v4547_v59 = vld [vmem:[%s6494_s4 + $0x10] sm:$0xff]  }
 0x9f3   : > { %v4248_v4 = vpop.f32.mrb[112].mxu1  ;;  %4260 = vmatprep.subr.bf16.mxu0 %v5098_v9 }
 0x9f4   : > { %v2672_v60 = vpop.f32.mrb[113].mxu1 }
 0x9f5   : > { %v4249_v61 = vpop.f32.mrb[114].mxu1 }
 0x9f6   : > { %v2739_v16 = vpack.c.bf16 %v4249_v61, %v4248_v4  ;;  %v2675_v62 = vpop.f32.mrb[115].mxu1  ;;  %4261 = vmatpush3.bf16.msra.mxu0 %v2737_v58  ;;  %v4545_v58 = vld [vmem:[%s6494_s4] sm:$0xff]   ;;  %v4548_v4 = vld [vmem:[%s6494_s4 + $0x18] sm:$0xff]  }
 0x9f7   : > { %v2738_v41 = vpack.c.bf16 %v2675_v62, %v2672_v60  ;;  %4262 = vmatprep.subr.bf16.mxu0 %v5098_v9  ;;  %v3847_v60 = vld [vmem:[#allocation25] ss:$0 sm:$0xff] }
 0x9fa   : > { %4263 = vmatpush3.bf16.msra.mxu0 %v2738_v41 }
 0x9fb   : > { %4264 = vmatprep.subr.bf16.mxu0 %v5098_v9 }
 0x9fe   : > { %4265 = vmatpush3.bf16.msra.mxu0 %v2739_v16 }
 0x9ff   : > { %4270 = vmatprep.subr.bf16.mxu0 %v5098_v9 }
 0xa01   : > { %4267 = vmatmul.mubr.msk.bf16.vlgmr.msra.gmra.mrb[48].mxu0 %vm5900_vm6, %v3830_v5 }
 0xa02   : > { %4286 = vmatprep.mubr.msk.bf16.mxu0 %vm5099_vm1, %v5098_v9  ;;  %4271 = vmatpush3.bf16.msra.mxu0 %v4533_v22 }
 0xa03   : > { %4272 = vmatprep.subr.bf16.mxu0 %v5098_v9 }
 0xa06   : > { %4273 = vmatpush3.bf16.msra.mxu0 %v4534_v47 }
 0xa07   : > { %4274 = vmatprep.subr.bf16.mxu0 %v5098_v9 }
 0xa0a   : > { %4275 = vmatpush3.bf16.msra.mxu0 %v4535_v0 }
 0xa0b   : > { %4276 = vmatprep.subr.bf16.mxu0 %v5098_v9 }
 0xa0e   : > { %4277 = vmatpush3.bf16.msra.mxu0 %v4536_v3 }
 0xa0f   : > { %4278 = vmatprep.subr.bf16.mxu0 %v5098_v9 }
 0xa12   : > { %4279 = vmatpush3.bf16.msra.mxu0 %v4537_v6 }
 0xa13   : > { %4280 = vmatprep.subr.bf16.mxu0 %v5098_v9 }
 0xa16   : > { %4281 = vmatpush3.bf16.msra.mxu0 %v4538_v12 }
 0xa17   : > { %4282 = vmatprep.subr.bf16.mxu0 %v5098_v9 }
 0xa1a   : > { %4283 = vmatpush3.bf16.msra.mxu0 %v4539_v13  ;;  %v6145_v13 = vld [vmem:[%s6495_s27] sm:$0xff] }
 0xa1b   : > { %4284 = vmatprep.subr.bf16.mxu0 %v5098_v9 }
 0xa1e   : > { %4285 = vmatpush3.bf16.msra.mxu0 %v4540_v14  ;;  %v6148_v14 = vld [vmem:[#allocation3] sm:$0xff] }
 0xa1f   : > { %4298 = vmatprep.subr.bf16.mxu0 %v5098_v9 }
 0xab4   : > { %v3999_v49 = vpop.f32.mrb[44].mxu0 }
 0xab5   : > { %v4000_v7 = vpop.f32.mrb[45].mxu0 }
 0xab6   : > { %v4001_v8 = vadd.f32 %v4000_v7, %v3999_v49  ;;  %v4002_v23 = vpop.f32.mrb[46].mxu0  ;;  %v3843_v7 = vld [vmem:[#allocation22] ss:$0 sm:$0xff] }
 0xab7   : > { %v4003_v10 = vpop.f32.mrb[47].mxu0 }
 0xad4   : > { %v2814_v15 = vpop.f32.mrb[48].mxu0 }
 0xad5   : > { %v2815_v32 = vadd.f32 %v4001_v8, %v2814_v15  ;;  %v4268_v11 = vpop.f32.mrb[49].mxu0  ;;  %v6139_v8 = vshrl.u32 %v924_v63, 7  ;;  %v6150_v15 = vld [vmem:[#allocation3 + $0x8] sm:$0xff]  ;;  %v6155_v63 = vld [vmem:[%s6495_s27 + $0x8] sm:$0xff] }
 0xad6   : > { %v2817_v18 = vpop.f32.mrb[50].mxu0 }
 0xad7   : > { %v2821_v20 = vmul.f32 %v4578_v33, %v2815_v32  ;;  %v4269_v21 = vpop.f32.mrb[51].mxu0  ;;  %v3125_v56 = vsub.s32 7, %v6139_v8  ;;  %v6160_v32 = vld [vmem:[%s6495_s27 + $0x10] sm:$0xff]  ;;  %v3155_v33 = vsub.s32 0, %v6139_v8  ;;  %v3141_v18 = vrot.slane %v6148_v14, 1 }
 0xad8   : > { %vm3148_vm8 = vcmp.lt.s32.totalorder %v6139_v8, 7  ;;  %vm3182_vm9 = vcmp.lt.s32.totalorder %v6139_v8, 6  ;;  %vm3216_vm10 = vcmp.lt.s32.totalorder %v6139_v8, 5  ;;  %vm3250_vm11 = vcmp.lt.s32.totalorder %v6139_v8, 4 }
 0xad9   : > { %2823 = vrot.lane.b32.xlu0 %v2821_v20, %s5101_s5  ;;  %v3126_v11 = vrot.slane %v6145_v13, %v3125_v56  ;;  %v3142_v20 = vrot.slane %v6150_v15, 1  ;;  %v3132_v21 = vrot.slane %v6155_v63, %v3125_v56  ;;  %vm3284_vm12 = vcmp.lt.s32.totalorder %v6139_v8, 3  ;;  %s6497_s5 = sld [smem:[#allocation56_spill]] }
 0xada   : > { %vm3318_vm13 = vcmp.lt.s32.totalorder %v6139_v8, 2  ;;  %vm3352_vm14 = vcmp.lt.s32.totalorder %v6139_v8, 1 }
 0xb4b   : > { %v2824_v37 = vpop.permute.xlu0 %2823 }
 0xb4c   : > { %2827 = vst.msk [vmem:[#allocation2] sm:$0xff] %vm2826_vm7, %v2824_v37  ;;  %v3138_v37 = vrot.slane %v6160_v32, %v3125_v56 }
 0xb53   : > { %v2828_v38 = vld [vmem:[#allocation2] sm:$0xff] }
 0xb54   : > { %v2829_v39 = vpack.c.bf16 %v2828_v38, %v2828_v38  ;;  %v6169_v38 = vld [vmem:[#allocation3 + $0x18] sm:$0xff] }
 0xb55   : > { %v3144_v24 = vrot.slane %v6169_v38, 1 }
 0xb56   : > { %4287 = vmatmul.mubr.bf16.vlgmr.msra.gmra.mrb[52].mxu0 %v2829_v39  ;;  %v6171_v39 = vld [vmem:[#allocation3 + $0x20] sm:$0xff] }
 0xb57   : > { %4302 = vmatprep.mubr.msk.bf16.mxu0 %vm5099_vm1, %v5098_v9  ;;  %4299 = vmatpush3.bf16.msra.mxu0 %v4543_v51  ;;  %v3177_v51 = vrot.slane %v6148_v14, 2 }
 0xb58   : > { %4300 = vmatprep.subr.bf16.mxu0 %v5098_v9 }
 0xb5b   : > { %4301 = vmatpush3.bf16.msra.mxu0 %v4544_v28  ;;  %v3168_v28 = vrot.slane %v6160_v32, %v3155_v33 }
 0xc29   : > { %v2928_v17 = vpop.f32.mrb[52].mxu0 }
 0xc2a   : > { %v2934_v43 = vadd.f32 %v4589_v19, %v2928_v17  ;;  %v4288_v44 = vpop.f32.mrb[53].mxu0  ;;  %v3127_v17 = vmul.f32 %v3126_v11, %v6150_v15 }
 0xc2b   : > { %v2931_v45 = vpop.f32.mrb[54].mxu0 }
 0xc2c   : > { %v6110_v42 = vadd.f32 %v3840_v40, %v2934_v43  ;;  %v4289_v2 = vpop.f32.mrb[55].mxu0  ;;  %v3156_v40 = vrot.slane %v6145_v13, %v3155_v33  ;;  %v3152_v43 = vsel %vm3148_vm8, %v3141_v18, %v3142_v20  ;;  %v3139_v45 = vmul.f32 %v3138_v37, %v6169_v38 }
 0xc2e   : > { %v2945_v48 = vsel %vm878_vm0, %v6110_v42, 0.0 }
 0xc2f   : > { %2946 = vadd.xlane.f32.xlu1 %v2945_v48  ;;  %v6185_v48 = vld [vmem:[%s6495_s27 + $0x18] sm:$0x7f] }
 0xcbc   : > { %v2947_v25 = vpop.xlane.xlu1 %2946 }
 0xcbd   : > { %v2948_v26 = vmul.f32 0.03125, %v2947_v25  ;;  %v3145_v25 = vrot.slane %v6171_v39, 1 }
 0xcbf   : > { %v2949_v29 = vsub.f32 %v6110_v42, %v2948_v26 }
 0xcc1   : > { %v2950_v36 = vmul.f32 %v2949_v29, %v2949_v29 }
 0xcc3   : > { %v2951_v50 = vsel %vm878_vm0, %v2950_v36, 0.0  ;;  %v3162_v36 = vrot.slane %v6155_v63, %v3155_v33 }
 0xcc4   : > { %2952 = vadd.xlane.f32.xlu1 %v2951_v50 }
 0xd51   : > { %v2953_v31 = vpop.xlane.xlu1 %2952 }
 0xd52   : > { %v2954_v52 = vmul.f32 0.03125, %v2953_v31  ;;  %v3174_v31 = vrot.slane %v6185_v48, %v3155_v33 }
 0xd54   : > { %v2955_v30 = vadd.f32 1e-05, %v2954_v52  ;;  %v3189_v52 = vsub.s32 1, %v6139_v8 }
 0xd56   : > { %4579 = vrsqrt.f32 %v2955_v30  ;;  %v3149_v30 = vsel %vm3148_vm8, %v3144_v24, %v3145_v25  ;;  %v3257_v25 = vsub.s32 3, %v6139_v8 }
 0xd60   : > { %v4580_v34 = vpop.eup %4579 }
 0xd61   : > { %v2957_v53 = vmul.f32 %v4580_v34, %v2949_v29  ;;  %v3157_v29 = vmul.f32 %v3156_v40, %v3152_v43 }
 0xd63   : > { %v2964_v54 = vmul.f32 %v3841_v35, %v2957_v53  ;;  %v3178_v35 = vrot.slane %v6150_v15, 2 }
 0xd65   : > { %v2971_v55 = vadd.f32 %v3842_v46, %v2964_v54  ;;  %v3190_v54 = vrot.slane %v6145_v13, %v3189_v52 }
 0xd67   : > { %v2972_v57 = vpack.c.bf16 %v2971_v55, %v2971_v55 }
 0xd69   : > { %4295 = vmatmul.mubr.msk.bf16.vlgmr.msra.gmra.mrb[116].mxu1 %vm878_vm0, %v2972_v57  ;;  %4303 = vmatmul.mubr.msk.bf16.vlgmr.msra.gmra.mrb[56].mxu0 %vm878_vm0, %v2972_v57  ;;  %v3186_v57 = vsel %vm3182_vm9, %v3177_v51, %v3178_v35 }
 0xd6a   : > { %4314 = vmatprep.mubr.msk.bf16.mxu1 %vm5099_vm1, %v5098_v9  ;;  %4307 = vmatpush3.bf16.msra.mxu1 %v4545_v58 }
 0xd6b   : > { %4308 = vmatprep.subr.bf16.mxu1 %v5098_v9 }
 0xd6e   : > { %4309 = vmatpush3.bf16.msra.mxu1 %v4546_v1 }
 0xd6f   : > { %4310 = vmatprep.subr.bf16.mxu1 %v5098_v9 }
 0xd72   : > { %4311 = vmatpush3.bf16.msra.mxu1 %v4547_v59  ;;  %v3175_v59 = vmul.f32 %v3174_v31, %v3149_v30 }
 0xd73   : > { %4312 = vmatprep.subr.bf16.mxu1 %v5098_v9 }
 0xd76   : > { %4313 = vmatpush3.bf16.msra.mxu1 %v4548_v4  ;;  %v3180_v4 = vrot.slane %v6169_v38, 2 }
 0xe3c   : > { %v3033_v61 = vpop.f32.mrb[116].mxu1  ;;  %v3096_v16 = vpop.f32.mrb[56].mxu0 }
 0xe3d   : > { %v3097_v62 = vadd.f32 %v3847_v60, %v3096_v16  ;;  %v4296_v41 = vpop.f32.mrb[117].mxu1  ;;  %v4304_v5 = vpop.f32.mrb[57].mxu0  ;;  %v3034_v9 = vadd.f32 %v3843_v7, %v3033_v61  ;;  %v3181_v60 = vrot.slane %v6171_v39, 2  ;;  %v3191_v16 = vmul.f32 %v3190_v54, %v3186_v57 }
 0xe3e   : > { %v3036_v22 = vpop.f32.mrb[118].mxu1  ;;  %v3099_v47 = vpop.f32.mrb[58].mxu0  ;;  %v3211_v5 = vrot.slane %v6148_v14, 3 }
 0xe3f   : > { %v3851_v0 = vmul.f32 -1.442695, %v3097_v62  ;;  %v4297_v3 = vpop.f32.mrb[119].mxu1  ;;  %v4305_v6 = vpop.f32.mrb[59].mxu0  ;;  %v3196_v62 = vrot.slane %v6155_v63, %v3189_v52  ;;  %v3202_v47 = vrot.slane %v6160_v32, %v3189_v52 }
 0xe40   : > { %v3223_v3 = vsub.s32 2, %v6139_v8  ;;  %v3183_v6 = vsel %vm3182_vm9, %v3180_v4, %v3181_v60  ;;  %v3291_v60 = vsub.s32 4, %v6139_v8 }
 0xe41   : > { %4581 = vpow2.f32 %v3851_v0  ;;  %v3208_v0 = vrot.slane %v6185_v48, %v3189_v52 }
 0xe42   : > { %v3230_v40 = vrot.slane %v6155_v63, %v3223_v3 }
 0xe43   : > { %v3209_v18 = vmul.f32 %v3208_v0, %v3183_v6 }
 0xe4b   : > { %v4582_v12 = vpop.eup %4581 }
 0xe4c   : > { %v3105_v49 = vadd.f32 1.0, %v4582_v12 }
 0xe4e   : > { %4583 = vrcp.f32 %v3105_v49  ;;  %v3212_v49 = vrot.slane %v6150_v15, 3 }
 0xe50   : > { %v3220_v56 = vsel %vm3216_vm10, %v3211_v5, %v3212_v49 }
 0xe58   : > { %v4584_v23 = vpop.eup %4583 }
 0xe59   : > { %v3108_v10 = vmul.f32 %v4584_v23, %v3034_v9  ;;  %v3224_v23 = vrot.slane %v6145_v13, %v3223_v3 }
 0xe5b   : > { %3113 = vst.msk [vmem:[#allocation3 + $0x10] sm:$0xff] %vm1189_vm2, %v3108_v10 }
 0xe62   : > { %v6175_v19 = vld [vmem:[#allocation3 + $0x10] sm:$0xff] }
 0xe63   : > { %v3133_v44 = vmul.f32 %v3132_v21, %v6175_v19  ;;  %v3143_v2 = vrot.slane %v6175_v19, 1  ;;  %v3179_v55 = vrot.slane %v6175_v19, 2  ;;  %v3213_v10 = vrot.slane %v6175_v19, 3 }
 0xe64   : > { %v3215_v21 = vrot.slane %v6171_v39, 3 }
 0xe65   : > { %v3134_v26 = vadd.f32 %v3133_v44, %v3127_v17  ;;  %v3151_v50 = vsel %vm3148_vm8, %v3142_v20, %v3143_v2  ;;  %v3150_v34 = vsel %vm3148_vm8, %v3143_v2, %v3144_v24  ;;  %v3185_v41 = vsel %vm3182_vm9, %v3178_v35, %v3179_v55 }
 0xe66   : > { %v3163_v46 = vmul.f32 %v3162_v36, %v3151_v50  ;;  %v3169_v1 = vmul.f32 %v3168_v28, %v3150_v34  ;;  %v3184_v12 = vsel %vm3182_vm9, %v3179_v55, %v3180_v4  ;;  %v3197_v9 = vmul.f32 %v3196_v62, %v3185_v41 }
 0xe67   : > { %v3140_v27 = vadd.f32 %v3139_v45, %v3134_v26  ;;  %v3203_v33 = vmul.f32 %v3202_v47, %v3184_v12  ;;  %v3214_v20 = vrot.slane %v6169_v38, 3  ;;  %v3225_v17 = vmul.f32 %v3224_v23, %v3220_v56 }
 0xe68   : > { %v3219_v43 = vsel %vm3216_vm10, %v3212_v49, %v3213_v10  ;;  %v3245_v44 = vrot.slane %v6148_v14, 4  ;;  %v3236_v2 = vrot.slane %v6160_v32, %v3223_v3  ;;  %v3242_v24 = vrot.slane %v6185_v48, %v3223_v3 }
 0xe69   : > { %v3158_v53 = vadd.f32 %v3157_v29, %v3140_v27  ;;  %v3217_v26 = vsel %vm3216_vm10, %v3214_v20, %v3215_v21  ;;  %v3218_v29 = vsel %vm3216_vm10, %v3213_v10, %v3214_v20  ;;  %v3246_v36 = vrot.slane %v6150_v15, 4 }
 0xe6a   : > { %v3231_v51 = vmul.f32 %v3230_v40, %v3219_v43  ;;  %v3258_v27 = vrot.slane %v6145_v13, %v3257_v25  ;;  %v3247_v28 = vrot.slane %v6175_v19, 4  ;;  %v3237_v30 = vmul.f32 %v3236_v2, %v3218_v29 }
 0xe6b   : > { %v3164_v58 = vadd.f32 %v3163_v46, %v3158_v53  ;;  %v3254_v31 = vsel %vm3250_vm11, %v3245_v44, %v3246_v36  ;;  %v3243_v34 = vmul.f32 %v3242_v24, %v3217_v26  ;;  %v3248_v35 = vrot.slane %v6169_v38, 4 }
 0xe6c   : > { %v3249_v53 = vrot.slane %v6171_v39, 4  ;;  %v3259_v54 = vmul.f32 %v3258_v27, %v3254_v31  ;;  %v3264_v55 = vrot.slane %v6155_v63, %v3257_v25  ;;  %v3253_v57 = vsel %vm3250_vm11, %v3246_v36, %v3247_v28 }
 0xe6d   : > { %v3170_v61 = vadd.f32 %v3169_v1, %v3164_v58  ;;  %v3279_v58 = vrot.slane %v6148_v14, 5  ;;  %v3276_v4 = vrot.slane %v6185_v48, %v3257_v25  ;;  %v3280_v62 = vrot.slane %v6150_v15, 5 }
 0xe6e   : > { %v3265_v5 = vmul.f32 %v3264_v55, %v3253_v57  ;;  %v3281_v47 = vrot.slane %v6175_v19, 5  ;;  %v3282_v49 = vrot.slane %v6169_v38, 5  ;;  %v3298_v10 = vrot.slane %v6155_v63, %v3291_v60 }
 0xe6f   : > { %v3176_v22 = vadd.f32 %v3175_v59, %v3170_v61  ;;  %v3270_v59 = vrot.slane %v6160_v32, %v3257_v25  ;;  %v3251_v61 = vsel %vm3250_vm11, %v3248_v35, %v3249_v53  ;;  %v3288_v0 = vsel %vm3284_vm12, %v3279_v58, %v3280_v62 }
 0xe70   : > { %v3277_v12 = vmul.f32 %v3276_v4, %v3251_v61  ;;  %v3287_v56 = vsel %vm3284_vm12, %v3280_v62, %v3281_v47  ;;  %v3310_v20 = vrot.slane %v6185_v48, %v3291_v60  ;;  %v3325_v21 = vsub.s32 5, %v6139_v8 }
 0xe71   : > { %v3192_v7 = vadd.f32 %v3191_v16, %v3176_v22  ;;  %v3252_v16 = vsel %vm3250_vm11, %v3247_v28, %v3248_v35  ;;  %v3292_v22 = vrot.slane %v6145_v13, %v3291_v60  ;;  %v3314_v40 = vrot.slane %v6150_v15, 6 }
 0xe72   : > { %v3271_v6 = vmul.f32 %v3270_v59, %v3252_v16  ;;  %v3299_v44 = vmul.f32 %v3298_v10, %v3287_v56  ;;  %v3315_v2 = vrot.slane %v6175_v19, 6  ;;  %v3316_v36 = vrot.slane %v6169_v38, 6 }
 0xe73   : > { %v3198_v11 = vadd.f32 %v3197_v9, %v3192_v7  ;;  %v3283_v7 = vrot.slane %v6171_v39, 5  ;;  %v3293_v23 = vmul.f32 %v3292_v22, %v3288_v0  ;;  %v3332_v28 = vrot.slane %v6155_v63, %v3325_v21 }
 0xe74   : > { %v3321_v31 = vsel %vm3318_vm13, %v3314_v40, %v3315_v2  ;;  %v3344_v35 = vrot.slane %v6185_v48, %v3325_v21  ;;  %v3359_v53 = vsub.s32 6, %v6139_v8  ;;  %v3348_v55 = vrot.slane %v6150_v15, 7 }
 0xe75   : > { %v3204_v37 = vadd.f32 %v3203_v33, %v3198_v11  ;;  %v3313_v11 = vrot.slane %v6148_v14, 6  ;;  %v3333_v58 = vmul.f32 %v3332_v28, %v3321_v31  ;;  %v3350_v16 = vrot.slane %v6169_v38, 7 }
 0xe76   : > { %v3351_v62 = vrot.slane %v6171_v39, 7 }
 0xe77   : > { %v3210_v45 = vadd.f32 %v3209_v18, %v3204_v37  ;;  %v3304_v18 = vrot.slane %v6160_v32, %v3291_v60  ;;  %v3285_v37 = vsel %vm3284_vm12, %v3282_v49, %v3283_v7  ;;  %v3322_v24 = vsel %vm3318_vm13, %v3313_v11, %v3314_v40 }
 0xe78   : > { %v3311_v29 = vmul.f32 %v3310_v20, %v3285_v37  ;;  %v3353_v0 = vsel %vm3352_vm14, %v3350_v16, %v3351_v62 }
 0xe79   : > { %v3226_v50 = vadd.f32 %v3225_v17, %v3210_v45  ;;  %v3286_v17 = vsel %vm3284_vm12, %v3281_v47, %v3282_v49  ;;  %v3326_v45 = vrot.slane %v6145_v13, %v3325_v21  ;;  %v3378_v47 = vrot.slane %v6185_v48, %v3359_v53 }
 0xe7a   : > { %v3305_v26 = vmul.f32 %v3304_v18, %v3286_v17  ;;  %v3859_v18 = vld [vmem:[%s6497_s5] ss:$0 sm:$0xff]  ;;  %s4988_s5 = sshll.u32 %s5102_s0, 4  ;;  %s4989_s5 = int_to_ptr.vmem [resolvable:$false] %s4988_s5 }
 0xe7b   : > { %v3232_v52 = vadd.f32 %v3231_v51, %v3226_v50  ;;  %v3317_v50 = vrot.slane %v6171_v39, 6  ;;  %v3327_v27 = vmul.f32 %v3326_v45, %v3322_v24  ;;  %v3379_v49 = vmul.f32 %v3378_v47, %v3353_v0  ;;  %s4990_s18 = scalar_lea.vmem %s4989_s5, 256 }
 0xe7d   : > { %v3238_v46 = vadd.f32 %v3237_v30, %v3232_v52  ;;  %v3347_v52 = vrot.slane %v6148_v14, 7  ;;  %v3360_v14 = vrot.slane %v6145_v13, %v3359_v53 }
 0xe7f   : > { %v3244_v1 = vadd.f32 %v3243_v34, %v3238_v46  ;;  %v3338_v34 = vrot.slane %v6160_v32, %v3325_v21  ;;  %v3319_v46 = vsel %vm3318_vm13, %v3316_v36, %v3317_v50  ;;  %v3356_v59 = vsel %vm3352_vm14, %v3347_v52, %v3348_v55 }
 0xe80   : > { %v3345_v61 = vmul.f32 %v3344_v35, %v3319_v46  ;;  %v3361_v15 = vmul.f32 %v3360_v14, %v3356_v59 }
 0xe81   : > { %v3260_v41 = vadd.f32 %v3259_v54, %v3244_v1  ;;  %v3320_v54 = vsel %vm3318_vm13, %v3315_v2, %v3316_v36  ;;  %v3349_v1 = vrot.slane %v6175_v19, 7  ;;  %v3372_v19 = vrot.slane %v6160_v32, %v3359_v53  ;;  %v3852_v32 = vld [vmem:[%s6496_s2] ss:$0 sm:$0xff]  ;;  %s3496_s2 = sshll.u32 %s873_s8, 4  ;;  %s6328_s2 = int_to_ptr.vmem [resolvable:$true] %s3496_s2 }
 0xe82   : > { %v3339_v60 = vmul.f32 %v3338_v34, %v3320_v54  ;;  %s4984_s19 = scalar_lea.vmem %s6328_s2, 128  ;;  %p4991_p5 = scmp.lt.s32.totalorder %s6328_s2, %s4989_s5 }
 0xe83   : > { %v3266_v3 = vadd.f32 %v3265_v5, %v3260_v41  ;;  %v3366_v5 = vrot.slane %v6155_v63, %v3359_v53  ;;  %v3355_v22 = vsel %vm3352_vm14, %v3348_v55, %v3349_v1  ;;  %v3354_v38 = vsel %vm3352_vm14, %v3349_v1, %v3350_v16  ;;  %p4985_p6 = scmp.ne.s32.totalorder %s6328_s2, %s4984_s19  ;;  %p4992_p9 = scmp.lt.s32.totalorder %s4990_s18, %s4984_s19 }
 0xe85   : > { %v3272_v9 = vadd.f32 %v3271_v6, %v3266_v3  ;;  %v3367_v39 = vmul.f32 %v3366_v5, %v3355_v22  ;;  %p4986_p12 = pnand %p4985_p6, %p6500_p11  ;;  %p4993_p7 = por %p4992_p9, %p4991_p5 }
 0xe87   : > { %v3278_v33 = vadd.f32 %v3277_v12, %v3272_v9  ;;  %v3373_v12 = vmul.f32 %v3372_v19, %v3354_v38  ;;  %p4987_p8 = pneg %p4986_p12 }
 0xe89   : > { %v3294_v43 = vadd.f32 %v3293_v23, %v3278_v33  ;;  %p4994_p10 = pnand %p4993_p7, %p4987_p8 }
 0xe8b   : > { %v3300_v25 = vadd.f32 %v3299_v44, %v3294_v43 }
 0xe8d   : > { %v3306_v51 = vadd.f32 %v3305_v26, %v3300_v25 }
 0xe8f   : > { %v3312_v30 = vadd.f32 %v3311_v29, %v3306_v51 }
 0xe91   : > { %v3328_v57 = vadd.f32 %v3327_v27, %v3312_v30 }
 0xe93   : > { %v3334_v4 = vadd.f32 %v3333_v58, %v3328_v57 }
 0xe95   : > { %v3340_v41 = vadd.f32 %v3339_v60, %v3334_v4 }
 0xe97   : > { %v3346_v13 = vadd.f32 %v3345_v61, %v3340_v41 }
 0xe99   : > { %v3362_v3 = vadd.f32 %v3361_v15, %v3346_v13 }
 0xe9b   : > { %v3368_v6 = vadd.f32 %v3367_v39, %v3362_v3 }
 0xe9d   : > { %v3374_v63 = vadd.f32 %v3373_v12, %v3368_v6 }
 0xe9f   : > { %v3380_v7 = vadd.f32 %v3379_v49, %v3374_v63 }
 0xea1   : > { %v3388_v48 = vadd.f32 %v3852_v32, %v3380_v7 }
 0xea3   : > { %v3853_v9 = vmul.f32 -1.442695, %v3388_v48 }
 0xea5   : > { %4585 = vpow2.f32 %v3853_v9 }
 0xeaf   : > { %v4586_v23 = vpop.eup %4585 }
 0xeb0   : > { %v3392_v10 = vadd.f32 1.0, %v4586_v23 }
 0xeb2   : > { %4587 = vrcp.f32 %v3392_v10 }
 0xebc   : > { %v4588_v8 = vpop.eup %4587 }
 0xebd   : > { %v3395_v56 = vmul.f32 %v4588_v8, %v3388_v48 }
 0xebf   : > { %v3396_v11 = vpack.c.bf16 %v3395_v56, %v3395_v56 }
 0xec1   : > { %4315 = vmatmul.mubr.msk.bf16.vlgmr.msra.gmra.mrb[120].mxu1 %vm1189_vm2, %v3396_v11 }
 0xf94   : > { %v3466_v33 = vpop.f32.mrb[120].mxu1 }
 0xf95   : > { %v3472_v20 = vadd.f32 %v3466_v33, %v6110_v42  ;;  %v4316_v21 = vpop.f32.mrb[121].mxu1 }
 0xf96   : > { %v3469_v37 = vpop.f32.mrb[122].mxu1 }
 0xf97   : > { %v3480_v17 = vadd.f32 %v3859_v18, %v3472_v20  ;;  %v4317_v40 = vpop.f32.mrb[123].mxu1 }
 0xf99   : > { %3481 = vst.msk [vmem:[%s873_s8] sm:$0xff] %vm878_vm0, %v3480_v17 }
 0xf9a   : > { %4997 = shalt.err (!%p4994_p10)
}
 0xf9b   : > { %s4998_s11 = scalar_lea.hbm %s6326_s13, 128  ;;  %s5002_s1 = scalar_lea.hbm %s6499_s12, 256 }
 0xf9c   : > { %p4999_p4 = scmp.ne.s32.totalorder %s6326_s13, %s4998_s11  ;;  %p5003_p3 = scmp.lt.u32.totalorder %s6326_s13, %s6499_s12 }
 0xf9d   : > { %p5004_p2 = scmp.lt.u32.totalorder %s5002_s1, %s4998_s11  ;;  %p5006_p6 = scmp.lt.u32.totalorder %s4998_s11, %s6326_s13 }
 0xf9e   : > { %p5000_p13 = pnand %p4999_p4, %p6500_p11 }
 0xf9f   : > { %p5005_p0 = por %p5004_p2, %p5003_p3 }
 0xfa0   : > { %p5001_p1 = pneg %p5000_p13 }
 0xfa1   : > { %p5007_p12 = por %p5006_p6, %p5005_p0 }
 0xfa3   : > { %p5008_p8 = pnand %p5007_p12, %p5001_p1 }
 0xfa5   : > { %5011 = shalt.err (!%p5008_p8)
}
 0xfa6   : > { %4374 = dma.vmem_to_hbm [thread:$0]  (%p6500_p11), %s6328_s2, 128, %s6326_s13, %s3483_s23  }
 0xfa7 PF: > { %s3508_s19 = sand.u32 1, %s5066_s3   ;;  %p6501_p5 = scmp.ne.s32.totalorder %s6468_s10, 0 }
 0xfa8   : > { %p6502_p9 = scmp.ge.s32.totalorder %s5078_s30, 2  ;;  %s3509_s5 = scalar_lea.sflag [#allocation6], %s3508_s19 }
 0xfaa   : > { %p4421_p7 = pnand %p6502_p9, %p6501_p5 }
 0xfac   : > { %5061 = dma.done.wait (!%p4421_p7), %s3509_s5, 128  }
 0xfad   : > { %5063 = vsyncadd (!%p4421_p7), %s3509_s5, 4294967168  ;;  %p42_p10 = scmp.ge.s32.totalorder %s5539_s6, 4   ;;  %s6503_s3 = smov %s5070_s28 }
 0xfae   : > { %s6504_s28 = smov %s5074_s29  ;;  %s6505_s29 = smov %s5551_s7 }
 0xfaf   : > { %s6506_s30 = smov %s5539_s6  ;;  %44 = sbr.rel (!%p42_p10) target bundleno = 32 (0x20), region = 211 }
 0xfb6   :  { %3514 = vsyncpa [#allocation5], 1 }
 0xfb7   :  { %3516 = vsyncpa [#allocation5 + $0x1], 1 }
 0xfb8   :  { %3517 = vsyncpa [#allocation8], 1 }
 0xfb9   :  { %3518 = vsyncpa [#allocation11], 1 }
 0xfba   :  { %3519 = vsyncpa [#allocation14], 1 }
 0xfbb   :  { %3520 = vsyncpa [#allocation17], 1 }
 0xfbc   :  { %3521 = vsyncpa [#allocation20], 1 }
 0xfbd   :  { %3522 = vsyncpa [#allocation23], 1 }
 0xfbe   :  { %3523 = vsyncpa [#allocation26], 1 }
 0xfbf   :  { %3524 = vsyncpa [#allocation6], 1 }
 0xfc0   :  { %3526 = vsyncpa [#allocation6 + $0x1], 1 }

</bundles_post_ra>
